<compile_context>
chip_gen: v7x
topology: tpu7x:2x2x1
jax: 0.10.0
libtpu: 0.0.40
codegen_flags: <defaults>
</compile_context>

<pallas_src>
import math
import numpy as np
import jax
import jax.numpy as jnp
from jax.experimental import pallas as pl
from jax.experimental.pallas import tpu as pltpu


def make_cross_modal_attention(dim: int, num_heads: int, seq_len: int,
                               num_regions: int, batch: int, *,
                               mxu_dtype=jnp.bfloat16,
                               seq_tile: int | None = None,
                               vmem_limit_bytes: int = 48 * 1024 * 1024):
    assert dim % num_heads == 0
    head_dim = dim // num_heads
    scale = 1.0 / math.sqrt(head_dim)

    if seq_tile is None:
        seq_tile = min(seq_len, 256)           # ~128-256 on v7x, 256-512 on v5e/v6e
    assert seq_len % seq_tile == 0
    num_s_tiles = seq_len // seq_tile

    def kernel(text_ref, image_ref,
               wq_ref, wk_ref, wv_ref, wo_ref,
               bq_ref, bk_ref, bv_ref, bo_ref,
               out_ref):
        text = text_ref[...]                                    # (tq, D)
        text_f32 = text.astype(jnp.float32)                     # residual path, f32
        text_mx = text.astype(mxu_dtype)
        image_mx = image_ref[...].astype(mxu_dtype)              # (R, D)

        # Merged, lane-dense projections (f32 accumulation).  The softmax scale
        # is already folded into wq/bq by the wrapper.
        q = jnp.dot(text_mx, wq_ref[...],
                    preferred_element_type=jnp.float32) + bq_ref[...]      # (tq, D)
        k = jnp.dot(image_mx, wk_ref[...],
                    preferred_element_type=jnp.float32) + bk_ref[...]      # (R, D)
        v = jnp.dot(image_mx, wv_ref[...],
                    preferred_element_type=jnp.float32) + bv_ref[...]      # (R, D)
        q = q.astype(mxu_dtype)
        k = k.astype(mxu_dtype)
        v = v.astype(mxu_dtype)

        # Per-head attention with head-merge + output projection fused into a
        # single lane-dense (tq, D) f32 accumulator.  All slices are static.
        acc = jnp.zeros((seq_tile, dim), jnp.float32)
        for h in range(num_heads):
            sl = slice(h * head_dim, (h + 1) * head_dim)
            qh = q[:, sl]                                        # (tq, d)
            kh = k[:, sl]                                        # (R, d)
            vh = v[:, sl]                                        # (R, d)

            # Scores + softmax in f32 (VPU/XLU/EUP); contraction on the minor
            # dim of both operands -> no explicit transpose.
            # NOTE: R exactly matches the block here; padded keys would need a
            # -inf mask before the max/sum.
            s = jnp.einsum('qd,kd->qk', qh, kh,
                           preferred_element_type=jnp.float32)    # (tq, R)
            s = s - jnp.max(s, axis=-1, keepdims=True)
            p = jnp.exp(s)
            p = p * pl.reciprocal(jnp.sum(p, axis=-1, keepdims=True), approx=True)

            o = jnp.einsum('qk,kd->qd', p.astype(mxu_dtype), vh,
                           preferred_element_type=jnp.float32)    # (tq, d) f32

            # Fused head merge: accumulate o_h @ Wo[h*d:(h+1)*d, :].
            acc = acc + jnp.dot(o.astype(mxu_dtype), wo_ref[sl, :],
                                preferred_element_type=jnp.float32)  # (tq, D)

        out_ref[...] = (acc + bo_ref[...] + text_f32).astype(out_ref.dtype)

    def build(single_buffer_weights: bool, out_dtype):
        def const_spec(shape):
            # Grid-invariant block: constant index_map; single-buffer it so the
            # weights don't occupy 2x VMEM (matters at production D on v7x).
            kwargs = {}
            if single_buffer_weights:
                kwargs["pipeline_mode"] = pl.Buffered(1)
            return pl.BlockSpec(shape, lambda b, t: (0, 0), **kwargs)

        rows = lambda b, t: (b * num_s_tiles + t, 0)   # text / out tiles
        img = lambda b, t: (b, 0)                      # keys/values per batch

        return pl.pallas_call(
            kernel,
            out_shape=jax.ShapeDtypeStruct((batch * seq_len, dim), out_dtype),
            grid_spec=pltpu.PrefetchScalarGridSpec(
                num_scalar_prefetch=0,
                grid=(batch, num_s_tiles),
                in_specs=[
                    pl.BlockSpec((seq_tile, dim), rows),        # text tile
                    pl.BlockSpec((num_regions, dim), img),      # image (all keys)
                    const_spec((dim, dim)),                     # Wq (scale folded)
                    const_spec((dim, dim)),                     # Wk
                    const_spec((dim, dim)),                     # Wv
                    const_spec((dim, dim)),                     # Wo
                    const_spec((1, dim)),                       # bq (scale folded)
                    const_spec((1, dim)),                       # bk
                    const_spec((1, dim)),                       # bv
                    const_spec((1, dim)),                       # bo
                ],
                out_specs=pl.BlockSpec((seq_tile, dim), rows),
            ),
            compiler_params=pltpu.CompilerParams(
                dimension_semantics=("parallel", "parallel"),
                # <= ~48-56 MiB keeps headroom on v7x (64 MiB physical); raise
                # toward 64-100 MiB on v5e/v6e for larger tiles in production.
                vmem_limit_bytes=vmem_limit_bytes,
            ),
            # Residual is added in-kernel; reuse the text buffer for the output.
            input_output_aliases={0: 0},
        )

    def call(text_feat, image_feat, params):
        wq, bq, wk, bk, wv, bv, wo, bo = params

        # Fold 1/sqrt(head_dim) into the Q projection; MXU operands in bf16
        # (or mxu_dtype), biases stay f32 (added to the f32 accumulation).
        wq_c = (wq * scale).astype(mxu_dtype)
        wk_c = wk.astype(mxu_dtype)
        wv_c = wv.astype(mxu_dtype)
        wo_c = wo.astype(mxu_dtype)
        bq_c = (bq * scale).astype(jnp.float32)
        bk_c = bk.astype(jnp.float32)
        bv_c = bv.astype(jnp.float32)
        bo_c = bo.astype(jnp.float32)

        text_flat = text_feat.reshape(batch * seq_len, dim)
        image_flat = image_feat.reshape(batch * num_regions, dim)
        args = (text_flat, image_flat, wq_c, wk_c, wv_c, wo_c,
                bq_c, bk_c, bv_c, bo_c)

        try:
            out_flat = build(True, text_feat.dtype)(*args)
        except Exception:
            # This JAX build rejected pipeline_mode=pl.Buffered(1) for the
            # grid-invariant weights; fall back to default double-buffering
            # (identical kernel, identical results).
            out_flat = build(False, text_feat.dtype)(*args)

        return out_flat.reshape(batch, seq_len, dim)

    return call


def reference_forward(text_feat, image_feat, params, num_heads):
    """Pure-JAX reference matching the PyTorch forward."""
    wq, bq, wk, bk, wv, bv, wo, bo = params
    B, S, D = text_feat.shape
    _, R, _ = image_feat.shape
    d = D // num_heads
    q = (text_feat @ wq + bq[0]).reshape(B, S, num_heads, d).transpose(0, 2, 1, 3)
    k = (image_feat @ wk + bk[0]).reshape(B, R, num_heads, d).transpose(0, 2, 1, 3)
    v = (image_feat @ wv + bv[0]).reshape(B, R, num_heads, d).transpose(0, 2, 1, 3)
    s = jnp.einsum("bhsd,bhrd->bhsr", q, k) / math.sqrt(d)
    p = jax.nn.softmax(s, axis=-1)
    wvals = jnp.einsum("bhsr,bhrd->bhsd", p, v).transpose(0, 2, 1, 3).reshape(B, S, D)
    return wvals @ wo + bo[0] + text_feat


if __name__ == "__main__":
    B, S, R, D, H = 2, 8, 16, 32, 8

    key = jax.random.PRNGKey(0)
    keys = jax.random.split(key, 10)

    text_feat = jax.random.normal(keys[0], (B, S, D), dtype=jnp.float32)
    image_feat = jax.random.normal(keys[1], (B, R, D), dtype=jnp.float32)

    # nn.Linear-like deterministic init.
    bound = 1.0 / math.sqrt(D)
    init_w = lambda k: jax.random.uniform(k, (D, D), jnp.float32, -bound, bound)
    init_b = lambda k: jax.random.uniform(k, (1, D), jnp.float32, -bound, bound)
    params = (
        init_w(keys[2]), init_b(keys[3]),   # query
        init_w(keys[4]), init_b(keys[5]),   # key
        init_w(keys[6]), init_b(keys[7]),   # value
        init_w(keys[8]), init_b(keys[9]),   # final
    )

    # Reference first (the kernel output aliases/donates its flattened text slab).
    ref = jax.block_until_ready(reference_forward(text_feat, image_feat, params, H))

    # 1) f32 MXU operands: tight check (only the approx EUP reciprocal differs).
    attn_f32 = make_cross_modal_attention(dim=D, num_heads=H, seq_len=S,
                                          num_regions=R, batch=B,
                                          mxu_dtype=jnp.float32)
    out_f32 = jax.block_until_ready(attn_f32(text_feat, image_feat, params))
    np.testing.assert_allclose(np.asarray(out_f32), np.asarray(ref),
                               rtol=2e-3, atol=2e-3)

    # 2) Default bf16 MXU operands (production config on v5e/v6e/v7x): bf16
    #    matmul operands with f32 accumulation/softmax -> looser tolerance.
    attn_bf16 = make_cross_modal_attention(dim=D, num_heads=H, seq_len=S,
                                           num_regions=R, batch=B)
    out_bf16 = jax.block_until_ready(attn_bf16(text_feat, image_feat, params))
    np.testing.assert_allclose(np.asarray(out_bf16), np.asarray(ref),
                               rtol=2e-2, atol=2e-2)

    print("KERNEL_OK")
</pallas_src>

<mosaic_0001>
module attributes {stable_mosaic.version = 11 : i64} {
  func.func @kernel(%arg0: i32, %arg1: i32, %arg2: memref<8x32xf32, #tpu.memory_space<vmem>>, %arg3: memref<16x32xf32, #tpu.memory_space<vmem>>, %arg4: memref<32x32xf32, #tpu.memory_space<vmem>>, %arg5: memref<32x32xf32, #tpu.memory_space<vmem>>, %arg6: memref<32x32xf32, #tpu.memory_space<vmem>>, %arg7: memref<32x32xf32, #tpu.memory_space<vmem>>, %arg8: memref<1x32xf32, #tpu.memory_space<vmem>>, %arg9: memref<1x32xf32, #tpu.memory_space<vmem>>, %arg10: memref<1x32xf32, #tpu.memory_space<vmem>>, %arg11: memref<1x32xf32, #tpu.memory_space<vmem>>, %arg12: memref<8x32xf32, #tpu.memory_space<vmem>>) attributes {dimension_semantics = [#tpu.dimension_semantics<parallel>, #tpu.dimension_semantics<parallel>], iteration_bounds = array<i64: 2, 1>, scalar_prefetch = 0 : i64, scratch_operands = 0 : i64, tpu.core_type = #tpu.core_type<tc>, window_params = [{transform_indices = @transform_0, window_bounds = array<i64: 8, 32>}, {transform_indices = @transform_1, window_bounds = array<i64: 16, 32>}, {pipeline_mode = #tpu.pipeline_mode<synchronous>, transform_indices = @transform_2, window_bounds = array<i64: 32, 32>}, {pipeline_mode = #tpu.pipeline_mode<synchronous>, transform_indices = @transform_3, window_bounds = array<i64: 32, 32>}, {pipeline_mode = #tpu.pipeline_mode<synchronous>, transform_indices = @transform_4, window_bounds = array<i64: 32, 32>}, {pipeline_mode = #tpu.pipeline_mode<synchronous>, transform_indices = @transform_5, window_bounds = array<i64: 32, 32>}, {pipeline_mode = #tpu.pipeline_mode<synchronous>, transform_indices = @transform_6, window_bounds = array<i64: 1, 32>}, {pipeline_mode = #tpu.pipeline_mode<synchronous>, transform_indices = @transform_7, window_bounds = array<i64: 1, 32>}, {pipeline_mode = #tpu.pipeline_mode<synchronous>, transform_indices = @transform_8, window_bounds = array<i64: 1, 32>}, {pipeline_mode = #tpu.pipeline_mode<synchronous>, transform_indices = @transform_9, window_bounds = array<i64: 1, 32>}, {transform_indices = @transform_10, window_bounds = array<i64: 8, 32>}]} {
    %c0 = arith.constant 0 : index
    %c0_0 = arith.constant 0 : index
    %0 = vector.load %arg2[%c0, %c0_0] : memref<8x32xf32, #tpu.memory_space<vmem>>, vector<8x32xf32>
    %c0_1 = arith.constant 0 : index
    %c0_2 = arith.constant 0 : index
    %1 = vector.load %arg3[%c0_1, %c0_2] : memref<16x32xf32, #tpu.memory_space<vmem>>, vector<16x32xf32>
    %c0_3 = arith.constant 0 : index
    %c0_4 = arith.constant 0 : index
    %2 = vector.load %arg4[%c0_3, %c0_4] : memref<32x32xf32, #tpu.memory_space<vmem>>, vector<32x32xf32>
    %cst = arith.constant dense<0.000000e+00> : vector<8x32xf32>
    %3 = tpu.matmul %0, %2, %cst {dimension_numbers = #tpu.dot_dimension_numbers<[1], [0], [0], [1], [0, 0, 1, 1], [], []>} : vector<8x32xf32>, vector<32x32xf32>, vector<8x32xf32> -> vector<8x32xf32>
    %c0_5 = arith.constant 0 : index
    %c0_6 = arith.constant 0 : index
    %4 = vector.load %arg8[%c0_5, %c0_6] : memref<1x32xf32, #tpu.memory_space<vmem>>, vector<1x32xf32>
    %5 = vector.broadcast %4 : vector<1x32xf32> to vector<8x32xf32>
    %6 = arith.addf %3, %5 : vector<8x32xf32>
    %c0_7 = arith.constant 0 : index
    %c0_8 = arith.constant 0 : index
    %7 = vector.load %arg5[%c0_7, %c0_8] : memref<32x32xf32, #tpu.memory_space<vmem>>, vector<32x32xf32>
    %cst_9 = arith.constant dense<0.000000e+00> : vector<16x32xf32>
    %8 = tpu.matmul %1, %7, %cst_9 {dimension_numbers = #tpu.dot_dimension_numbers<[1], [0], [0], [1], [0, 0, 1, 1], [], []>} : vector<16x32xf32>, vector<32x32xf32>, vector<16x32xf32> -> vector<16x32xf32>
    %c0_10 = arith.constant 0 : index
    %c0_11 = arith.constant 0 : index
    %9 = vector.load %arg9[%c0_10, %c0_11] : memref<1x32xf32, #tpu.memory_space<vmem>>, vector<1x32xf32>
    %10 = vector.broadcast %9 : vector<1x32xf32> to vector<16x32xf32>
    %11 = arith.addf %8, %10 : vector<16x32xf32>
    %c0_12 = arith.constant 0 : index
    %c0_13 = arith.constant 0 : index
    %12 = vector.load %arg6[%c0_12, %c0_13] : memref<32x32xf32, #tpu.memory_space<vmem>>, vector<32x32xf32>
    %cst_14 = arith.constant dense<0.000000e+00> : vector<16x32xf32>
    %13 = tpu.matmul %1, %12, %cst_14 {dimension_numbers = #tpu.dot_dimension_numbers<[1], [0], [0], [1], [0, 0, 1, 1], [], []>} : vector<16x32xf32>, vector<32x32xf32>, vector<16x32xf32> -> vector<16x32xf32>
    %c0_15 = arith.constant 0 : index
    %c0_16 = arith.constant 0 : index
    %14 = vector.load %arg10[%c0_15, %c0_16] : memref<1x32xf32, #tpu.memory_space<vmem>>, vector<1x32xf32>
    %15 = vector.broadcast %14 : vector<1x32xf32> to vector<16x32xf32>
    %16 = arith.addf %13, %15 : vector<16x32xf32>
    %cst_17 = arith.constant 0.000000e+00 : f32
    %17 = vector.broadcast %cst_17 : f32 to vector<8x32xf32>
    %18 = vector.extract_strided_slice %6 {offsets = [0, 0], sizes = [8, 4], strides = [1, 1]} : vector<8x32xf32> to vector<8x4xf32>
    %19 = vector.extract_strided_slice %11 {offsets = [0, 0], sizes = [16, 4], strides = [1, 1]} : vector<16x32xf32> to vector<16x4xf32>
    %20 = vector.extract_strided_slice %16 {offsets = [0, 0], sizes = [16, 4], strides = [1, 1]} : vector<16x32xf32> to vector<16x4xf32>
    "tpu.trace_start"() <{level = 10 : i32, message = "qd,kd->qk"}> : () -> ()
    %cst_18 = arith.constant dense<0.000000e+00> : vector<8x16xf32>
    %21 = tpu.matmul %18, %19, %cst_18 {dimension_numbers = #tpu.dot_dimension_numbers<[1], [1], [0], [0], [0, 0, 1, 0], [], []>} : vector<8x4xf32>, vector<16x4xf32>, vector<8x16xf32> -> vector<8x16xf32>
    "tpu.trace_stop"() : () -> ()
    %cst_19 = arith.constant dense<0xFF800000> : vector<8xf32>
    %22 = vector.multi_reduction <maximumf>, %21, %cst_19 [1] : vector<8x16xf32> to vector<8xf32>
    %23 = vector.shape_cast %22 : vector<8xf32> to vector<8x1xf32>
    %24 = vector.broadcast %23 : vector<8x1xf32> to vector<8x16xf32>
    %25 = arith.subf %21, %24 : vector<8x16xf32>
    %26 = math.exp %25 : vector<8x16xf32>
    %cst_20 = arith.constant dense<0.000000e+00> : vector<8xf32>
    %27 = vector.multi_reduction <add>, %26, %cst_20 [1] : vector<8x16xf32> to vector<8xf32>
    %28 = vector.shape_cast %27 : vector<8xf32> to vector<8x1xf32>
    %29 = tpu.reciprocal %28 {approx = true} : vector<8x1xf32> -> vector<8x1xf32>
    %30 = vector.broadcast %29 : vector<8x1xf32> to vector<8x16xf32>
    %31 = arith.mulf %26, %30 : vector<8x16xf32>
    "tpu.trace_start"() <{level = 10 : i32, message = "qk,kd->qd"}> : () -> ()
    %cst_21 = arith.constant dense<0.000000e+00> : vector<8x4xf32>
    %32 = tpu.matmul %31, %20, %cst_21 {dimension_numbers = #tpu.dot_dimension_numbers<[1], [0], [0], [1], [0, 0, 1, 1], [], []>} : vector<8x16xf32>, vector<16x4xf32>, vector<8x4xf32> -> vector<8x4xf32>
    "tpu.trace_stop"() : () -> ()
    %c0_22 = arith.constant 0 : index
    %c0_23 = arith.constant 0 : index
    %33 = vector.load %arg7[%c0_22, %c0_23] : memref<32x32xf32, #tpu.memory_space<vmem>>, vector<4x32xf32>
    %cst_24 = arith.constant dense<0.000000e+00> : vector<8x32xf32>
    %34 = tpu.matmul %32, %33, %cst_24 {dimension_numbers = #tpu.dot_dimension_numbers<[1], [0], [0], [1], [0, 0, 1, 1], [], []>} : vector<8x4xf32>, vector<4x32xf32>, vector<8x32xf32> -> vector<8x32xf32>
    %35 = arith.addf %17, %34 : vector<8x32xf32>
    %36 = vector.extract_strided_slice %6 {offsets = [0, 4], sizes = [8, 4], strides = [1, 1]} : vector<8x32xf32> to vector<8x4xf32>
    %37 = vector.extract_strided_slice %11 {offsets = [0, 4], sizes = [16, 4], strides = [1, 1]} : vector<16x32xf32> to vector<16x4xf32>
    %38 = vector.extract_strided_slice %16 {offsets = [0, 4], sizes = [16, 4], strides = [1, 1]} : vector<16x32xf32> to vector<16x4xf32>
    "tpu.trace_start"() <{level = 10 : i32, message = "qd,kd->qk"}> : () -> ()
    %cst_25 = arith.constant dense<0.000000e+00> : vector<8x16xf32>
    %39 = tpu.matmul %36, %37, %cst_25 {dimension_numbers = #tpu.dot_dimension_numbers<[1], [1], [0], [0], [0, 0, 1, 0], [], []>} : vector<8x4xf32>, vector<16x4xf32>, vector<8x16xf32> -> vector<8x16xf32>
    "tpu.trace_stop"() : () -> ()
    %cst_26 = arith.constant dense<0xFF800000> : vector<8xf32>
    %40 = vector.multi_reduction <maximumf>, %39, %cst_26 [1] : vector<8x16xf32> to vector<8xf32>
    %41 = vector.shape_cast %40 : vector<8xf32> to vector<8x1xf32>
    %42 = vector.broadcast %41 : vector<8x1xf32> to vector<8x16xf32>
    %43 = arith.subf %39, %42 : vector<8x16xf32>
    %44 = math.exp %43 : vector<8x16xf32>
    %cst_27 = arith.constant dense<0.000000e+00> : vector<8xf32>
    %45 = vector.multi_reduction <add>, %44, %cst_27 [1] : vector<8x16xf32> to vector<8xf32>
    %46 = vector.shape_cast %45 : vector<8xf32> to vector<8x1xf32>
    %47 = tpu.reciprocal %46 {approx = true} : vector<8x1xf32> -> vector<8x1xf32>
    %48 = vector.broadcast %47 : vector<8x1xf32> to vector<8x16xf32>
    %49 = arith.mulf %44, %48 : vector<8x16xf32>
    "tpu.trace_start"() <{level = 10 : i32, message = "qk,kd->qd"}> : () -> ()
    %cst_28 = arith.constant dense<0.000000e+00> : vector<8x4xf32>
    %50 = tpu.matmul %49, %38, %cst_28 {dimension_numbers = #tpu.dot_dimension_numbers<[1], [0], [0], [1], [0, 0, 1, 1], [], []>} : vector<8x16xf32>, vector<16x4xf32>, vector<8x4xf32> -> vector<8x4xf32>
    "tpu.trace_stop"() : () -> ()
    %c4 = arith.constant 4 : index
    %c0_29 = arith.constant 0 : index
    %51 = vector.load %arg7[%c4, %c0_29] : memref<32x32xf32, #tpu.memory_space<vmem>>, vector<4x32xf32>
    %cst_30 = arith.constant dense<0.000000e+00> : vector<8x32xf32>
    %52 = tpu.matmul %50, %51, %cst_30 {dimension_numbers = #tpu.dot_dimension_numbers<[1], [0], [0], [1], [0, 0, 1, 1], [], []>} : vector<8x4xf32>, vector<4x32xf32>, vector<8x32xf32> -> vector<8x32xf32>
    %53 = arith.addf %35, %52 : vector<8x32xf32>
    %54 = vector.extract_strided_slice %6 {offsets = [0, 8], sizes = [8, 4], strides = [1, 1]} : vector<8x32xf32> to vector<8x4xf32>
    %55 = vector.extract_strided_slice %11 {offsets = [0, 8], sizes = [16, 4], strides = [1, 1]} : vector<16x32xf32> to vector<16x4xf32>
    %56 = vector.extract_strided_slice %16 {offsets = [0, 8], sizes = [16, 4], strides = [1, 1]} : vector<16x32xf32> to vector<16x4xf32>
    "tpu.trace_start"() <{level = 10 : i32, message = "qd,kd->qk"}> : () -> ()
    %cst_31 = arith.constant dense<0.000000e+00> : vector<8x16xf32>
    %57 = tpu.matmul %54, %55, %cst_31 {dimension_numbers = #tpu.dot_dimension_numbers<[1], [1], [0], [0], [0, 0, 1, 0], [], []>} : vector<8x4xf32>, vector<16x4xf32>, vector<8x16xf32> -> vector<8x16xf32>
    "tpu.trace_stop"() : () -> ()
    %cst_32 = arith.constant dense<0xFF800000> : vector<8xf32>
    %58 = vector.multi_reduction <maximumf>, %57, %cst_32 [1] : vector<8x16xf32> to vector<8xf32>
    %59 = vector.shape_cast %58 : vector<8xf32> to vector<8x1xf32>
    %60 = vector.broadcast %59 : vector<8x1xf32> to vector<8x16xf32>
    %61 = arith.subf %57, %60 : vector<8x16xf32>
    %62 = math.exp %61 : vector<8x16xf32>
    %cst_33 = arith.constant dense<0.000000e+00> : vector<8xf32>
    %63 = vector.multi_reduction <add>, %62, %cst_33 [1] : vector<8x16xf32> to vector<8xf32>
    %64 = vector.shape_cast %63 : vector<8xf32> to vector<8x1xf32>
    %65 = tpu.reciprocal %64 {approx = true} : vector<8x1xf32> -> vector<8x1xf32>
    %66 = vector.broadcast %65 : vector<8x1xf32> to vector<8x16xf32>
    %67 = arith.mulf %62, %66 : vector<8x16xf32>
    "tpu.trace_start"() <{level = 10 : i32, message = "qk,kd->qd"}> : () -> ()
    %cst_34 = arith.constant dense<0.000000e+00> : vector<8x4xf32>
    %68 = tpu.matmul %67, %56, %cst_34 {dimension_numbers = #tpu.dot_dimension_numbers<[1], [0], [0], [1], [0, 0, 1, 1], [], []>} : vector<8x16xf32>, vector<16x4xf32>, vector<8x4xf32> -> vector<8x4xf32>
    "tpu.trace_stop"() : () -> ()
    %c8 = arith.constant 8 : index
    %c0_35 = arith.constant 0 : index
    %69 = vector.load %arg7[%c8, %c0_35] : memref<32x32xf32, #tpu.memory_space<vmem>>, vector<4x32xf32>
    %cst_36 = arith.constant dense<0.000000e+00> : vector<8x32xf32>
    %70 = tpu.matmul %68, %69, %cst_36 {dimension_numbers = #tpu.dot_dimension_numbers<[1], [0], [0], [1], [0, 0, 1, 1], [], []>} : vector<8x4xf32>, vector<4x32xf32>, vector<8x32xf32> -> vector<8x32xf32>
    %71 = arith.addf %53, %70 : vector<8x32xf32>
    %72 = vector.extract_strided_slice %6 {offsets = [0, 12], sizes = [8, 4], strides = [1, 1]} : vector<8x32xf32> to vector<8x4xf32>
    %73 = vector.extract_strided_slice %11 {offsets = [0, 12], sizes = [16, 4], strides = [1, 1]} : vector<16x32xf32> to vector<16x4xf32>
    %74 = vector.extract_strided_slice %16 {offsets = [0, 12], sizes = [16, 4], strides = [1, 1]} : vector<16x32xf32> to vector<16x4xf32>
    "tpu.trace_start"() <{level = 10 : i32, message = "qd,kd->qk"}> : () -> ()
    %cst_37 = arith.constant dense<0.000000e+00> : vector<8x16xf32>
    %75 = tpu.matmul %72, %73, %cst_37 {dimension_numbers = #tpu.dot_dimension_numbers<[1], [1], [0], [0], [0, 0, 1, 0], [], []>} : vector<8x4xf32>, vector<16x4xf32>, vector<8x16xf32> -> vector<8x16xf32>
    "tpu.trace_stop"() : () -> ()
    %cst_38 = arith.constant dense<0xFF800000> : vector<8xf32>
    %76 = vector.multi_reduction <maximumf>, %75, %cst_38 [1] : vector<8x16xf32> to vector<8xf32>
    %77 = vector.shape_cast %76 : vector<8xf32> to vector<8x1xf32>
    %78 = vector.broadcast %77 : vector<8x1xf32> to vector<8x16xf32>
    %79 = arith.subf %75, %78 : vector<8x16xf32>
    %80 = math.exp %79 : vector<8x16xf32>
    %cst_39 = arith.constant dense<0.000000e+00> : vector<8xf32>
    %81 = vector.multi_reduction <add>, %80, %cst_39 [1] : vector<8x16xf32> to vector<8xf32>
    %82 = vector.shape_cast %81 : vector<8xf32> to vector<8x1xf32>
    %83 = tpu.reciprocal %82 {approx = true} : vector<8x1xf32> -> vector<8x1xf32>
    %84 = vector.broadcast %83 : vector<8x1xf32> to vector<8x16xf32>
    %85 = arith.mulf %80, %84 : vector<8x16xf32>
    "tpu.trace_start"() <{level = 10 : i32, message = "qk,kd->qd"}> : () -> ()
    %cst_40 = arith.constant dense<0.000000e+00> : vector<8x4xf32>
    %86 = tpu.matmul %85, %74, %cst_40 {dimension_numbers = #tpu.dot_dimension_numbers<[1], [0], [0], [1], [0, 0, 1, 1], [], []>} : vector<8x16xf32>, vector<16x4xf32>, vector<8x4xf32> -> vector<8x4xf32>
    "tpu.trace_stop"() : () -> ()
    %c12 = arith.constant 12 : index
    %c0_41 = arith.constant 0 : index
    %87 = vector.load %arg7[%c12, %c0_41] : memref<32x32xf32, #tpu.memory_space<vmem>>, vector<4x32xf32>
    %cst_42 = arith.constant dense<0.000000e+00> : vector<8x32xf32>
    %88 = tpu.matmul %86, %87, %cst_42 {dimension_numbers = #tpu.dot_dimension_numbers<[1], [0], [0], [1], [0, 0, 1, 1], [], []>} : vector<8x4xf32>, vector<4x32xf32>, vector<8x32xf32> -> vector<8x32xf32>
    %89 = arith.addf %71, %88 : vector<8x32xf32>
    %90 = vector.extract_strided_slice %6 {offsets = [0, 16], sizes = [8, 4], strides = [1, 1]} : vector<8x32xf32> to vector<8x4xf32>
    %91 = vector.extract_strided_slice %11 {offsets = [0, 16], sizes = [16, 4], strides = [1, 1]} : vector<16x32xf32> to vector<16x4xf32>
    %92 = vector.extract_strided_slice %16 {offsets = [0, 16], sizes = [16, 4], strides = [1, 1]} : vector<16x32xf32> to vector<16x4xf32>
    "tpu.trace_start"() <{level = 10 : i32, message = "qd,kd->qk"}> : () -> ()
    %cst_43 = arith.constant dense<0.000000e+00> : vector<8x16xf32>
    %93 = tpu.matmul %90, %91, %cst_43 {dimension_numbers = #tpu.dot_dimension_numbers<[1], [1], [0], [0], [0, 0, 1, 0], [], []>} : vector<8x4xf32>, vector<16x4xf32>, vector<8x16xf32> -> vector<8x16xf32>
    "tpu.trace_stop"() : () -> ()
    %cst_44 = arith.constant dense<0xFF800000> : vector<8xf32>
    %94 = vector.multi_reduction <maximumf>, %93, %cst_44 [1] : vector<8x16xf32> to vector<8xf32>
    %95 = vector.shape_cast %94 : vector<8xf32> to vector<8x1xf32>
    %96 = vector.broadcast %95 : vector<8x1xf32> to vector<8x16xf32>
    %97 = arith.subf %93, %96 : vector<8x16xf32>
    %98 = math.exp %97 : vector<8x16xf32>
    %cst_45 = arith.constant dense<0.000000e+00> : vector<8xf32>
    %99 = vector.multi_reduction <add>, %98, %cst_45 [1] : vector<8x16xf32> to vector<8xf32>
    %100 = vector.shape_cast %99 : vector<8xf32> to vector<8x1xf32>
    %101 = tpu.reciprocal %100 {approx = true} : vector<8x1xf32> -> vector<8x1xf32>
    %102 = vector.broadcast %101 : vector<8x1xf32> to vector<8x16xf32>
    %103 = arith.mulf %98, %102 : vector<8x16xf32>
    "tpu.trace_start"() <{level = 10 : i32, message = "qk,kd->qd"}> : () -> ()
    %cst_46 = arith.constant dense<0.000000e+00> : vector<8x4xf32>
    %104 = tpu.matmul %103, %92, %cst_46 {dimension_numbers = #tpu.dot_dimension_numbers<[1], [0], [0], [1], [0, 0, 1, 1], [], []>} : vector<8x16xf32>, vector<16x4xf32>, vector<8x4xf32> -> vector<8x4xf32>
    "tpu.trace_stop"() : () -> ()
    %c16 = arith.constant 16 : index
    %c0_47 = arith.constant 0 : index
    %105 = vector.load %arg7[%c16, %c0_47] : memref<32x32xf32, #tpu.memory_space<vmem>>, vector<4x32xf32>
    %cst_48 = arith.constant dense<0.000000e+00> : vector<8x32xf32>
    %106 = tpu.matmul %104, %105, %cst_48 {dimension_numbers = #tpu.dot_dimension_numbers<[1], [0], [0], [1], [0, 0, 1, 1], [], []>} : vector<8x4xf32>, vector<4x32xf32>, vector<8x32xf32> -> vector<8x32xf32>
    %107 = arith.addf %89, %106 : vector<8x32xf32>
    %108 = vector.extract_strided_slice %6 {offsets = [0, 20], sizes = [8, 4], strides = [1, 1]} : vector<8x32xf32> to vector<8x4xf32>
    %109 = vector.extract_strided_slice %11 {offsets = [0, 20], sizes = [16, 4], strides = [1, 1]} : vector<16x32xf32> to vector<16x4xf32>
    %110 = vector.extract_strided_slice %16 {offsets = [0, 20], sizes = [16, 4], strides = [1, 1]} : vector<16x32xf32> to vector<16x4xf32>
    "tpu.trace_start"() <{level = 10 : i32, message = "qd,kd->qk"}> : () -> ()
    %cst_49 = arith.constant dense<0.000000e+00> : vector<8x16xf32>
    %111 = tpu.matmul %108, %109, %cst_49 {dimension_numbers = #tpu.dot_dimension_numbers<[1], [1], [0], [0], [0, 0, 1, 0], [], []>} : vector<8x4xf32>, vector<16x4xf32>, vector<8x16xf32> -> vector<8x16xf32>
    "tpu.trace_stop"() : () -> ()
    %cst_50 = arith.constant dense<0xFF800000> : vector<8xf32>
    %112 = vector.multi_reduction <maximumf>, %111, %cst_50 [1] : vector<8x16xf32> to vector<8xf32>
    %113 = vector.shape_cast %112 : vector<8xf32> to vector<8x1xf32>
    %114 = vector.broadcast %113 : vector<8x1xf32> to vector<8x16xf32>
    %115 = arith.subf %111, %114 : vector<8x16xf32>
    %116 = math.exp %115 : vector<8x16xf32>
    %cst_51 = arith.constant dense<0.000000e+00> : vector<8xf32>
    %117 = vector.multi_reduction <add>, %116, %cst_51 [1] : vector<8x16xf32> to vector<8xf32>
    %118 = vector.shape_cast %117 : vector<8xf32> to vector<8x1xf32>
    %119 = tpu.reciprocal %118 {approx = true} : vector<8x1xf32> -> vector<8x1xf32>
    %120 = vector.broadcast %119 : vector<8x1xf32> to vector<8x16xf32>
    %121 = arith.mulf %116, %120 : vector<8x16xf32>
    "tpu.trace_start"() <{level = 10 : i32, message = "qk,kd->qd"}> : () -> ()
    %cst_52 = arith.constant dense<0.000000e+00> : vector<8x4xf32>
    %122 = tpu.matmul %121, %110, %cst_52 {dimension_numbers = #tpu.dot_dimension_numbers<[1], [0], [0], [1], [0, 0, 1, 1], [], []>} : vector<8x16xf32>, vector<16x4xf32>, vector<8x4xf32> -> vector<8x4xf32>
    "tpu.trace_stop"() : () -> ()
    %c20 = arith.constant 20 : index
    %c0_53 = arith.constant 0 : index
    %123 = vector.load %arg7[%c20, %c0_53] : memref<32x32xf32, #tpu.memory_space<vmem>>, vector<4x32xf32>
    %cst_54 = arith.constant dense<0.000000e+00> : vector<8x32xf32>
    %124 = tpu.matmul %122, %123, %cst_54 {dimension_numbers = #tpu.dot_dimension_numbers<[1], [0], [0], [1], [0, 0, 1, 1], [], []>} : vector<8x4xf32>, vector<4x32xf32>, vector<8x32xf32> -> vector<8x32xf32>
    %125 = arith.addf %107, %124 : vector<8x32xf32>
    %126 = vector.extract_strided_slice %6 {offsets = [0, 24], sizes = [8, 4], strides = [1, 1]} : vector<8x32xf32> to vector<8x4xf32>
    %127 = vector.extract_strided_slice %11 {offsets = [0, 24], sizes = [16, 4], strides = [1, 1]} : vector<16x32xf32> to vector<16x4xf32>
    %128 = vector.extract_strided_slice %16 {offsets = [0, 24], sizes = [16, 4], strides = [1, 1]} : vector<16x32xf32> to vector<16x4xf32>
    "tpu.trace_start"() <{level = 10 : i32, message = "qd,kd->qk"}> : () -> ()
    %cst_55 = arith.constant dense<0.000000e+00> : vector<8x16xf32>
    %129 = tpu.matmul %126, %127, %cst_55 {dimension_numbers = #tpu.dot_dimension_numbers<[1], [1], [0], [0], [0, 0, 1, 0], [], []>} : vector<8x4xf32>, vector<16x4xf32>, vector<8x16xf32> -> vector<8x16xf32>
    "tpu.trace_stop"() : () -> ()
    %cst_56 = arith.constant dense<0xFF800000> : vector<8xf32>
    %130 = vector.multi_reduction <maximumf>, %129, %cst_56 [1] : vector<8x16xf32> to vector<8xf32>
    %131 = vector.shape_cast %130 : vector<8xf32> to vector<8x1xf32>
    %132 = vector.broadcast %131 : vector<8x1xf32> to vector<8x16xf32>
    %133 = arith.subf %129, %132 : vector<8x16xf32>
    %134 = math.exp %133 : vector<8x16xf32>
    %cst_57 = arith.constant dense<0.000000e+00> : vector<8xf32>
    %135 = vector.multi_reduction <add>, %134, %cst_57 [1] : vector<8x16xf32> to vector<8xf32>
    %136 = vector.shape_cast %135 : vector<8xf32> to vector<8x1xf32>
    %137 = tpu.reciprocal %136 {approx = true} : vector<8x1xf32> -> vector<8x1xf32>
    %138 = vector.broadcast %137 : vector<8x1xf32> to vector<8x16xf32>
    %139 = arith.mulf %134, %138 : vector<8x16xf32>
    "tpu.trace_start"() <{level = 10 : i32, message = "qk,kd->qd"}> : () -> ()
    %cst_58 = arith.constant dense<0.000000e+00> : vector<8x4xf32>
    %140 = tpu.matmul %139, %128, %cst_58 {dimension_numbers = #tpu.dot_dimension_numbers<[1], [0], [0], [1], [0, 0, 1, 1], [], []>} : vector<8x16xf32>, vector<16x4xf32>, vector<8x4xf32> -> vector<8x4xf32>
    "tpu.trace_stop"() : () -> ()
    %c24 = arith.constant 24 : index
    %c0_59 = arith.constant 0 : index
    %141 = vector.load %arg7[%c24, %c0_59] : memref<32x32xf32, #tpu.memory_space<vmem>>, vector<4x32xf32>
    %cst_60 = arith.constant dense<0.000000e+00> : vector<8x32xf32>
    %142 = tpu.matmul %140, %141, %cst_60 {dimension_numbers = #tpu.dot_dimension_numbers<[1], [0], [0], [1], [0, 0, 1, 1], [], []>} : vector<8x4xf32>, vector<4x32xf32>, vector<8x32xf32> -> vector<8x32xf32>
    %143 = arith.addf %125, %142 : vector<8x32xf32>
    %144 = vector.extract_strided_slice %6 {offsets = [0, 28], sizes = [8, 4], strides = [1, 1]} : vector<8x32xf32> to vector<8x4xf32>
    %145 = vector.extract_strided_slice %11 {offsets = [0, 28], sizes = [16, 4], strides = [1, 1]} : vector<16x32xf32> to vector<16x4xf32>
    %146 = vector.extract_strided_slice %16 {offsets = [0, 28], sizes = [16, 4], strides = [1, 1]} : vector<16x32xf32> to vector<16x4xf32>
    "tpu.trace_start"() <{level = 10 : i32, message = "qd,kd->qk"}> : () -> ()
    %cst_61 = arith.constant dense<0.000000e+00> : vector<8x16xf32>
    %147 = tpu.matmul %144, %145, %cst_61 {dimension_numbers = #tpu.dot_dimension_numbers<[1], [1], [0], [0], [0, 0, 1, 0], [], []>} : vector<8x4xf32>, vector<16x4xf32>, vector<8x16xf32> -> vector<8x16xf32>
    "tpu.trace_stop"() : () -> ()
    %cst_62 = arith.constant dense<0xFF800000> : vector<8xf32>
    %148 = vector.multi_reduction <maximumf>, %147, %cst_62 [1] : vector<8x16xf32> to vector<8xf32>
    %149 = vector.shape_cast %148 : vector<8xf32> to vector<8x1xf32>
    %150 = vector.broadcast %149 : vector<8x1xf32> to vector<8x16xf32>
    %151 = arith.subf %147, %150 : vector<8x16xf32>
    %152 = math.exp %151 : vector<8x16xf32>
    %cst_63 = arith.constant dense<0.000000e+00> : vector<8xf32>
    %153 = vector.multi_reduction <add>, %152, %cst_63 [1] : vector<8x16xf32> to vector<8xf32>
    %154 = vector.shape_cast %153 : vector<8xf32> to vector<8x1xf32>
    %155 = tpu.reciprocal %154 {approx = true} : vector<8x1xf32> -> vector<8x1xf32>
    %156 = vector.broadcast %155 : vector<8x1xf32> to vector<8x16xf32>
    %157 = arith.mulf %152, %156 : vector<8x16xf32>
    "tpu.trace_start"() <{level = 10 : i32, message = "qk,kd->qd"}> : () -> ()
    %cst_64 = arith.constant dense<0.000000e+00> : vector<8x4xf32>
    %158 = tpu.matmul %157, %146, %cst_64 {dimension_numbers = #tpu.dot_dimension_numbers<[1], [0], [0], [1], [0, 0, 1, 1], [], []>} : vector<8x16xf32>, vector<16x4xf32>, vector<8x4xf32> -> vector<8x4xf32>
    "tpu.trace_stop"() : () -> ()
    %c28 = arith.constant 28 : index
    %c0_65 = arith.constant 0 : index
    %159 = vector.load %arg7[%c28, %c0_65] : memref<32x32xf32, #tpu.memory_space<vmem>>, vector<4x32xf32>
    %cst_66 = arith.constant dense<0.000000e+00> : vector<8x32xf32>
    %160 = tpu.matmul %158, %159, %cst_66 {dimension_numbers = #tpu.dot_dimension_numbers<[1], [0], [0], [1], [0, 0, 1, 1], [], []>} : vector<8x4xf32>, vector<4x32xf32>, vector<8x32xf32> -> vector<8x32xf32>
    %161 = arith.addf %143, %160 : vector<8x32xf32>
    %c0_67 = arith.constant 0 : index
    %c0_68 = arith.constant 0 : index
    %162 = vector.load %arg11[%c0_67, %c0_68] : memref<1x32xf32, #tpu.memory_space<vmem>>, vector<1x32xf32>
    %163 = vector.broadcast %162 : vector<1x32xf32> to vector<8x32xf32>
    %164 = arith.addf %161, %163 : vector<8x32xf32>
    %165 = arith.addf %164, %0 : vector<8x32xf32>
    %c0_69 = arith.constant 0 : index
    %c0_70 = arith.constant 0 : index
    %166 = vector.load %arg12[%c0_69, %c0_70] : memref<8x32xf32, #tpu.memory_space<vmem>>, vector<8x32xf32>
    tpu.vector_store %arg12[%c0_69, %c0_70], %165 {strides = array<i32>} : memref<8x32xf32, #tpu.memory_space<vmem>>, vector<8x32xf32>,
    return
  }
  func.func @transform_0(%arg0: i32, %arg1: i32) -> (i32, i32) {
    %c1_i32 = arith.constant 1 : i32
    %0 = arith.muli %arg0, %c1_i32 : i32
    %1 = arith.addi %0, %arg1 : i32
    %c0_i32 = arith.constant 0 : i32
    %c0_i32_0 = arith.constant 0 : i32
    return %1, %c0_i32 : i32, i32
  }
  func.func @transform_1(%arg0: i32, %arg1: i32) -> (i32, i32) {
    %c0_i32 = arith.constant 0 : i32
    %c0_i32_0 = arith.constant 0 : i32
    return %arg0, %c0_i32 : i32, i32
  }
  func.func @transform_2(%arg0: i32, %arg1: i32) -> (i32, i32) {
    %c0_i32 = arith.constant 0 : i32
    %c0_i32_0 = arith.constant 0 : i32
    %c0_i32_1 = arith.constant 0 : i32
    return %c0_i32, %c0_i32_0 : i32, i32
  }
  func.func @transform_3(%arg0: i32, %arg1: i32) -> (i32, i32) {
    %c0_i32 = arith.constant 0 : i32
    %c0_i32_0 = arith.constant 0 : i32
    %c0_i32_1 = arith.constant 0 : i32
    return %c0_i32, %c0_i32_0 : i32, i32
  }
  func.func @transform_4(%arg0: i32, %arg1: i32) -> (i32, i32) {
    %c0_i32 = arith.constant 0 : i32
    %c0_i32_0 = arith.constant 0 : i32
    %c0_i32_1 = arith.constant 0 : i32
    return %c0_i32, %c0_i32_0 : i32, i32
  }
  func.func @transform_5(%arg0: i32, %arg1: i32) -> (i32, i32) {
    %c0_i32 = arith.constant 0 : i32
    %c0_i32_0 = arith.constant 0 : i32
    %c0_i32_1 = arith.constant 0 : i32
    return %c0_i32, %c0_i32_0 : i32, i32
  }
  func.func @transform_6(%arg0: i32, %arg1: i32) -> (i32, i32) {
    %c0_i32 = arith.constant 0 : i32
    %c0_i32_0 = arith.constant 0 : i32
    %c0_i32_1 = arith.constant 0 : i32
    return %c0_i32, %c0_i32_0 : i32, i32
  }
  func.func @transform_7(%arg0: i32, %arg1: i32) -> (i32, i32) {
    %c0_i32 = arith.constant 0 : i32
    %c0_i32_0 = arith.constant 0 : i32
    %c0_i32_1 = arith.constant 0 : i32
    return %c0_i32, %c0_i32_0 : i32, i32
  }
  func.func @transform_8(%arg0: i32, %arg1: i32) -> (i32, i32) {
    %c0_i32 = arith.constant 0 : i32
    %c0_i32_0 = arith.constant 0 : i32
    %c0_i32_1 = arith.constant 0 : i32
    return %c0_i32, %c0_i32_0 : i32, i32
  }
  func.func @transform_9(%arg0: i32, %arg1: i32) -> (i32, i32) {
    %c0_i32 = arith.constant 0 : i32
    %c0_i32_0 = arith.constant 0 : i32
    %c0_i32_1 = arith.constant 0 : i32
    return %c0_i32, %c0_i32_0 : i32, i32
  }
  func.func @transform_10(%arg0: i32, %arg1: i32) -> (i32, i32) {
    %c1_i32 = arith.constant 1 : i32
    %0 = arith.muli %arg0, %c1_i32 : i32
    %1 = arith.addi %0, %arg1 : i32
    %c0_i32 = arith.constant 0 : i32
    %c0_i32_0 = arith.constant 0 : i32
    return %1, %c0_i32 : i32, i32
  }
}

module attributes {stable_mosaic.version = 11 : i64} {
  func.func @kernel(%arg0: i32, %arg1: i32, %arg2: memref<8x32xf32, #tpu.memory_space<vmem>>, %arg3: memref<16x32xf32, #tpu.memory_space<vmem>>, %arg4: memref<32x32xf32, #tpu.memory_space<vmem>>, %arg5: memref<32x32xf32, #tpu.memory_space<vmem>>, %arg6: memref<32x32xf32, #tpu.memory_space<vmem>>, %arg7: memref<32x32xf32, #tpu.memory_space<vmem>>, %arg8: memref<1x32xf32, #tpu.memory_space<vmem>>, %arg9: memref<1x32xf32, #tpu.memory_space<vmem>>, %arg10: memref<1x32xf32, #tpu.memory_space<vmem>>, %arg11: memref<1x32xf32, #tpu.memory_space<vmem>>, %arg12: memref<8x32xf32, #tpu.memory_space<vmem>>) attributes {dimension_semantics = [#tpu.dimension_semantics<parallel>, #tpu.dimension_semantics<parallel>], iteration_bounds = array<i64: 2, 1>, scalar_prefetch = 0 : i64, scratch_operands = 0 : i64, tpu.core_type = #tpu.core_type<tc>, window_params = [{transform_indices = @transform_0, window_bounds = array<i64: 8, 32>}, {transform_indices = @transform_1, window_bounds = array<i64: 16, 32>}, {pipeline_mode = #tpu.pipeline_mode<synchronous>, transform_indices = @transform_2, window_bounds = array<i64: 32, 32>}, {pipeline_mode = #tpu.pipeline_mode<synchronous>, transform_indices = @transform_3, window_bounds = array<i64: 32, 32>}, {pipeline_mode = #tpu.pipeline_mode<synchronous>, transform_indices = @transform_4, window_bounds = array<i64: 32, 32>}, {pipeline_mode = #tpu.pipeline_mode<synchronous>, transform_indices = @transform_5, window_bounds = array<i64: 32, 32>}, {pipeline_mode = #tpu.pipeline_mode<synchronous>, transform_indices = @transform_6, window_bounds = array<i64: 1, 32>}, {pipeline_mode = #tpu.pipeline_mode<synchronous>, transform_indices = @transform_7, window_bounds = array<i64: 1, 32>}, {pipeline_mode = #tpu.pipeline_mode<synchronous>, transform_indices = @transform_8, window_bounds = array<i64: 1, 32>}, {pipeline_mode = #tpu.pipeline_mode<synchronous>, transform_indices = @transform_9, window_bounds = array<i64: 1, 32>}, {transform_indices = @transform_10, window_bounds = array<i64: 8, 32>}]} {
    %c0 = arith.constant 0 : index
    %c0_0 = arith.constant 0 : index
    %0 = vector.load %arg2[%c0, %c0_0] : memref<8x32xf32, #tpu.memory_space<vmem>>, vector<8x32xf32>
    %c0_1 = arith.constant 0 : index
    %c0_2 = arith.constant 0 : index
    %1 = vector.load %arg3[%c0_1, %c0_2] : memref<16x32xf32, #tpu.memory_space<vmem>>, vector<16x32xf32>
    %c0_3 = arith.constant 0 : index
    %c0_4 = arith.constant 0 : index
    %2 = vector.load %arg4[%c0_3, %c0_4] : memref<32x32xf32, #tpu.memory_space<vmem>>, vector<32x32xf32>
    %cst = arith.constant dense<0.000000e+00> : vector<8x32xf32>
    %3 = tpu.matmul %0, %2, %cst {dimension_numbers = #tpu.dot_dimension_numbers<[1], [0], [0], [1], [0, 0, 1, 1], [], []>} : vector<8x32xf32>, vector<32x32xf32>, vector<8x32xf32> -> vector<8x32xf32>
    %c0_5 = arith.constant 0 : index
    %c0_6 = arith.constant 0 : index
    %4 = vector.load %arg8[%c0_5, %c0_6] : memref<1x32xf32, #tpu.memory_space<vmem>>, vector<1x32xf32>
    %5 = vector.broadcast %4 : vector<1x32xf32> to vector<8x32xf32>
    %6 = arith.addf %3, %5 : vector<8x32xf32>
    %c0_7 = arith.constant 0 : index
    %c0_8 = arith.constant 0 : index
    %7 = vector.load %arg5[%c0_7, %c0_8] : memref<32x32xf32, #tpu.memory_space<vmem>>, vector<32x32xf32>
    %cst_9 = arith.constant dense<0.000000e+00> : vector<16x32xf32>
    %8 = tpu.matmul %1, %7, %cst_9 {dimension_numbers = #tpu.dot_dimension_numbers<[1], [0], [0], [1], [0, 0, 1, 1], [], []>} : vector<16x32xf32>, vector<32x32xf32>, vector<16x32xf32> -> vector<16x32xf32>
    %c0_10 = arith.constant 0 : index
    %c0_11 = arith.constant 0 : index
    %9 = vector.load %arg9[%c0_10, %c0_11] : memref<1x32xf32, #tpu.memory_space<vmem>>, vector<1x32xf32>
    %10 = vector.broadcast %9 : vector<1x32xf32> to vector<16x32xf32>
    %11 = arith.addf %8, %10 : vector<16x32xf32>
    %c0_12 = arith.constant 0 : index
    %c0_13 = arith.constant 0 : index
    %12 = vector.load %arg6[%c0_12, %c0_13] : memref<32x32xf32, #tpu.memory_space<vmem>>, vector<32x32xf32>
    %cst_14 = arith.constant dense<0.000000e+00> : vector<16x32xf32>
    %13 = tpu.matmul %1, %12, %cst_14 {dimension_numbers = #tpu.dot_dimension_numbers<[1], [0], [0], [1], [0, 0, 1, 1], [], []>} : vector<16x32xf32>, vector<32x32xf32>, vector<16x32xf32> -> vector<16x32xf32>
    %c0_15 = arith.constant 0 : index
    %c0_16 = arith.constant 0 : index
    %14 = vector.load %arg10[%c0_15, %c0_16] : memref<1x32xf32, #tpu.memory_space<vmem>>, vector<1x32xf32>
    %15 = vector.broadcast %14 : vector<1x32xf32> to vector<16x32xf32>
    %16 = arith.addf %13, %15 : vector<16x32xf32>
    %cst_17 = arith.constant 0.000000e+00 : f32
    %17 = vector.broadcast %cst_17 : f32 to vector<8x32xf32>
    %18 = vector.extract_strided_slice %6 {offsets = [0, 0], sizes = [8, 4], strides = [1, 1]} : vector<8x32xf32> to vector<8x4xf32>
    %19 = vector.extract_strided_slice %11 {offsets = [0, 0], sizes = [16, 4], strides = [1, 1]} : vector<16x32xf32> to vector<16x4xf32>
    %20 = vector.extract_strided_slice %16 {offsets = [0, 0], sizes = [16, 4], strides = [1, 1]} : vector<16x32xf32> to vector<16x4xf32>
    "tpu.trace_start"() <{level = 10 : i32, message = "qd,kd->qk"}> : () -> ()
    %cst_18 = arith.constant dense<0.000000e+00> : vector<8x16xf32>
    %21 = tpu.matmul %18, %19, %cst_18 {dimension_numbers = #tpu.dot_dimension_numbers<[1], [1], [0], [0], [0, 0, 1, 0], [], []>} : vector<8x4xf32>, vector<16x4xf32>, vector<8x16xf32> -> vector<8x16xf32>
    "tpu.trace_stop"() : () -> ()
    %cst_19 = arith.constant dense<0xFF800000> : vector<8xf32>
    %22 = vector.multi_reduction <maximumf>, %21, %cst_19 [1] : vector<8x16xf32> to vector<8xf32>
    %23 = vector.shape_cast %22 : vector<8xf32> to vector<8x1xf32>
    %24 = vector.broadcast %23 : vector<8x1xf32> to vector<8x16xf32>
    %25 = arith.subf %21, %24 : vector<8x16xf32>
    %26 = math.exp %25 : vector<8x16xf32>
    %cst_20 = arith.constant dense<0.000000e+00> : vector<8xf32>
    %27 = vector.multi_reduction <add>, %26, %cst_20 [1] : vector<8x16xf32> to vector<8xf32>
    %28 = vector.shape_cast %27 : vector<8xf32> to vector<8x1xf32>
    %29 = tpu.reciprocal %28 {approx = true} : vector<8x1xf32> -> vector<8x1xf32>
    %30 = vector.broadcast %29 : vector<8x1xf32> to vector<8x16xf32>
    %31 = arith.mulf %26, %30 : vector<8x16xf32>
    "tpu.trace_start"() <{level = 10 : i32, message = "qk,kd->qd"}> : () -> ()
    %cst_21 = arith.constant dense<0.000000e+00> : vector<8x4xf32>
    %32 = tpu.matmul %31, %20, %cst_21 {dimension_numbers = #tpu.dot_dimension_numbers<[1], [0], [0], [1], [0, 0, 1, 1], [], []>} : vector<8x16xf32>, vector<16x4xf32>, vector<8x4xf32> -> vector<8x4xf32>
    "tpu.trace_stop"() : () -> ()
    %c0_22 = arith.constant 0 : index
    %c0_23 = arith.constant 0 : index
    %33 = vector.load %arg7[%c0_22, %c0_23] : memref<32x32xf32, #tpu.memory_space<vmem>>, vector<4x32xf32>
    %cst_24 = arith.constant dense<0.000000e+00> : vector<8x32xf32>
    %34 = tpu.matmul %32, %33, %cst_24 {dimension_numbers = #tpu.dot_dimension_numbers<[1], [0], [0], [1], [0, 0, 1, 1], [], []>} : vector<8x4xf32>, vector<4x32xf32>, vector<8x32xf32> -> vector<8x32xf32>
    %35 = arith.addf %17, %34 : vector<8x32xf32>
    %36 = vector.extract_strided_slice %6 {offsets = [0, 4], sizes = [8, 4], strides = [1, 1]} : vector<8x32xf32> to vector<8x4xf32>
    %37 = vector.extract_strided_slice %11 {offsets = [0, 4], sizes = [16, 4], strides = [1, 1]} : vector<16x32xf32> to vector<16x4xf32>
    %38 = vector.extract_strided_slice %16 {offsets = [0, 4], sizes = [16, 4], strides = [1, 1]} : vector<16x32xf32> to vector<16x4xf32>
    "tpu.trace_start"() <{level = 10 : i32, message = "qd,kd->qk"}> : () -> ()
    %cst_25 = arith.constant dense<0.000000e+00> : vector<8x16xf32>
    %39 = tpu.matmul %36, %37, %cst_25 {dimension_numbers = #tpu.dot_dimension_numbers<[1], [1], [0], [0], [0, 0, 1, 0], [], []>} : vector<8x4xf32>, vector<16x4xf32>, vector<8x16xf32> -> vector<8x16xf32>
    "tpu.trace_stop"() : () -> ()
    %cst_26 = arith.constant dense<0xFF800000> : vector<8xf32>
    %40 = vector.multi_reduction <maximumf>, %39, %cst_26 [1] : vector<8x16xf32> to vector<8xf32>
    %41 = vector.shape_cast %40 : vector<8xf32> to vector<8x1xf32>
    %42 = vector.broadcast %41 : vector<8x1xf32> to vector<8x16xf32>
    %43 = arith.subf %39, %42 : vector<8x16xf32>
    %44 = math.exp %43 : vector<8x16xf32>
    %cst_27 = arith.constant dense<0.000000e+00> : vector<8xf32>
    %45 = vector.multi_reduction <add>, %44, %cst_27 [1] : vector<8x16xf32> to vector<8xf32>
    %46 = vector.shape_cast %45 : vector<8xf32> to vector<8x1xf32>
    %47 = tpu.reciprocal %46 {approx = true} : vector<8x1xf32> -> vector<8x1xf32>
    %48 = vector.broadcast %47 : vector<8x1xf32> to vector<8x16xf32>
    %49 = arith.mulf %44, %48 : vector<8x16xf32>
    "tpu.trace_start"() <{level = 10 : i32, message = "qk,kd->qd"}> : () -> ()
    %cst_28 = arith.constant dense<0.000000e+00> : vector<8x4xf32>
    %50 = tpu.matmul %49, %38, %cst_28 {dimension_numbers = #tpu.dot_dimension_numbers<[1], [0], [0], [1], [0, 0, 1, 1], [], []>} : vector<8x16xf32>, vector<16x4xf32>, vector<8x4xf32> -> vector<8x4xf32>
    "tpu.trace_stop"() : () -> ()
    %c4 = arith.constant 4 : index
    %c0_29 = arith.constant 0 : index
    %51 = vector.load %arg7[%c4, %c0_29] : memref<32x32xf32, #tpu.memory_space<vmem>>, vector<4x32xf32>
    %cst_30 = arith.constant dense<0.000000e+00> : vector<8x32xf32>
    %52 = tpu.matmul %50, %51, %cst_30 {dimension_numbers = #tpu.dot_dimension_numbers<[1], [0], [0], [1], [0, 0, 1, 1], [], []>} : vector<8x4xf32>, vector<4x32xf32>, vector<8x32xf32> -> vector<8x32xf32>
    %53 = arith.addf %35, %52 : vector<8x32xf32>
    %54 = vector.extract_strided_slice %6 {offsets = [0, 8], sizes = [8, 4], strides = [1, 1]} : vector<8x32xf32> to vector<8x4xf32>
    %55 = vector.extract_strided_slice %11 {offsets = [0, 8], sizes = [16, 4], strides = [1, 1]} : vector<16x32xf32> to vector<16x4xf32>
    %56 = vector.extract_strided_slice %16 {offsets = [0, 8], sizes = [16, 4], strides = [1, 1]} : vector<16x32xf32> to vector<16x4xf32>
    "tpu.trace_start"() <{level = 10 : i32, message = "qd,kd->qk"}> : () -> ()
    %cst_31 = arith.constant dense<0.000000e+00> : vector<8x16xf32>
    %57 = tpu.matmul %54, %55, %cst_31 {dimension_numbers = #tpu.dot_dimension_numbers<[1], [1], [0], [0], [0, 0, 1, 0], [], []>} : vector<8x4xf32>, vector<16x4xf32>, vector<8x16xf32> -> vector<8x16xf32>
    "tpu.trace_stop"() : () -> ()
    %cst_32 = arith.constant dense<0xFF800000> : vector<8xf32>
    %58 = vector.multi_reduction <maximumf>, %57, %cst_32 [1] : vector<8x16xf32> to vector<8xf32>
    %59 = vector.shape_cast %58 : vector<8xf32> to vector<8x1xf32>
    %60 = vector.broadcast %59 : vector<8x1xf32> to vector<8x16xf32>
    %61 = arith.subf %57, %60 : vector<8x16xf32>
    %62 = math.exp %61 : vector<8x16xf32>
    %cst_33 = arith.constant dense<0.000000e+00> : vector<8xf32>
    %63 = vector.multi_reduction <add>, %62, %cst_33 [1] : vector<8x16xf32> to vector<8xf32>
    %64 = vector.shape_cast %63 : vector<8xf32> to vector<8x1xf32>
    %65 = tpu.reciprocal %64 {approx = true} : vector<8x1xf32> -> vector<8x1xf32>
    %66 = vector.broadcast %65 : vector<8x1xf32> to vector<8x16xf32>
    %67 = arith.mulf %62, %66 : vector<8x16xf32>
    "tpu.trace_start"() <{level = 10 : i32, message = "qk,kd->qd"}> : () -> ()
    %cst_34 = arith.constant dense<0.000000e+00> : vector<8x4xf32>
    %68 = tpu.matmul %67, %56, %cst_34 {dimension_numbers = #tpu.dot_dimension_numbers<[1], [0], [0], [1], [0, 0, 1, 1], [], []>} : vector<8x16xf32>, vector<16x4xf32>, vector<8x4xf32> -> vector<8x4xf32>
    "tpu.trace_stop"() : () -> ()
    %c8 = arith.constant 8 : index
    %c0_35 = arith.constant 0 : index
    %69 = vector.load %arg7[%c8, %c0_35] : memref<32x32xf32, #tpu.memory_space<vmem>>, vector<4x32xf32>
    %cst_36 = arith.constant dense<0.000000e+00> : vector<8x32xf32>
    %70 = tpu.matmul %68, %69, %cst_36 {dimension_numbers = #tpu.dot_dimension_numbers<[1], [0], [0], [1], [0, 0, 1, 1], [], []>} : vector<8x4xf32>, vector<4x32xf32>, vector<8x32xf32> -> vector<8x32xf32>
    %71 = arith.addf %53, %70 : vector<8x32xf32>
    %72 = vector.extract_strided_slice %6 {offsets = [0, 12], sizes = [8, 4], strides = [1, 1]} : vector<8x32xf32> to vector<8x4xf32>
    %73 = vector.extract_strided_slice %11 {offsets = [0, 12], sizes = [16, 4], strides = [1, 1]} : vector<16x32xf32> to vector<16x4xf32>
    %74 = vector.extract_strided_slice %16 {offsets = [0, 12], sizes = [16, 4], strides = [1, 1]} : vector<16x32xf32> to vector<16x4xf32>
    "tpu.trace_start"() <{level = 10 : i32, message = "qd,kd->qk"}> : () -> ()
    %cst_37 = arith.constant dense<0.000000e+00> : vector<8x16xf32>
    %75 = tpu.matmul %72, %73, %cst_37 {dimension_numbers = #tpu.dot_dimension_numbers<[1], [1], [0], [0], [0, 0, 1, 0], [], []>} : vector<8x4xf32>, vector<16x4xf32>, vector<8x16xf32> -> vector<8x16xf32>
    "tpu.trace_stop"() : () -> ()
    %cst_38 = arith.constant dense<0xFF800000> : vector<8xf32>
    %76 = vector.multi_reduction <maximumf>, %75, %cst_38 [1] : vector<8x16xf32> to vector<8xf32>
    %77 = vector.shape_cast %76 : vector<8xf32> to vector<8x1xf32>
    %78 = vector.broadcast %77 : vector<8x1xf32> to vector<8x16xf32>
    %79 = arith.subf %75, %78 : vector<8x16xf32>
    %80 = math.exp %79 : vector<8x16xf32>
    %cst_39 = arith.constant dense<0.000000e+00> : vector<8xf32>
    %81 = vector.multi_reduction <add>, %80, %cst_39 [1] : vector<8x16xf32> to vector<8xf32>
    %82 = vector.shape_cast %81 : vector<8xf32> to vector<8x1xf32>
    %83 = tpu.reciprocal %82 {approx = true} : vector<8x1xf32> -> vector<8x1xf32>
    %84 = vector.broadcast %83 : vector<8x1xf32> to vector<8x16xf32>
    %85 = arith.mulf %80, %84 : vector<8x16xf32>
    "tpu.trace_start"() <{level = 10 : i32, message = "qk,kd->qd"}> : () -> ()
    %cst_40 = arith.constant dense<0.000000e+00> : vector<8x4xf32>
    %86 = tpu.matmul %85, %74, %cst_40 {dimension_numbers = #tpu.dot_dimension_numbers<[1], [0], [0], [1], [0, 0, 1, 1], [], []>} : vector<8x16xf32>, vector<16x4xf32>, vector<8x4xf32> -> vector<8x4xf32>
    "tpu.trace_stop"() : () -> ()
    %c12 = arith.constant 12 : index
    %c0_41 = arith.constant 0 : index
    %87 = vector.load %arg7[%c12, %c0_41] : memref<32x32xf32, #tpu.memory_space<vmem>>, vector<4x32xf32>
    %cst_42 = arith.constant dense<0.000000e+00> : vector<8x32xf32>
    %88 = tpu.matmul %86, %87, %cst_42 {dimension_numbers = #tpu.dot_dimension_numbers<[1], [0], [0], [1], [0, 0, 1, 1], [], []>} : vector<8x4xf32>, vector<4x32xf32>, vector<8x32xf32> -> vector<8x32xf32>
    %89 = arith.addf %71, %88 : vector<8x32xf32>
    %90 = vector.extract_strided_slice %6 {offsets = [0, 16], sizes = [8, 4], strides = [1, 1]} : vector<8x32xf32> to vector<8x4xf32>
    %91 = vector.extract_strided_slice %11 {offsets = [0, 16], sizes = [16, 4], strides = [1, 1]} : vector<16x32xf32> to vector<16x4xf32>
    %92 = vector.extract_strided_slice %16 {offsets = [0, 16], sizes = [16, 4], strides = [1, 1]} : vector<16x32xf32> to vector<16x4xf32>
    "tpu.trace_start"() <{level = 10 : i32, message = "qd,kd->qk"}> : () -> ()
    %cst_43 = arith.constant dense<0.000000e+00> : vector<8x16xf32>
    %93 = tpu.matmul %90, %91, %cst_43 {dimension_numbers = #tpu.dot_dimension_numbers<[1], [1], [0], [0], [0, 0, 1, 0], [], []>} : vector<8x4xf32>, vector<16x4xf32>, vector<8x16xf32> -> vector<8x16xf32>
    "tpu.trace_stop"() : () -> ()
    %cst_44 = arith.constant dense<0xFF800000> : vector<8xf32>
    %94 = vector.multi_reduction <maximumf>, %93, %cst_44 [1] : vector<8x16xf32> to vector<8xf32>
    %95 = vector.shape_cast %94 : vector<8xf32> to vector<8x1xf32>
    %96 = vector.broadcast %95 : vector<8x1xf32> to vector<8x16xf32>
    %97 = arith.subf %93, %96 : vector<8x16xf32>
    %98 = math.exp %97 : vector<8x16xf32>
    %cst_45 = arith.constant dense<0.000000e+00> : vector<8xf32>
    %99 = vector.multi_reduction <add>, %98, %cst_45 [1] : vector<8x16xf32> to vector<8xf32>
    %100 = vector.shape_cast %99 : vector<8xf32> to vector<8x1xf32>
    %101 = tpu.reciprocal %100 {approx = true} : vector<8x1xf32> -> vector<8x1xf32>
    %102 = vector.broadcast %101 : vector<8x1xf32> to vector<8x16xf32>
    %103 = arith.mulf %98, %102 : vector<8x16xf32>
    "tpu.trace_start"() <{level = 10 : i32, message = "qk,kd->qd"}> : () -> ()
    %cst_46 = arith.constant dense<0.000000e+00> : vector<8x4xf32>
    %104 = tpu.matmul %103, %92, %cst_46 {dimension_numbers = #tpu.dot_dimension_numbers<[1], [0], [0], [1], [0, 0, 1, 1], [], []>} : vector<8x16xf32>, vector<16x4xf32>, vector<8x4xf32> -> vector<8x4xf32>
    "tpu.trace_stop"() : () -> ()
    %c16 = arith.constant 16 : index
    %c0_47 = arith.constant 0 : index
    %105 = vector.load %arg7[%c16, %c0_47] : memref<32x32xf32, #tpu.memory_space<vmem>>, vector<4x32xf32>
    %cst_48 = arith.constant dense<0.000000e+00> : vector<8x32xf32>
    %106 = tpu.matmul %104, %105, %cst_48 {dimension_numbers = #tpu.dot_dimension_numbers<[1], [0], [0], [1], [0, 0, 1, 1], [], []>} : vector<8x4xf32>, vector<4x32xf32>, vector<8x32xf32> -> vector<8x32xf32>
    %107 = arith.addf %89, %106 : vector<8x32xf32>
    %108 = vector.extract_strided_slice %6 {offsets = [0, 20], sizes = [8, 4], strides = [1, 1]} : vector<8x32xf32> to vector<8x4xf32>
    %109 = vector.extract_strided_slice %11 {offsets = [0, 20], sizes = [16, 4], strides = [1, 1]} : vector<16x32xf32> to vector<16x4xf32>
    %110 = vector.extract_strided_slice %16 {offsets = [0, 20], sizes = [16, 4], strides = [1, 1]} : vector<16x32xf32> to vector<16x4xf32>
    "tpu.trace_start"() <{level = 10 : i32, message = "qd,kd->qk"}> : () -> ()
    %cst_49 = arith.constant dense<0.000000e+00> : vector<8x16xf32>
    %111 = tpu.matmul %108, %109, %cst_49 {dimension_numbers = #tpu.dot_dimension_numbers<[1], [1], [0], [0], [0, 0, 1, 0], [], []>} : vector<8x4xf32>, vector<16x4xf32>, vector<8x16xf32> -> vector<8x16xf32>
    "tpu.trace_stop"() : () -> ()
    %cst_50 = arith.constant dense<0xFF800000> : vector<8xf32>
    %112 = vector.multi_reduction <maximumf>, %111, %cst_50 [1] : vector<8x16xf32> to vector<8xf32>
    %113 = vector.shape_cast %112 : vector<8xf32> to vector<8x1xf32>
    %114 = vector.broadcast %113 : vector<8x1xf32> to vector<8x16xf32>
    %115 = arith.subf %111, %114 : vector<8x16xf32>
    %116 = math.exp %115 : vector<8x16xf32>
    %cst_51 = arith.constant dense<0.000000e+00> : vector<8xf32>
    %117 = vector.multi_reduction <add>, %116, %cst_51 [1] : vector<8x16xf32> to vector<8xf32>
    %118 = vector.shape_cast %117 : vector<8xf32> to vector<8x1xf32>
    %119 = tpu.reciprocal %118 {approx = true} : vector<8x1xf32> -> vector<8x1xf32>
    %120 = vector.broadcast %119 : vector<8x1xf32> to vector<8x16xf32>
    %121 = arith.mulf %116, %120 : vector<8x16xf32>
    "tpu.trace_start"() <{level = 10 : i32, message = "qk,kd->qd"}> : () -> ()
    %cst_52 = arith.constant dense<0.000000e+00> : vector<8x4xf32>
    %122 = tpu.matmul %121, %110, %cst_52 {dimension_numbers = #tpu.dot_dimension_numbers<[1], [0], [0], [1], [0, 0, 1, 1], [], []>} : vector<8x16xf32>, vector<16x4xf32>, vector<8x4xf32> -> vector<8x4xf32>
    "tpu.trace_stop"() : () -> ()
    %c20 = arith.constant 20 : index
    %c0_53 = arith.constant 0 : index
    %123 = vector.load %arg7[%c20, %c0_53] : memref<32x32xf32, #tpu.memory_space<vmem>>, vector<4x32xf32>
    %cst_54 = arith.constant dense<0.000000e+00> : vector<8x32xf32>
    %124 = tpu.matmul %122, %123, %cst_54 {dimension_numbers = #tpu.dot_dimension_numbers<[1], [0], [0], [1], [0, 0, 1, 1], [], []>} : vector<8x4xf32>, vector<4x32xf32>, vector<8x32xf32> -> vector<8x32xf32>
    %125 = arith.addf %107, %124 : vector<8x32xf32>
    %126 = vector.extract_strided_slice %6 {offsets = [0, 24], sizes = [8, 4], strides = [1, 1]} : vector<8x32xf32> to vector<8x4xf32>
    %127 = vector.extract_strided_slice %11 {offsets = [0, 24], sizes = [16, 4], strides = [1, 1]} : vector<16x32xf32> to vector<16x4xf32>
    %128 = vector.extract_strided_slice %16 {offsets = [0, 24], sizes = [16, 4], strides = [1, 1]} : vector<16x32xf32> to vector<16x4xf32>
    "tpu.trace_start"() <{level = 10 : i32, message = "qd,kd->qk"}> : () -> ()
    %cst_55 = arith.constant dense<0.000000e+00> : vector<8x16xf32>
    %129 = tpu.matmul %126, %127, %cst_55 {dimension_numbers = #tpu.dot_dimension_numbers<[1], [1], [0], [0], [0, 0, 1, 0], [], []>} : vector<8x4xf32>, vector<16x4xf32>, vector<8x16xf32> -> vector<8x16xf32>
    "tpu.trace_stop"() : () -> ()
    %cst_56 = arith.constant dense<0xFF800000> : vector<8xf32>
    %130 = vector.multi_reduction <maximumf>, %129, %cst_56 [1] : vector<8x16xf32> to vector<8xf32>
    %131 = vector.shape_cast %130 : vector<8xf32> to vector<8x1xf32>
    %132 = vector.broadcast %131 : vector<8x1xf32> to vector<8x16xf32>
    %133 = arith.subf %129, %132 : vector<8x16xf32>
    %134 = math.exp %133 : vector<8x16xf32>
    %cst_57 = arith.constant dense<0.000000e+00> : vector<8xf32>
    %135 = vector.multi_reduction <add>, %134, %cst_57 [1] : vector<8x16xf32> to vector<8xf32>
    %136 = vector.shape_cast %135 : vector<8xf32> to vector<8x1xf32>
    %137 = tpu.reciprocal %136 {approx = true} : vector<8x1xf32> -> vector<8x1xf32>
    %138 = vector.broadcast %137 : vector<8x1xf32> to vector<8x16xf32>
    %139 = arith.mulf %134, %138 : vector<8x16xf32>
    "tpu.trace_start"() <{level = 10 : i32, message = "qk,kd->qd"}> : () -> ()
    %cst_58 = arith.constant dense<0.000000e+00> : vector<8x4xf32>
    %140 = tpu.matmul %139, %128, %cst_58 {dimension_numbers = #tpu.dot_dimension_numbers<[1], [0], [0], [1], [0, 0, 1, 1], [], []>} : vector<8x16xf32>, vector<16x4xf32>, vector<8x4xf32> -> vector<8x4xf32>
    "tpu.trace_stop"() : () -> ()
    %c24 = arith.constant 24 : index
    %c0_59 = arith.constant 0 : index
    %141 = vector.load %arg7[%c24, %c0_59] : memref<32x32xf32, #tpu.memory_space<vmem>>, vector<4x32xf32>
    %cst_60 = arith.constant dense<0.000000e+00> : vector<8x32xf32>
    %142 = tpu.matmul %140, %141, %cst_60 {dimension_numbers = #tpu.dot_dimension_numbers<[1], [0], [0], [1], [0, 0, 1, 1], [], []>} : vector<8x4xf32>, vector<4x32xf32>, vector<8x32xf32> -> vector<8x32xf32>
    %143 = arith.addf %125, %142 : vector<8x32xf32>
    %144 = vector.extract_strided_slice %6 {offsets = [0, 28], sizes = [8, 4], strides = [1, 1]} : vector<8x32xf32> to vector<8x4xf32>
    %145 = vector.extract_strided_slice %11 {offsets = [0, 28], sizes = [16, 4], strides = [1, 1]} : vector<16x32xf32> to vector<16x4xf32>
    %146 = vector.extract_strided_slice %16 {offsets = [0, 28], sizes = [16, 4], strides = [1, 1]} : vector<16x32xf32> to vector<16x4xf32>
    "tpu.trace_start"() <{level = 10 : i32, message = "qd,kd->qk"}> : () -> ()
    %cst_61 = arith.constant dense<0.000000e+00> : vector<8x16xf32>
    %147 = tpu.matmul %144, %145, %cst_61 {dimension_numbers = #tpu.dot_dimension_numbers<[1], [1], [0], [0], [0, 0, 1, 0], [], []>} : vector<8x4xf32>, vector<16x4xf32>, vector<8x16xf32> -> vector<8x16xf32>
    "tpu.trace_stop"() : () -> ()
    %cst_62 = arith.constant dense<0xFF800000> : vector<8xf32>
    %148 = vector.multi_reduction <maximumf>, %147, %cst_62 [1] : vector<8x16xf32> to vector<8xf32>
    %149 = vector.shape_cast %148 : vector<8xf32> to vector<8x1xf32>
    %150 = vector.broadcast %149 : vector<8x1xf32> to vector<8x16xf32>
    %151 = arith.subf %147, %150 : vector<8x16xf32>
    %152 = math.exp %151 : vector<8x16xf32>
    %cst_63 = arith.constant dense<0.000000e+00> : vector<8xf32>
    %153 = vector.multi_reduction <add>, %152, %cst_63 [1] : vector<8x16xf32> to vector<8xf32>
    %154 = vector.shape_cast %153 : vector<8xf32> to vector<8x1xf32>
    %155 = tpu.reciprocal %154 {approx = true} : vector<8x1xf32> -> vector<8x1xf32>
    %156 = vector.broadcast %155 : vector<8x1xf32> to vector<8x16xf32>
    %157 = arith.mulf %152, %156 : vector<8x16xf32>
    "tpu.trace_start"() <{level = 10 : i32, message = "qk,kd->qd"}> : () -> ()
    %cst_64 = arith.constant dense<0.000000e+00> : vector<8x4xf32>
    %158 = tpu.matmul %157, %146, %cst_64 {dimension_numbers = #tpu.dot_dimension_numbers<[1], [0], [0], [1], [0, 0, 1, 1], [], []>} : vector<8x16xf32>, vector<16x4xf32>, vector<8x4xf32> -> vector<8x4xf32>
    "tpu.trace_stop"() : () -> ()
    %c28 = arith.constant 28 : index
    %c0_65 = arith.constant 0 : index
    %159 = vector.load %arg7[%c28, %c0_65] : memref<32x32xf32, #tpu.memory_space<vmem>>, vector<4x32xf32>
    %cst_66 = arith.constant dense<0.000000e+00> : vector<8x32xf32>
    %160 = tpu.matmul %158, %159, %cst_66 {dimension_numbers = #tpu.dot_dimension_numbers<[1], [0], [0], [1], [0, 0, 1, 1], [], []>} : vector<8x4xf32>, vector<4x32xf32>, vector<8x32xf32> -> vector<8x32xf32>
    %161 = arith.addf %143, %160 : vector<8x32xf32>
    %c0_67 = arith.constant 0 : index
    %c0_68 = arith.constant 0 : index
    %162 = vector.load %arg11[%c0_67, %c0_68] : memref<1x32xf32, #tpu.memory_space<vmem>>, vector<1x32xf32>
    %163 = vector.broadcast %162 : vector<1x32xf32> to vector<8x32xf32>
    %164 = arith.addf %161, %163 : vector<8x32xf32>
    %165 = arith.addf %164, %0 : vector<8x32xf32>
    %c0_69 = arith.constant 0 : index
    %c0_70 = arith.constant 0 : index
    %166 = vector.load %arg12[%c0_69, %c0_70] : memref<8x32xf32, #tpu.memory_space<vmem>>, vector<8x32xf32>
    tpu.vector_store %arg12[%c0_69, %c0_70], %165 {strides = array<i32>} : memref<8x32xf32, #tpu.memory_space<vmem>>, vector<8x32xf32>,
    return
  }
  func.func @transform_0(%arg0: i32, %arg1: i32) -> (i32, i32) {
    %c1_i32 = arith.constant 1 : i32
    %0 = arith.muli %arg0, %c1_i32 : i32
    %1 = arith.addi %0, %arg1 : i32
    %c0_i32 = arith.constant 0 : i32
    %c0_i32_0 = arith.constant 0 : i32
    return %1, %c0_i32 : i32, i32
  }
  func.func @transform_1(%arg0: i32, %arg1: i32) -> (i32, i32) {
    %c0_i32 = arith.constant 0 : i32
    %c0_i32_0 = arith.constant 0 : i32
    return %arg0, %c0_i32 : i32, i32
  }
  func.func @transform_2(%arg0: i32, %arg1: i32) -> (i32, i32) {
    %c0_i32 = arith.constant 0 : i32
    %c0_i32_0 = arith.constant 0 : i32
    %c0_i32_1 = arith.constant 0 : i32
    return %c0_i32, %c0_i32_0 : i32, i32
  }
  func.func @transform_3(%arg0: i32, %arg1: i32) -> (i32, i32) {
    %c0_i32 = arith.constant 0 : i32
    %c0_i32_0 = arith.constant 0 : i32
    %c0_i32_1 = arith.constant 0 : i32
    return %c0_i32, %c0_i32_0 : i32, i32
  }
  func.func @transform_4(%arg0: i32, %arg1: i32) -> (i32, i32) {
    %c0_i32 = arith.constant 0 : i32
    %c0_i32_0 = arith.constant 0 : i32
    %c0_i32_1 = arith.constant 0 : i32
    return %c0_i32, %c0_i32_0 : i32, i32
  }
  func.func @transform_5(%arg0: i32, %arg1: i32) -> (i32, i32) {
    %c0_i32 = arith.constant 0 : i32
    %c0_i32_0 = arith.constant 0 : i32
    %c0_i32_1 = arith.constant 0 : i32
    return %c0_i32, %c0_i32_0 : i32, i32
  }
  func.func @transform_6(%arg0: i32, %arg1: i32) -> (i32, i32) {
    %c0_i32 = arith.constant 0 : i32
    %c0_i32_0 = arith.constant 0 : i32
    %c0_i32_1 = arith.constant 0 : i32
    return %c0_i32, %c0_i32_0 : i32, i32
  }
  func.func @transform_7(%arg0: i32, %arg1: i32) -> (i32, i32) {
    %c0_i32 = arith.constant 0 : i32
    %c0_i32_0 = arith.constant 0 : i32
    %c0_i32_1 = arith.constant 0 : i32
    return %c0_i32, %c0_i32_0 : i32, i32
  }
  func.func @transform_8(%arg0: i32, %arg1: i32) -> (i32, i32) {
    %c0_i32 = arith.constant 0 : i32
    %c0_i32_0 = arith.constant 0 : i32
    %c0_i32_1 = arith.constant 0 : i32
    return %c0_i32, %c0_i32_0 : i32, i32
  }
  func.func @transform_9(%arg0: i32, %arg1: i32) -> (i32, i32) {
    %c0_i32 = arith.constant 0 : i32
    %c0_i32_0 = arith.constant 0 : i32
    %c0_i32_1 = arith.constant 0 : i32
    return %c0_i32, %c0_i32_0 : i32, i32
  }
  func.func @transform_10(%arg0: i32, %arg1: i32) -> (i32, i32) {
    %c1_i32 = arith.constant 1 : i32
    %0 = arith.muli %arg0, %c1_i32 : i32
    %1 = arith.addi %0, %arg1 : i32
    %c0_i32 = arith.constant 0 : i32
    %c0_i32_0 = arith.constant 0 : i32
    return %1, %c0_i32 : i32, i32
  }
}

</mosaic_0001>

<bundles_post_ra>
// kernel: tpu_custom_call.1
= control target key start
LH: loop header
LB: loop body
LE: loop exit
PB: predicated region body
PF: predicated region fallthrough
CT: control target
= control target key end

     0   :  { %s4375_s0 = inlined_call_operand.hbm [shape: f32[16,32], index: 0, kind: input, shape index: {}, may-alias: {0,10}]   ;;  %s4376_s1 = inlined_call_operand.vmem [shape: f32[32,32], index: 1, kind: input, shape index: {}]   ;;  %s4377_s2 = inlined_call_operand.hbm [shape: f32[32,32], index: 2, kind: input, shape index: {}]   ;;  %s4378_s3 = inlined_call_operand.hbm [shape: f32[32,32], index: 3, kind: input, shape index: {}]   ;;  %s4379_s4 = inlined_call_operand.hbm [shape: f32[32,32], index: 4, kind: input, shape index: {}]   ;;  %s4380_s5 = inlined_call_operand.hbm [shape: f32[32,32], index: 5, kind: input, shape index: {}]   ;;  %s4381_s6 = inlined_call_operand.vmem [shape: f32[1,32], index: 6, kind: input, shape index: {}]   ;;  %s4382_s7 = inlined_call_operand.vmem [shape: f32[1,32], index: 7, kind: input, shape index: {}]   ;;  %s4383_s8 = inlined_call_operand.vmem [shape: f32[1,32], index: 8, kind: input, shape index: {}]   ;;  %s4384_s9 = inlined_call_operand.vmem [shape: f32[1,32], index: 9, kind: input, shape index: {}]   ;;  %s4385_s10 = inlined_call_operand.hbm [shape: f32[16,32], index: 10, kind: output, shape index: {}, may-alias: {0,10}]  }
   0x1   :  { %4392 = sst [smem:[#allocation16_spill]] %s4377_s2 }
   0x2   :  { %4393 = sst [smem:[#allocation17_spill]] %s4381_s6 }
   0x3   :  { %4394 = sst [smem:[#allocation18_spill]] %s4383_s8 }
   0x4   :  { %4395 = sst [smem:[#allocation19_spill]] %s4384_s9 }
   0x5   :  { %4396 = sst [smem:[#allocation20_spill]] %s4385_s10 }
   0x6   :  { %15 = vsyncpa [#allocation3], 0 }
   0x7   :  { %17 = vsyncpa [#allocation3 + $0x1], 0 }
   0x8   :  { %18 = vsyncpa [#allocation6], 0 }
   0x9   :  { %19 = vsyncpa [#allocation9], 0 }
   0xa   :  { %20 = vsyncpa [#allocation4], 0 }
   0xb   :  { %22 = vsyncpa [#allocation4 + $0x1], 0  ;;  %s3837_s13 = smov 0   ;;  %s3839_s14 = smov 0  }
   0xc   :  { %s3841_s15 = smov 0   ;;  %s3843_s16 = smov 0  }
   0xd   :  { %s3845_s17 = smov 0   ;;  %s3847_s18 = smov 0  }
   0xe LB: > { %s4386_s19 = sadd.s32 4294967295, %s3762_s18   ;;  %p2891_p0 = scmp.ge.s32.totalorder %s3762_s18, 1  ;;  %s3762_s18 = sphi %s3847_s18, %s28_s18   ;;  %s3758_s17 = sphi %s3845_s17, %s4424_s17   ;;  %s3754_s16 = sphi %s3843_s16, %s4423_s16   ;;  %s3750_s15 = sphi %s3841_s15, %s4422_s15   ;;  %s3746_s14 = sphi %s3839_s14, %s4421_s14   ;;  %s3742_s13 = sphi %s3837_s13, %s4420_s13  }
   0xf   : > { %p3871_p1 = scmp.eq.s32.totalorder %s4386_s19, 0  ;;  %p295_p2 = scmp.lt.s32.totalorder %s3762_s18, 3 }
  0x10   : > { %s3764_s22 = smov [#allocation5]   ;;  %s3765_s25 = smov [#allocation8]  }
  0x11   : > { %s4397_s20 = scalar_select %p3871_p1, 1, 0 }
  0x12   : > { %p3876_p3 = pnand %p2891_p0, %p295_p2  ;;  %s307_s23 = sshll.u32 %s3764_s22, 4  ;;  %s3880_s23 = int_to_ptr.vmem [resolvable:$true] %s307_s23 }
  0x13   : > { %s333_s26 = sshll.u32 %s3765_s25, 4  ;;  %s3766_s27 = smov [#allocation7]   ;;  %s3891_s26 = int_to_ptr.vmem [resolvable:$true] %s333_s26 }
  0x14   : > { %s4398_s21 = scalar_select %p3876_p3, 1, 0 }
  0x15   : > { %p3333_p4 = pneg %p3876_p3  ;;  %s3893_s28 = sshll.u32 %s3766_s27, 4  ;;  %s321_s28 = int_to_ptr.vmem [resolvable:$true] %s3893_s28 }
  0x16   : > { %s4400_s2 = sld [smem:[#allocation16_spill]] }
  0x17   : > { %p3887_p6 = pnand %p3333_p4, %p3871_p1 }
  0x19   : > { %p3903_p8 = pneg %p3887_p6 }
  0x1c   : > { %s3530_s11 = scalar_lea.hbm %s4400_s2, 512 }
  0x1d   : > { %p3531_p7 = scmp.ne.s32.totalorder %s4400_s2, %s3530_s11  ;;  %p3537_p11 = scmp.lt.u32.totalorder %s3530_s11, %s4400_s2 }
  0x1f   : > { %p3533_p9 = pnand %p3903_p8, %p3531_p7 }
  0x21   : > { %p3534_p10 = pneg %p3533_p9 }
  0x23   : > { %p3539_p12 = pnand %p3537_p11, %p3534_p10 }
  0x25   : > { %3542 = shalt.err (!%p3539_p12)
}
  0x26   : > { %s3543_s29 = scalar_lea.vmem %s3880_s23, 512  ;;  %p3551_p4 = scmp.lt.s32.totalorder %s3880_s23, %s3880_s23 }
  0x27   : > { %p3544_p13 = scmp.ne.s32.totalorder %s3880_s23, %s3543_s29  ;;  %p3552_p5 = scmp.lt.s32.totalorder %s3543_s29, %s3543_s29 }
  0x29   : > { %p3546_p0 = pnand %p3544_p13, %p3903_p8  ;;  %p3553_p7 = por %p3552_p5, %p3551_p4 }
  0x2b   : > { %p3547_p2 = pneg %p3546_p0 }
  0x2d   : > { %p3554_p9 = pnand %p3553_p7, %p3547_p2 }
  0x2f   : > { %3557 = shalt.err (!%p3554_p9)
}
  0x30   : > { %s3767_s30 = smov 128   ;;  %s3768_s11 = smov 8  }
  0x31   : > { %3336 = dma.hbm_to_vmem [thread:$0]  (!%p3887_p6), %s4400_s2, 512, %s3880_s23, [#allocation6], %s3767_s30, %s3767_s30, %s3768_s11  }
  0x32   : > { %s3558_s29 = scalar_lea.hbm %s4379_s4, 512 }
  0x33   : > { %p3559_p5 = scmp.ne.s32.totalorder %s4379_s4, %s3558_s29  ;;  %p3565_p12 = scmp.lt.u32.totalorder %s3558_s29, %s4379_s4 }
  0x35   : > { %p3561_p10 = pnand %p3559_p5, %p3903_p8 }
  0x37   : > { %p3562_p11 = pneg %p3561_p10 }
  0x39   : > { %p3567_p13 = pnand %p3565_p12, %p3562_p11 }
  0x3b   : > { %3570 = shalt.err (!%p3567_p13)
}
  0x3c   : > { %s3571_s23 = scalar_lea.vmem %s3891_s26, 512  ;;  %p3579_p7 = scmp.lt.s32.totalorder %s3891_s26, %s3891_s26 }
  0x3d   : > { %p3572_p0 = scmp.ne.s32.totalorder %s3891_s26, %s3571_s23  ;;  %p3580_p9 = scmp.lt.s32.totalorder %s3571_s23, %s3571_s23 }
  0x3f   : > { %p3574_p2 = pnand %p3572_p0, %p3903_p8  ;;  %p3581_p5 = por %p3580_p9, %p3579_p7 }
  0x41   : > { %p3575_p4 = pneg %p3574_p2 }
  0x43   : > { %p3582_p10 = pnand %p3581_p5, %p3575_p4 }
  0x45   : > { %3585 = shalt.err (!%p3582_p10)
}
  0x46   : > { %3342 = dma.hbm_to_vmem [thread:$0]  (!%p3887_p6), %s4379_s4, 512, %s3891_s26, [#allocation9], %s3767_s30, %s3767_s30, %s3768_s11  }
  0x47   : > { %s3586_s12 = scalar_lea.hbm %s4378_s3, 512 }
  0x48   : > { %p3587_p11 = scmp.ne.s32.totalorder %s4378_s3, %s3586_s12  ;;  %p3593_p0 = scmp.lt.u32.totalorder %s3586_s12, %s4378_s3 }
  0x4a   : > { %p3589_p12 = pnand %p3587_p11, %p3903_p8 }
  0x4c   : > { %p3590_p13 = pneg %p3589_p12 }
  0x4e   : > { %p3595_p2 = pnand %p3593_p0, %p3590_p13 }
  0x50   : > { %3598 = shalt.err (!%p3595_p2)
}
  0x51   : > { %s3599_s23 = scalar_lea.vmem %s321_s28, 512  ;;  %p3607_p5 = scmp.lt.s32.totalorder %s321_s28, %s321_s28 }
  0x52   : > { %p3600_p4 = scmp.ne.s32.totalorder %s321_s28, %s3599_s23  ;;  %p3608_p10 = scmp.lt.s32.totalorder %s3599_s23, %s3599_s23 }
  0x54   : > { %p3602_p7 = pnand %p3600_p4, %p3903_p8  ;;  %p3609_p3 = por %p3608_p10, %p3607_p5 }
  0x56   : > { %p3603_p9 = pneg %p3602_p7 }
  0x58   : > { %p3610_p1 = pnand %p3609_p3, %p3603_p9 }
  0x5a   : > { %3613 = shalt.err (!%p3610_p1)
}
  0x5b   : > { %3339 = dma.hbm_to_vmem [thread:$0]  (!%p3887_p6), %s4378_s3, 512, %s321_s28, [#allocation6], %s3767_s30, %s3767_s30, %s3768_s11  }
  0x5c   : > { %s3769_s8 = smov [#allocation10]   ;;  %s3614_s22 = scalar_lea.hbm %s4380_s5, 512 }
  0x5d   : > { %s346_s9 = sshll.u32 %s3769_s8, 4  ;;  %p3615_p1 = scmp.ne.s32.totalorder %s4380_s5, %s3614_s22  ;;  %s347_s9 = int_to_ptr.vmem [resolvable:$true] %s346_s9 }
  0x5e   : > { %p3621_p12 = scmp.lt.u32.totalorder %s3614_s22, %s4380_s5 }
  0x5f   : > { %p3617_p3 = pnand %p3615_p1, %p3903_p8 }
  0x61   : > { %p3618_p11 = pneg %p3617_p3 }
  0x63   : > { %p3623_p13 = pnand %p3621_p12, %p3618_p11 }
  0x65   : > { %3626 = shalt.err (!%p3623_p13)
}
  0x66   : > { %s3627_s28 = scalar_lea.vmem %s347_s9, 512  ;;  %p3635_p7 = scmp.lt.s32.totalorder %s347_s9, %s347_s9 }
  0x67   : > { %p3628_p0 = scmp.ne.s32.totalorder %s347_s9, %s3627_s28  ;;  %p3636_p9 = scmp.lt.s32.totalorder %s3627_s28, %s3627_s28 }
  0x69   : > { %p3630_p2 = pnand %p3628_p0, %p3903_p8  ;;  %p3637_p5 = por %p3636_p9, %p3635_p7 }
  0x6b   : > { %p3631_p4 = pneg %p3630_p2 }
  0x6d   : > { %p3638_p10 = pnand %p3637_p5, %p3631_p4 }
  0x6f   : > { %3641 = shalt.err (!%p3638_p10)
}
  0x70   : > { %3345 = dma.hbm_to_vmem [thread:$0]  (!%p3887_p6), %s4380_s5, 512, %s347_s9, [#allocation9], %s3767_s30, %s3767_s30, %s3768_s11  }
  0x71   : > { %s2890_s19 = sadd.s32 4294967294, %s3762_s18   ;;  %s40_s24 = sadd.s32 1, %s3758_s17 }
  0x72   : > { %p42_p8 = scmp.ge.s32.totalorder %s40_s24, 2  ;;  %s49_s8 = sadd.s32 1, %s3750_s15 }
  0x73   : > { %p56_p1 = scmp.ne.s32.totalorder %s3750_s15, %s3746_s14  ;;  %p57_p3 = scmp.eq.s32.totalorder %s3762_s18, 0 }
  0x74   : > { %s4426_s24 = smov (%p42_p8, %s40_s24), 0  ;;  %p62_p12 = scmp.ne.s32.totalorder %s3746_s14, %s3742_s13 }
  0x75   : > { %p4004_p11 = por %p57_p3, %p56_p1  ;;  %s46_s30 = ssub.s32 %s3758_s17, %s4426_s24 }
  0x76   : > { %s4403_s11 = sadd.s32 4294967295, %s3762_s18   ;;  %p47_p13 = scmp.eq.s32.totalorder %s46_s30, 0 }
  0x77   : > { %p282_p6 = scmp.eq.s32.totalorder %s4403_s11, 1  ;;  %p4404_p0 = scmp.ne.s32.totalorder %s4397_s20, 0 }
  0x78   : > { %p288_p7 = scmp.eq.s32.totalorder %s2890_s19, 1  ;;  %p3358_p5 = scmp.lt.s32.totalorder %s3762_s18, 2 }
  0x79   : > { %p4016_p2 = por %p4404_p0, %p62_p12  ;;  %p4020_p4 = por %p282_p6, %p56_p1 }
  0x7a   : > { %s4025_s22 = scalar_select %p47_p13, %s3750_s15, %s49_s8  }
  0x7b   : > { %s4406_s12 = scalar_select %p4020_p4, 1, 0 }
  0x7c   : > { %p4027_p9 = por %p288_p7, %p62_p12  ;;  %s372_s27 = sand.u32 1, %s3750_s15  }
  0x7d   : > { %s2898_s29 = sshll.u32 %s3758_s17, 7  ;;  %s2897_s23 = sshll.u32 %s372_s27, 3 }
  0x7e   : > { %s4407_s25 = scalar_select %p4027_p9, 1, 0 }
  0x7f   : > { %s4037_s6 = scalar_lea.hbm %s4375_s0, %s2898_s29  ;;  %s376_s19 = scalar_lea.vmem [#allocation2], %s2897_s23 }
  0x80   : > { %s384_s8 = sshll.u32 %s376_s19, 4  ;;  %p4041_p10 = pnand %p3358_p5, %p4004_p11  ;;  %s4045_s8 = int_to_ptr.vmem [resolvable:$true] %s384_s8 }
  0x81   : > { %s373_s11 = scalar_lea.sflag [#allocation3], %s372_s27  ;;  %s3642_s2 = scalar_lea.hbm %s4037_s6, 128 }
  0x82   : > { %p3643_p8 = scmp.ne.s32.totalorder %s4037_s6, %s3642_s2  ;;  %p3644_p1 = pneg %p4041_p10 }
  0x83   : > { %s3647_s10 = scalar_lea.hbm %s4375_s0, 256  ;;  %p3648_p11 = scmp.lt.u32.totalorder %s4037_s6, %s4375_s0 }
  0x84   : > { %p3645_p3 = pnand %p3644_p1, %p3643_p8  ;;  %p3649_p6 = scmp.lt.u32.totalorder %s3647_s10, %s3642_s2 }
  0x85   : > { %p3651_p0 = scmp.lt.u32.totalorder %s3642_s2, %s4037_s6 }
  0x86   : > { %p3646_p12 = pneg %p3645_p3  ;;  %p3650_p13 = por %p3649_p6, %p3648_p11 }
  0x88   : > { %p3652_p7 = por %p3651_p0, %p3650_p13 }
  0x8a   : > { %p3653_p5 = pnand %p3652_p7, %p3646_p12 }
  0x8c   : > { %3656 = shalt.err (!%p3653_p5)
}
  0x8d   : > { %s3657_s27 = scalar_lea.vmem %s4045_s8, 128  ;;  %s3770_s19 = smov [#allocation2]  }
  0x8e   : > { %p3658_p8 = scmp.ne.s32.totalorder %s4045_s8, %s3657_s27  ;;  %s3662_s29 = sshll.u32 %s3770_s19, 4  ;;  %s3663_s29 = int_to_ptr.vmem [resolvable:$false] %s3662_s29 }
  0x8f   : > { %s3664_s23 = scalar_lea.vmem %s3663_s29, 256  ;;  %p3665_p4 = scmp.lt.s32.totalorder %s4045_s8, %s3663_s29 }
  0x90   : > { %p3660_p3 = pnand %p3658_p8, %p3644_p1  ;;  %p3666_p11 = scmp.lt.s32.totalorder %s3664_s23, %s3657_s27 }
  0x92   : > { %p3661_p9 = pneg %p3660_p3  ;;  %p3667_p6 = por %p3666_p11, %p3665_p4 }
  0x94   : > { %p3668_p13 = pnand %p3667_p6, %p3661_p9 }
  0x96   : > { %3671 = shalt.err (!%p3668_p13)
}
  0x97   : > { %3349 = dma.hbm_to_vmem [thread:$0]  (!%p4041_p10), %s4037_s6, 128, %s4045_s8, %s373_s11  }
  0x98   : > { %p4409_p12 = scmp.ne.s32.totalorder %s4398_s21, 0 }
  0x99   : > { %s4075_s2 = sand.u32 (!%p4409_p12), 1, %s3746_s14  }
  0x9a   : > { %402 = sbr.rel (%p4409_p12) target bundleno = 3510 (0xdb6), region = 60  ;;  %s2900_s10 = sshll.u32 (!%p4409_p12), %s4075_s2, 3 }
  0x9b   : > { %s405_s28 = scalar_lea.sflag (!%p4409_p12), [#allocation3], %s4075_s2  ;;  %s4081_s26 = scalar_lea.vmem (!%p4409_p12), [#allocation2], %s2900_s10 }
  0xa1   : > { %3725 = dma.done.wait (%p4016_p2), %s405_s28, 128  }
  0xa2   : > { %3727 = vsyncadd (%p4016_p2), %s405_s28, 4294967168  ;;  %p4410_p4 = scmp.ne.s32.totalorder %s4397_s20, 0 }
  0xa4   : > { %3729 = dma.done.wait (%p4410_p4), [#allocation6], 1024  }
  0xa5   : > { %3731 = vsyncadd (%p4410_p4), [#allocation6], 4294966272 }
  0xa6   : > { %3733 = dma.done.wait (%p4410_p4), [#allocation9], 1024  }
  0xa7   : > { %3735 = vsyncadd (%p4410_p4), [#allocation9], 4294966272  ;;  %s2906_s21 = sshll.u32 %s3754_s16, 1  ;;  %v3771_v0 = vmov 0.0|0.0   ;;  %vm3772_vm0 = vmmov 0   ;;  %v3773_v1 = vmov 0.0  }
  0xa8   : > { %p468_p9 = scmp.lt.s32.totalorder %s2906_s21, 3  ;;  %3235 = vmatprep.subr.bf16.mxu0 %v3771_v0  ;;  %3058 = vmatprep.mubr.msk.f32.mxu0 %vm3772_vm0, %v3773_v1  ;;  %vm488_vm1 = vcmask 261120   ;;  %v562_v2 = vld [vmem:[#allocation7] sm:$0xff]  ;;  %v563_v3 = vld [vmem:[#allocation7 + $0x8] sm:$0xff]  ;;  %v564_v4 = vld [vmem:[#allocation7 + $0x10] sm:$0xff]  ;;  %vm740_vm2 = vcmask 31744  }
  0xa9   : > { %v3241_v5 = vpack.c.bf16 %v563_v3, %v562_v2  ;;  %v565_v6 = vld [vmem:[#allocation7 + $0x18] sm:$0xff]  ;;  %v477_v9 = vld [vmem:[#allocation5] sm:$0xff]  ;;  %v478_v10 = vld [vmem:[#allocation5 + $0x8] sm:$0xff]  ;;  %s4413_s29 = sld [smem:[#allocation17_spill]]  ;;  %s3774_s23 = smov 124   ;;  %vm820_vm4 = vcmask 130048  }
  0xaa   : > { %s4428_s21 = smov (!%p468_p9, %s2906_s21), 3  ;;  %v3245_v8 = vpack.c.bf16 %v565_v6, %v564_v4  ;;  %v479_v11 = vld [vmem:[#allocation5 + $0x10] sm:$0xff]  ;;  %v3236_v12 = vpack.c.bf16 %v478_v10, %v477_v9  ;;  %v480_v13 = vld [vmem:[#allocation5 + $0x18] sm:$0xff]  ;;  %vm4119_vm3 = vmpackc.low %vm740_vm2, %vm740_vm2  ;;  %s3776_s6 = smov 120   ;;  %vm1084_vm5 = vcmask 1043456  }
  0xab   : > { %s2907_s9 = sshll.u32 %s4428_s21, 3  ;;  %3242 = vmatprep.subr.bf16.mxu1 %v3241_v5  ;;  %v3239_v14 = vpack.c.bf16 %v480_v13, %v479_v11  ;;  %v4105_v16 = vld [vmem:[%s4081_s26] sm:$0xff]  ;;  %v654_v29 = vld [vmem:[#allocation8] sm:$0xff]  ;;  %v655_v30 = vld [vmem:[#allocation8 + $0x8] sm:$0xff]  ;;  %s4414_s21 = sld [smem:[#allocation18_spill]] }
  0xac   : > { %s471_s30 = scalar_lea.vmem %s4376_s1, %s2907_s9  ;;  %3244 = vmatpush3.bf16.msra.mxu1 %v3241_v5  ;;  %3237 = vmatpush3.bf16.msra.mxu0 %v3236_v12  ;;  %v2910_v17 = vld [vmem:[%s4382_s7] ss:$0 sm:$0xff]  ;;  %v3249_v32 = vpack.c.bf16 %v655_v30, %v654_v29  ;;  %v657_v33 = vld [vmem:[#allocation8 + $0x18] sm:$0xff]  ;;  %s3775_s9 = smov 116   ;;  %v905_v4 = vld [vmem:[#allocation10] sm:$0xf] }
  0xad   : > { %v475_v7 = vld [vmem:[%s471_s30] sm:$0xff]  ;;  %3246 = vmatprep.subr.bf16.mxu1 %v3245_v8  ;;  %3238 = vmatprep.subr.bf16.mxu0 %v3771_v0  ;;  %v476_v15 = vld [vmem:[%s471_s30 + $0x8] sm:$0xff]  ;;  %v1080_v12 = vld [vmem:[#allocation10 + $0x4] sm:$0xf]  ;;  %s3777_s8 = smov 112   ;;  %s3778_s30 = smov 108  }
  0xae   : > { %3069 = vmatprep.mubr.msk.f32.mxu1 %vm488_vm1, %v475_v7  ;;  %v656_v31 = vld [vmem:[#allocation8 + $0x10] sm:$0xff]  ;;  %s3779_s20 = smov 104   ;;  %s3780_s11 = smov 100  }
  0xaf   : > { %v2908_v27 = vld [vmem:[%s4413_s29] ss:$0 sm:$0xff]  ;;  %v3253_v34 = vpack.c.bf16 %v657_v33, %v656_v31  ;;  %s4415_s29 = sld [smem:[#allocation19_spill]]  ;;  %s465_s28 = scalar_lea.vmem [#allocation11], %s2900_s10 }
  0xb0   : > { %3248 = vmatpush3.bf16.msra.mxu1 %v3245_v8  ;;  %3240 = vmatpush3.bf16.msra.mxu0 %v3239_v14  ;;  %s2759_s26 = sshll.u32 %s465_s28, 4  ;;  %p4417_p10 = scmp.ne.s32.totalorder %s4406_s12, 0  ;;  %s4327_s26 = int_to_ptr.vmem [resolvable:$true] %s2759_s26 }
  0xb1   : > { %3257 = vmatprep.subr.bf16.mxu1 %v3771_v0  ;;  %3250 = vmatprep.subr.bf16.mxu0 %v3249_v32  ;;  %v2913_v50 = vld [vmem:[%s4414_s21] ss:$0 sm:$0xff]  ;;  %s3781_s10 = smov [#allocation11]  }
  0xb3   : > { %3070 = vmatmul.mubr.msk.f32.vlgmr.msra.gmra.mrb[0].mxu1 %vm488_vm1, %v476_v15  ;;  %3059 = vmatmul.mubr.msk.f32.vlgmr.msra.gmra.mrb[0].mxu0 %vm488_vm1, %v4105_v16 }
  0xb4   : > { %3087 = vmatprep.mubr.msk.f32.mxu1 %vm3772_vm0, %v3773_v1  ;;  %3080 = vmatprep.mubr.msk.f32.mxu0 %vm488_vm1, %v475_v7 }
  0xb5   : > { %3252 = vmatpush3.bf16.msra.mxu0 %v3249_v32 }
  0xb6   : > { %3254 = vmatprep.subr.bf16.mxu0 %v3253_v34 }
  0xb9   : > { %3256 = vmatpush3.bf16.msra.mxu0 %v3253_v34 }
  0xba   : > { %3261 = vmatprep.subr.bf16.mxu0 %v3771_v0 }
  0xbc   : > { %3081 = vmatmul.mubr.msk.f32.vlgmr.msra.gmra.mrb[2].mxu0 %vm488_vm1, %v476_v15 }
  0xbd   : > { %3094 = vmatprep.mubr.msk.f32.mxu0 %vm3772_vm0, %v3773_v1 }
 0x186   : > { %v3071_v18 = vpop.f32.mrb[0].mxu1  ;;  %v558_v21 = vpop.f32.mrb[0].mxu0 }
 0x187   : > { %v651_v19 = vadd.f32 %v3071_v18, %v2910_v17  ;;  %v645_v20 = vpop.f32.mrb[1].mxu1  ;;  %v3060_v23 = vpop.f32.mrb[1].mxu0  ;;  %v4133_v28 = vadd.f32 %v2908_v27, %v558_v21 }
 0x188   : > { %v646_v22 = vadd.f32 %v2910_v17, %v645_v20 }
 0x18a   : > { %v4123_v25 = vpack.i.bf16 %v651_v19, %v646_v22  ;;  %v3258_v26 = vpack.c.bf16 %v651_v19, %v646_v22 }
 0x18c   : > { %3429 = vrot.lane.b32.xlu0 %v4123_v25, %s3774_s23  ;;  %3260 = vmatpush3.bf16.xpose.msk.msra.mxu1 %vm4119_vm3, %v3258_v26 }
 0x18d   : > { %3264 = vmatprep.subr.bf16.mxu1 %v3771_v0 }
 0x18f   : > { %v3082_v49 = vpop.f32.mrb[2].mxu0 }
 0x190   : > { %906 = vrot.lane.b32.xlu0 %v4133_v28, %s3774_s23  ;;  %v737_v51 = vadd.f32 %v3082_v49, %v2913_v50  ;;  %v731_v52 = vpop.f32.mrb[3].mxu0 }
 0x191   : > { %v732_v53 = vadd.f32 %v2913_v50, %v731_v52 }
 0x193   : > { %3088 = vmatmul.mubr.msk.f32.vlgmr.msra.gmra.mrb[2].mxu1 %vm740_vm2, %v4133_v28  ;;  %v4156_v54 = vpack.i.bf16 %v737_v51, %v732_v53  ;;  %v3262_v57 = vpack.c.bf16 %v737_v51, %v732_v53 }
 0x194   : > { %3101 = vmatprep.mubr.msk.f32.mxu1 %vm3772_vm0, %v3773_v1 }
 0x195   : > { %3263 = vmatpush3.bf16.msra.mxu0 %v3262_v57 }
 0x196   : > { %3268 = vmatprep.subr.bf16.mxu0 %v3771_v0 }
 0x1fe   : > { %v3430_v35 = vpop.permute.xlu0 %3429 }
 0x1ff   : > { %v3432_v36 = vunpack.i.h.bf16 %v3430_v35  ;;  %v3431_v37 = vunpack.i.l.bf16 %v3430_v35 }
 0x201   : > { %v3265_v38 = vpack.c.bf16 %v3432_v36, %v3431_v37 }
 0x202   : > { %v907_v39 = vpop.permute.xlu0 %906 }
 0x203   : > { %3267 = vmatpush3.bf16.xpose.msk.msra.mxu1 %vm4119_vm3, %v3265_v38 }
 0x204   : > { %3116 = vmatprep.subr.mxu1 %v3773_v1 }
 0x20a   : > { %3102 = vmatmul.mubr.msk.f32.vlgmr.msra.gmra.mrb[4].mxu1 %vm740_vm2, %v907_v39 }
 0x20b   : > { %3118 = vmatprep.mubr.msk.f32.mxu1 %vm3772_vm0, %v3773_v1  ;;  %3117 = vmatpush3.msk.msra.mxu1 %vm1084_vm5, %v905_v4 }
 0x20c   : > { %3275 = vmatprep.subr.bf16.mxu1 %v3771_v0 }
 0x266   : > { %v816_v40 = vpop.f32.mrb[2].mxu1 }
 0x267   : > { %v821_v41 = vsel %vm820_vm4, %v816_v40, -inf  ;;  %v3089_v42 = vpop.f32.mrb[3].mxu1 }
 0x268   : > { %822 = vmax.xlane.f32.xlu1 %v821_v41 }
 0x2dd   : > { %v984_v43 = vpop.f32.mrb[4].mxu1 }
 0x2de   : > { %v3103_v44 = vpop.f32.mrb[5].mxu1  ;;  %v988_v45 = vsel %vm820_vm4, %v984_v43, -inf }
 0x2df   : > { %989 = vmax.xlane.f32.xlu1 %v988_v45 }
 0x2f5   : > { %v823_v46 = vpop.xlane.xlu1 %822 }
 0x2f6   : > { %v824_v47 = vsub.f32 %v816_v40, %v823_v46 }
 0x2f8   : > { %v825_v48 = vmul.f32 1.442695, %v824_v47 }
 0x2fa   : > { %3498 = vpow2.f32 %v825_v48 }
 0x304   : > { %v3499_v55 = vpop.eup %3498 }
 0x305   : > { %v827_v56 = vsel %vm820_vm4, %v3499_v55, 0.0 }
 0x306   : > { %828 = vadd.xlane.f32.xlu0 %v827_v56 }
 0x31c   : > { %1484 = vrot.lane.b32.xlu0 %v4133_v28, %s3775_s9 }
 0x36c   : > { %v990_v58 = vpop.xlane.xlu1 %989 }
 0x36d   : > { %v991_v59 = vsub.f32 %v984_v43, %v990_v58 }
 0x36f   : > { %v992_v60 = vmul.f32 1.442695, %v991_v59 }
 0x371   : > { %3500 = vpow2.f32 %v992_v60 }
 0x37b   : > { %v3501_v61 = vpop.eup %3500 }
 0x37c   : > { %v994_v62 = vsel %vm820_vm4, %v3501_v61, 0.0 }
 0x37d   : > { %995 = vadd.xlane.f32.xlu1 %v994_v62 }
 0x38e   : > { %3434 = vrot.lane.b32.xlu1 %v4156_v54, %s3774_s23  ;;  %s2966_s23 = sshll.u32 %s3754_s16, 7  ;;  %s3672_s16 = scalar_lea.vmem %s4327_s26, 128 }
 0x38f   : > { %p3673_p2 = scmp.ne.s32.totalorder %s4327_s26, %s3672_s16 }
 0x391   : > { %p3674_p1 = pnand %p3673_p2, %p4417_p10 }
 0x392   : > { %3439 = vrot.lane.b32.xlu1 %v4123_v25, %s3776_s6 }
 0x393   : > { %v829_v63 = vpop.xlane.xlu0 %828  ;;  %p3675_p0 = pneg %p3674_p1 }
 0x394   : > { %3502 = vrcp.f32 %v829_v63 }
 0x396   : > { %1234 = vrot.lane.b32.xlu1 %v4133_v28, %s3776_s6 }
 0x397   : > { %v1485_v30 = vpop.permute.xlu0 %1484 }
 0x39a   : > { %3444 = vrot.lane.b32.xlu1 %v4123_v25, %s3775_s9 }
 0x39e   : > { %v3503_v2 = vpop.eup %3502 }
 0x39f   : > { %v831_v3 = vmul.f32 %v3503_v2, %v3499_v55 }
 0x3a1   : > { %3095 = vmatmul.mubr.msk.f32.vlgmr.msra.gmra.mrb[4].mxu0 %vm820_vm4, %v831_v3  ;;  %v1406_v3 = vld [vmem:[#allocation10 + $0x8] sm:$0xf] }
 0x3a2   : > { %3108 = vmatprep.mubr.msk.f32.mxu0 %vm3772_vm0, %v3773_v1 }
 0x40a   : > { %v996_v5 = vpop.xlane.xlu1 %995 }
 0x40b   : > { %3504 = vrcp.f32 %v996_v5 }
 0x40e   : > { %v3435_v6 = vpop.permute.xlu1 %3434 }
 0x40f   : > { %v3437_v7 = vunpack.i.h.bf16 %v3435_v6  ;;  %v3436_v8 = vunpack.i.l.bf16 %v3435_v6 }
 0x411   : > { %v3269_v9 = vpack.c.bf16 %v3437_v7, %v3436_v8 }
 0x412   : > { %v3440_v15 = vpop.permute.xlu1 %3439 }
 0x413   : > { %3270 = vmatpush3.bf16.msra.mxu0 %v3269_v9  ;;  %v3442_v18 = vunpack.i.h.bf16 %v3440_v15  ;;  %v3441_v19 = vunpack.i.l.bf16 %v3440_v15 }
 0x414   : > { %3111 = vmatprep.subr.mxu0 %v3773_v1 }
 0x415   : > { %v3505_v10 = vpop.eup %3504  ;;  %v3272_v20 = vpack.c.bf16 %v3442_v18, %v3441_v19 }
 0x416   : > { %v998_v11 = vmul.f32 %v3505_v10, %v3501_v61  ;;  %v1235_v17 = vpop.permute.xlu1 %1234 }
 0x418   : > { %3109 = vmatmul.mubr.msk.f32.vlgmr.msra.gmra.mrb[6].mxu0 %vm820_vm4, %v998_v11 }
 0x419   : > { %3112 = vmatpush3.msk.msra.mxu0 %vm1084_vm5, %v1080_v12  ;;  %3113 = vmatprep.mubr.msk.f32.mxu0 %vm3772_vm0, %v3773_v1 }
 0x41a   : > { %3271 = vmatprep.subr.bf16.mxu0 %v3771_v0  ;;  %v3445_v22 = vpop.permute.xlu1 %3444 }
 0x41b   : > { %v3447_v26 = vunpack.i.h.bf16 %v3445_v22  ;;  %v3446_v27 = vunpack.i.l.bf16 %v3445_v22 }
 0x41d   : > { %v3279_v29 = vpack.c.bf16 %v3447_v26, %v3446_v27  ;;  %v1656_v27 = vld [vmem:[#allocation10 + $0xc] sm:$0xf] }
 0x474   : > { %v901_v13 = vpop.f32.mrb[4].mxu0 }
 0x475   : > { %v3096_v14 = vpop.f32.mrb[5].mxu0  ;;  %3119 = vmatmul.mubr.msk.f32.vlgmr.msra.gmra.mrb[6].mxu1 %vm740_vm2, %v901_v13 }
 0x476   : > { %3132 = vmatprep.mubr.msk.f32.mxu1 %vm3772_vm0, %v3773_v1 }
 0x4eb   : > { %v1076_v21 = vpop.f32.mrb[6].mxu0 }
 0x4ec   : > { %v3110_v23 = vpop.f32.mrb[7].mxu0  ;;  %3114 = vmatmul.mubr.msk.f32.vlgmr.msra.gmra.mrb[8].mxu0 %vm740_vm2, %v1076_v21 }
 0x4ed   : > { %3274 = vmatpush3.bf16.xpose.msk.msra.mxu0 %vm4119_vm3, %v3272_v20  ;;  %3125 = vmatprep.mubr.msk.f32.mxu0 %vm3772_vm0, %v3773_v1 }
 0x4ee   : > { %3278 = vmatprep.subr.bf16.mxu0 %v3771_v0 }
 0x4f4   : > { %3126 = vmatmul.mubr.msk.f32.vlgmr.msra.gmra.mrb[10].mxu0 %vm740_vm2, %v1235_v17 }
 0x4f5   : > { %3281 = vmatpush3.bf16.xpose.msk.msra.mxu0 %vm4119_vm3, %v3279_v29  ;;  %3144 = vmatprep.mubr.msk.f32.mxu0 %vm3772_vm0, %v3773_v1 }
 0x4f6   : > { %3285 = vmatprep.subr.bf16.mxu0 %v3771_v0 }
 0x4fc   : > { %3145 = vmatmul.mubr.msk.f32.vlgmr.msra.gmra.mrb[12].mxu0 %vm740_vm2, %v1485_v30 }
 0x4fd   : > { %3163 = vmatprep.mubr.msk.f32.mxu0 %vm3772_vm0, %v3773_v1 }
 0x548   : > { %v1230_v31 = vpop.f32.mrb[6].mxu1 }
 0x549   : > { %v3120_v32 = vpop.f32.mrb[7].mxu1 }
 0x5bf   : > { %v1154_v33 = vpop.f32.mrb[8].mxu0 }
 0x5c0   : > { %v4200_v34 = vadd.f32 %v1230_v31, %v1154_v33  ;;  %v3115_v35 = vpop.f32.mrb[9].mxu0 }
 0x5c7   : > { %v1312_v36 = vpop.f32.mrb[10].mxu0 }
 0x5c8   : > { %v3127_v37 = vpop.f32.mrb[11].mxu0  ;;  %v1316_v38 = vsel %vm820_vm4, %v1312_v36, -inf }
 0x5c9   : > { %1317 = vmax.xlane.f32.xlu1 %v1316_v38 }
 0x5cf   : > { %v1562_v39 = vpop.f32.mrb[12].mxu0 }
 0x5d0   : > { %v3146_v40 = vpop.f32.mrb[13].mxu0  ;;  %v1566_v41 = vsel %vm820_vm4, %v1562_v39, -inf }
 0x5da   : > { %3449 = vrot.lane.b32.xlu1 %v4156_v54, %s3776_s6  ;;  %s4416_s6 = sld [smem:[#allocation20_spill]] }
 0x5de   : > { %1734 = vrot.lane.b32.xlu1 %v4133_v28, %s3777_s8 }
 0x602   : > { %1567 = vmax.xlane.f32.xlu1 %v1566_v41 }
 0x613   : > { %3459 = vrot.lane.b32.xlu1 %v4156_v54, %s3775_s9 }
 0x617   : > { %1984 = vrot.lane.b32.xlu1 %v4133_v28, %s3778_s30 }
 0x656   : > { %v1318_v42 = vpop.xlane.xlu1 %1317 }
 0x657   : > { %v1319_v43 = vsub.f32 %v1312_v36, %v1318_v42 }
 0x659   : > { %v1320_v44 = vmul.f32 1.442695, %v1319_v43 }
 0x65a   : > { %v3450_v45 = vpop.permute.xlu1 %3449 }
 0x65b   : > { %3506 = vpow2.f32 %v1320_v44  ;;  %v3452_v46 = vunpack.i.h.bf16 %v3450_v45  ;;  %v3451_v47 = vunpack.i.l.bf16 %v3450_v45 }
 0x65d   : > { %v3276_v48 = vpack.c.bf16 %v3452_v46, %v3451_v47 }
 0x65e   : > { %v1735_v51 = vpop.permute.xlu1 %1734 }
 0x65f   : > { %3277 = vmatpush3.bf16.msra.mxu1 %v3276_v48 }
 0x660   : > { %3135 = vmatprep.subr.mxu1 %v3773_v1 }
 0x665   : > { %v3507_v49 = vpop.eup %3506 }
 0x666   : > { %v1322_v50 = vsel %vm820_vm4, %v3507_v49, 0.0 }
 0x667   : > { %1323 = vadd.xlane.f32.xlu0 %v1322_v50 }
 0x67d   : > { %3454 = vrot.lane.b32.xlu0 %v4123_v25, %s3777_s8 }
 0x68f   : > { %v1568_v52 = vpop.xlane.xlu1 %1567 }
 0x690   : > { %v1569_v53 = vsub.f32 %v1562_v39, %v1568_v52 }
 0x692   : > { %v1570_v55 = vmul.f32 1.442695, %v1569_v53 }
 0x693   : > { %v3460_v9 = vpop.permute.xlu1 %3459 }
 0x694   : > { %3508 = vpow2.f32 %v1570_v55  ;;  %v3462_v11 = vunpack.i.h.bf16 %v3460_v9  ;;  %v3461_v12 = vunpack.i.l.bf16 %v3460_v9 }
 0x696   : > { %v3283_v14 = vpack.c.bf16 %v3462_v11, %v3461_v12 }
 0x697   : > { %v1985_v10 = vpop.permute.xlu1 %1984 }
 0x69e   : > { %v3509_v56 = vpop.eup %3508 }
 0x69f   : > { %v1572_v57 = vsel %vm820_vm4, %v3509_v56, 0.0 }
 0x6a0   : > { %1573 = vadd.xlane.f32.xlu0 %v1572_v57 }
 0x6b6   : > { %3464 = vrot.lane.b32.xlu0 %v4123_v25, %s3778_s30 }
 0x6f4   : > { %v1324_v58 = vpop.xlane.xlu0 %1323 }
 0x6f5   : > { %3510 = vrcp.f32 %v1324_v58 }
 0x6f8   : > { %v3455_v59 = vpop.permute.xlu0 %3454 }
 0x6f9   : > { %v3457_v60 = vunpack.i.h.bf16 %v3455_v59  ;;  %v3456_v61 = vunpack.i.l.bf16 %v3455_v59 }
 0x6fb   : > { %v3286_v62 = vpack.c.bf16 %v3457_v60, %v3456_v61 }
 0x6fd   : > { %3288 = vmatpush3.bf16.xpose.msk.msra.mxu0 %vm4119_vm3, %v3286_v62 }
 0x6fe   : > { %3292 = vmatprep.subr.bf16.mxu0 %v3771_v0 }
 0x6ff   : > { %v3511_v63 = vpop.eup %3510 }
 0x700   : > { %v1326_v2 = vmul.f32 %v3511_v63, %v3507_v49 }
 0x702   : > { %3133 = vmatmul.mubr.msk.f32.vlgmr.msra.gmra.mrb[8].mxu1 %vm820_vm4, %v1326_v2 }
 0x703   : > { %3136 = vmatpush3.msk.msra.mxu1 %vm1084_vm5, %v1406_v3  ;;  %3137 = vmatprep.mubr.msk.f32.mxu1 %vm3772_vm0, %v3773_v1 }
 0x704   : > { %3164 = vmatmul.mubr.msk.f32.vlgmr.msra.gmra.mrb[14].mxu0 %vm740_vm2, %v1735_v51  ;;  %3282 = vmatprep.subr.bf16.mxu1 %v3771_v0 }
 0x705   : > { %3182 = vmatprep.mubr.msk.f32.mxu0 %vm3772_vm0, %v3773_v1 }
 0x72d   : > { %v1574_v4 = vpop.xlane.xlu0 %1573 }
 0x72e   : > { %3512 = vrcp.f32 %v1574_v4 }
 0x731   : > { %v3465_v5 = vpop.permute.xlu0 %3464 }
 0x732   : > { %v3467_v6 = vunpack.i.h.bf16 %v3465_v5  ;;  %v3466_v7 = vunpack.i.l.bf16 %v3465_v5 }
 0x734   : > { %v3293_v8 = vpack.c.bf16 %v3467_v6, %v3466_v7 }
 0x736   : > { %3295 = vmatpush3.bf16.xpose.msk.msra.mxu0 %vm4119_vm3, %v3293_v8 }
 0x737   : > { %3299 = vmatprep.subr.bf16.mxu0 %v3771_v0 }
 0x738   : > { %v3513_v13 = vpop.eup %3512 }
 0x739   : > { %v1576_v19 = vmul.f32 %v3513_v13, %v3509_v56  ;;  %v1906_v56 = vld [vmem:[#allocation10 + $0x10] sm:$0xf] }
 0x73d   : > { %3183 = vmatmul.mubr.msk.f32.vlgmr.msra.gmra.mrb[16].mxu0 %vm740_vm2, %v1985_v10 }
 0x73e   : > { %3201 = vmatprep.mubr.msk.f32.mxu0 %vm3772_vm0, %v3773_v1 }
 0x7d5   : > { %v1402_v15 = vpop.f32.mrb[8].mxu1 }
 0x7d6   : > { %v3134_v17 = vpop.f32.mrb[9].mxu1  ;;  %3138 = vmatmul.mubr.msk.f32.vlgmr.msra.gmra.mrb[10].mxu1 %vm740_vm2, %v1402_v15 }
 0x7d7   : > { %3284 = vmatpush3.bf16.msra.mxu1 %v3283_v14  ;;  %v1812_v18 = vpop.f32.mrb[14].mxu0  ;;  %3151 = vmatprep.mubr.msk.f32.mxu1 %vm3772_vm0, %v3773_v1  ;;  %v2156_v17 = vld [vmem:[#allocation10 + $0x14] sm:$0xf] }
 0x7d8   : > { %v3165_v20 = vpop.f32.mrb[15].mxu0  ;;  %v1816_v21 = vsel %vm820_vm4, %v1812_v18, -inf  ;;  %3154 = vmatprep.subr.mxu1 %v3773_v1 }
 0x7d9   : > { %1817 = vmax.xlane.f32.xlu1 %v1816_v21 }
 0x7da   : > { %3152 = vmatmul.mubr.msk.f32.vlgmr.msra.gmra.mrb[12].mxu1 %vm820_vm4, %v1576_v19 }
 0x7db   : > { %3156 = vmatprep.mubr.msk.f32.mxu1 %vm3772_vm0, %v3773_v1  ;;  %3155 = vmatpush3.msk.msra.mxu1 %vm1084_vm5, %v1656_v27 }
 0x7dc   : > { %3289 = vmatprep.subr.bf16.mxu1 %v3771_v0 }
 0x7ea   : > { %3469 = vrot.lane.b32.xlu1 %v4156_v54, %s3777_s8  ;;  %s4325_s8 = scalar_lea.hbm %s4416_s6, %s2966_s23 }
 0x7ee   : > { %2234 = vrot.lane.b32.xlu1 %v4133_v28, %s3779_s20 }
 0x810   : > { %v2062_v22 = vpop.f32.mrb[16].mxu0 }
 0x811   : > { %v3184_v23 = vpop.f32.mrb[17].mxu0  ;;  %v2066_v26 = vsel %vm820_vm4, %v2062_v22, -inf }
 0x812   : > { %2067 = vmax.xlane.f32.xlu1 %v2066_v26 }
 0x823   : > { %3479 = vrot.lane.b32.xlu1 %v4156_v54, %s3778_s30  ;;  %s2745_s30 = scalar_lea.sflag [#allocation4], %s4075_s2 }
 0x827   : > { %2484 = vrot.lane.b32.xlu1 %v4133_v28, %s3780_s11 }
 0x866   : > { %v1818_v29 = vpop.xlane.xlu1 %1817 }
 0x867   : > { %v1819_v30 = vsub.f32 %v1812_v18, %v1818_v29 }
 0x869   : > { %v1820_v31 = vmul.f32 1.442695, %v1819_v30 }
 0x86a   : > { %v3470_v35 = vpop.permute.xlu1 %3469 }
 0x86b   : > { %3514 = vpow2.f32 %v1820_v31  ;;  %v3472_v39 = vunpack.i.h.bf16 %v3470_v35  ;;  %v3471_v40 = vunpack.i.l.bf16 %v3470_v35 }
 0x86d   : > { %v3290_v44 = vpack.c.bf16 %v3472_v39, %v3471_v40 }
 0x86e   : > { %v2235_v36 = vpop.permute.xlu1 %2234 }
 0x875   : > { %v3515_v32 = vpop.eup %3514 }
 0x876   : > { %v1822_v33 = vsel %vm820_vm4, %v3515_v32, 0.0 }
 0x877   : > { %1823 = vadd.xlane.f32.xlu0 %v1822_v33 }
 0x88d   : > { %3474 = vrot.lane.b32.xlu0 %v4123_v25, %s3779_s20 }
 0x89f   : > { %v2068_v37 = vpop.xlane.xlu1 %2067 }
 0x8a0   : > { %v2069_v28 = vsub.f32 %v2062_v22, %v2068_v37 }
 0x8a2   : > { %v2070_v38 = vmul.f32 1.442695, %v2069_v28 }
 0x8a3   : > { %v3480_v61 = vpop.permute.xlu1 %3479 }
 0x8a4   : > { %3516 = vpow2.f32 %v2070_v38  ;;  %v3482_v4 = vunpack.i.h.bf16 %v3480_v61  ;;  %v3481_v5 = vunpack.i.l.bf16 %v3480_v61 }
 0x8a6   : > { %v3297_v7 = vpack.c.bf16 %v3482_v4, %v3481_v5 }
 0x8a7   : > { %v2485_v62 = vpop.permute.xlu1 %2484 }
 0x8a9   : > { %v1479_v41 = vpop.f32.mrb[10].mxu1 }
 0x8aa   : > { %v1483_v42 = vadd.f32 %v1479_v41, %v4200_v34  ;;  %v3139_v43 = vpop.f32.mrb[11].mxu1 }
 0x8ab   : > { %v2406_v43 = vld [vmem:[#allocation10 + $0x18] sm:$0xf] }
 0x8ad   : > { %v1652_v45 = vpop.f32.mrb[12].mxu1 }
 0x8ae   : > { %v3517_v46 = vpop.eup %3516  ;;  %v3153_v47 = vpop.f32.mrb[13].mxu1  ;;  %3157 = vmatmul.mubr.msk.f32.vlgmr.msra.gmra.mrb[14].mxu1 %vm740_vm2, %v1652_v45 }
 0x8af   : > { %3291 = vmatpush3.bf16.msra.mxu1 %v3290_v44  ;;  %v2072_v48 = vsel %vm820_vm4, %v3517_v46, 0.0  ;;  %3170 = vmatprep.mubr.msk.f32.mxu1 %vm3772_vm0, %v3773_v1 }
 0x8b0   : > { %2073 = vadd.xlane.f32.xlu0 %v2072_v48  ;;  %3173 = vmatprep.subr.mxu1 %v3773_v1 }
 0x8c6   : > { %3484 = vrot.lane.b32.xlu0 %v4123_v25, %s3780_s11 }
 0x904   : > { %v1824_v34 = vpop.xlane.xlu0 %1823 }
 0x905   : > { %3518 = vrcp.f32 %v1824_v34 }
 0x908   : > { %v3475_v49 = vpop.permute.xlu0 %3474 }
 0x909   : > { %v3477_v50 = vunpack.i.h.bf16 %v3475_v49  ;;  %v3476_v51 = vunpack.i.l.bf16 %v3475_v49 }
 0x90b   : > { %v3300_v52 = vpack.c.bf16 %v3477_v50, %v3476_v51 }
 0x90d   : > { %3302 = vmatpush3.bf16.xpose.msk.msra.mxu0 %vm4119_vm3, %v3300_v52 }
 0x90e   : > { %3306 = vmatprep.subr.bf16.mxu0 %v3771_v0 }
 0x90f   : > { %v3519_v53 = vpop.eup %3518 }
 0x910   : > { %v1826_v55 = vmul.f32 %v3519_v53, %v3515_v32 }
 0x912   : > { %3171 = vmatmul.mubr.msk.f32.vlgmr.msra.gmra.mrb[16].mxu1 %vm820_vm4, %v1826_v55 }
 0x913   : > { %3174 = vmatpush3.msk.msra.mxu1 %vm1084_vm5, %v1906_v56  ;;  %3175 = vmatprep.mubr.msk.f32.mxu1 %vm3772_vm0, %v3773_v1 }
 0x914   : > { %3202 = vmatmul.mubr.msk.f32.vlgmr.msra.gmra.mrb[18].mxu0 %vm740_vm2, %v2235_v36  ;;  %3296 = vmatprep.subr.bf16.mxu1 %v3771_v0 }
 0x915   : > { %3220 = vmatprep.mubr.msk.f32.mxu0 %vm3772_vm0, %v3773_v1 }
 0x93d   : > { %v2074_v25 = vpop.xlane.xlu0 %2073 }
 0x93e   : > { %3520 = vrcp.f32 %v2074_v25 }
 0x941   : > { %v3485_v57 = vpop.permute.xlu0 %3484 }
 0x942   : > { %v3487_v58 = vunpack.i.h.bf16 %v3485_v57  ;;  %v3486_v59 = vunpack.i.l.bf16 %v3485_v57 }
 0x944   : > { %v3307_v60 = vpack.c.bf16 %v3487_v58, %v3486_v59 }
 0x946   : > { %3309 = vmatpush3.bf16.xpose.msk.msra.mxu0 %vm4119_vm3, %v3307_v60  ;;  %v2964_v60 = vld [vmem:[%s4415_s29] ss:$0 sm:$0xff] }
 0x948   : > { %v3521_v6 = vpop.eup %3520 }
 0x949   : > { %v2076_v24 = vmul.f32 %v3521_v6, %v3517_v46 }
 0x94d   : > { %3221 = vmatmul.mubr.msk.f32.vlgmr.msra.gmra.mrb[20].mxu0 %vm740_vm2, %v2485_v62 }
 0x981   : > { %v1729_v63 = vpop.f32.mrb[14].mxu1 }
 0x982   : > { %v1733_v2 = vadd.f32 %v1729_v63, %v1483_v42  ;;  %v3158_v3 = vpop.f32.mrb[15].mxu1 }
 0x9e5   : > { %v1902_v8 = vpop.f32.mrb[16].mxu1 }
 0x9e6   : > { %v3172_v9 = vpop.f32.mrb[17].mxu1  ;;  %3176 = vmatmul.mubr.msk.f32.vlgmr.msra.gmra.mrb[18].mxu1 %vm740_vm2, %v1902_v8 }
 0x9e7   : > { %3298 = vmatpush3.bf16.msra.mxu1 %v3297_v7  ;;  %v2312_v10 = vpop.f32.mrb[18].mxu0  ;;  %3189 = vmatprep.mubr.msk.f32.mxu1 %vm3772_vm0, %v3773_v1 }
 0x9e8   : > { %v3203_v11 = vpop.f32.mrb[19].mxu0  ;;  %v2316_v12 = vsel %vm820_vm4, %v2312_v10, -inf  ;;  %3192 = vmatprep.subr.mxu1 %v3773_v1 }
 0x9e9   : > { %2317 = vmax.xlane.f32.xlu1 %v2316_v12 }
 0x9ea   : > { %3190 = vmatmul.mubr.msk.f32.vlgmr.msra.gmra.mrb[20].mxu1 %vm820_vm4, %v2076_v24 }
 0x9eb   : > { %3194 = vmatprep.mubr.msk.f32.mxu1 %vm3772_vm0, %v3773_v1  ;;  %3193 = vmatpush3.msk.msra.mxu1 %vm1084_vm5, %v2156_v17 }
 0x9ec   : > { %3303 = vmatprep.subr.bf16.mxu1 %v3771_v0 }
 0xa20   : > { %v2562_v13 = vpop.f32.mrb[20].mxu0 }
 0xa21   : > { %v3222_v14 = vpop.f32.mrb[21].mxu0  ;;  %v2566_v15 = vsel %vm820_vm4, %v2562_v13, -inf }
 0xa22   : > { %2567 = vmax.xlane.f32.xlu1 %v2566_v15 }
 0xa76   : > { %v2318_v18 = vpop.xlane.xlu1 %2317 }
 0xa77   : > { %v2319_v19 = vsub.f32 %v2312_v10, %v2318_v18 }
 0xa79   : > { %v2320_v20 = vmul.f32 1.442695, %v2319_v19 }
 0xa7b   : > { %3522 = vpow2.f32 %v2320_v20 }
 0xa85   : > { %v3523_v21 = vpop.eup %3522 }
 0xa86   : > { %v2322_v22 = vsel %vm820_vm4, %v3523_v21, 0.0 }
 0xa87   : > { %2323 = vadd.xlane.f32.xlu0 %v2322_v22 }
 0xa9d   : > { %3489 = vrot.lane.b32.xlu0 %v4156_v54, %s3779_s20  ;;  %s3676_s20 = sshll.u32 %s3781_s10, 4  ;;  %s3677_s20 = int_to_ptr.vmem [resolvable:$false] %s3676_s20 }
 0xa9e   : > { %p3679_p7 = scmp.lt.s32.totalorder %s4327_s26, %s3677_s20 }
 0xaaf   : > { %v2568_v23 = vpop.xlane.xlu1 %2567 }
 0xab0   : > { %v2569_v26 = vsub.f32 %v2562_v13, %v2568_v23 }
 0xab2   : > { %v2570_v27 = vmul.f32 1.442695, %v2569_v26 }
 0xab4   : > { %3524 = vpow2.f32 %v2570_v27 }
 0xab9   : > { %v1979_v29 = vpop.f32.mrb[18].mxu1 }
 0xaba   : > { %v1983_v30 = vadd.f32 %v1979_v29, %v1733_v2  ;;  %v3177_v31 = vpop.f32.mrb[19].mxu1 }
 0xabd   : > { %v2152_v32 = vpop.f32.mrb[20].mxu1 }
 0xabe   : > { %v3525_v33 = vpop.eup %3524  ;;  %v3191_v35 = vpop.f32.mrb[21].mxu1  ;;  %3195 = vmatmul.mubr.msk.f32.vlgmr.msra.gmra.mrb[22].mxu1 %vm740_vm2, %v2152_v32 }
 0xabf   : > { %v2572_v36 = vsel %vm820_vm4, %v3525_v33, 0.0  ;;  %3208 = vmatprep.mubr.msk.f32.mxu1 %vm3772_vm0, %v3773_v1 }
 0xac0   : > { %2573 = vadd.xlane.f32.xlu1 %v2572_v36 }
 0xad1   : > { %3494 = vrot.lane.b32.xlu1 %v4156_v54, %s3780_s11  ;;  %s3678_s11 = scalar_lea.vmem %s3677_s20, 256 }
 0xad2   : > { %p3680_p5 = scmp.lt.s32.totalorder %s3678_s11, %s3672_s16 }
 0xad4   : > { %p3681_p8 = por %p3680_p5, %p3679_p7 }
 0xad6   : > { %p3682_p3 = pnand %p3681_p8, %p3675_p0 }
 0xb14   : > { %v2324_v37 = vpop.xlane.xlu0 %2323 }
 0xb15   : > { %3526 = vrcp.f32 %v2324_v37 }
 0xb18   : > { %v3490_v28 = vpop.permute.xlu0 %3489 }
 0xb19   : > { %v3492_v38 = vunpack.i.h.bf16 %v3490_v28  ;;  %v3491_v39 = vunpack.i.l.bf16 %v3490_v28 }
 0xb1b   : > { %v3304_v40 = vpack.c.bf16 %v3492_v38, %v3491_v39 }
 0xb1d   : > { %3305 = vmatpush3.bf16.msra.mxu1 %v3304_v40 }
 0xb1e   : > { %3211 = vmatprep.subr.mxu1 %v3773_v1 }
 0xb1f   : > { %v3527_v41 = vpop.eup %3526 }
 0xb20   : > { %v2326_v42 = vmul.f32 %v3527_v41, %v3523_v21 }
 0xb22   : > { %3209 = vmatmul.mubr.msk.f32.vlgmr.msra.gmra.mrb[24].mxu1 %vm820_vm4, %v2326_v42 }
 0xb23   : > { %3212 = vmatpush3.msk.msra.mxu1 %vm1084_vm5, %v2406_v43  ;;  %3213 = vmatprep.mubr.msk.f32.mxu1 %vm3772_vm0, %v3773_v1 }
 0xb24   : > { %3310 = vmatprep.subr.bf16.mxu1 %v3771_v0  ;;  %v2656_v0 = vld [vmem:[#allocation10 + $0x1c] sm:$0xf] }
 0xb4d   : > { %v2574_v46 = vpop.xlane.xlu1 %2573 }
 0xb4e   : > { %3528 = vrcp.f32 %v2574_v46 }
 0xb51   : > { %v3495_v47 = vpop.permute.xlu1 %3494 }
 0xb52   : > { %v3497_v48 = vunpack.i.h.bf16 %v3495_v47  ;;  %v3496_v34 = vunpack.i.l.bf16 %v3495_v47 }
 0xb54   : > { %v3311_v50 = vpack.c.bf16 %v3497_v48, %v3496_v34 }
 0xb58   : > { %v3529_v49 = vpop.eup %3528 }
 0xb59   : > { %v2576_v53 = vmul.f32 %v3529_v49, %v3525_v33 }
 0xb91   : > { %v2229_v54 = vpop.f32.mrb[22].mxu1 }
 0xb92   : > { %v2233_v44 = vadd.f32 %v2229_v54, %v1983_v30  ;;  %v3196_v45 = vpop.f32.mrb[23].mxu1 }
 0xbf5   : > { %v2402_v51 = vpop.f32.mrb[24].mxu1 }
 0xbf6   : > { %v3210_v52 = vpop.f32.mrb[25].mxu1  ;;  %3214 = vmatmul.mubr.msk.f32.vlgmr.msra.gmra.mrb[26].mxu1 %vm740_vm2, %v2402_v51 }
 0xbf7   : > { %3312 = vmatpush3.bf16.msra.mxu1 %v3311_v50  ;;  %3227 = vmatprep.mubr.msk.f32.mxu1 %vm3772_vm0, %v3773_v1 }
 0xbf8   : > { %3230 = vmatprep.subr.mxu1 %v3773_v1 }
 0xbfa   : > { %3228 = vmatmul.mubr.msk.f32.vlgmr.msra.gmra.mrb[28].mxu1 %vm820_vm4, %v2576_v53 }
 0xbfb   : > { %3232 = vmatprep.mubr.msk.f32.mxu1 %vm3772_vm0, %v3773_v1  ;;  %3231 = vmatpush3.msk.msra.mxu1 %vm1084_vm5, %v2656_v0 }
 0xcc9   : > { %v2479_v55 = vpop.f32.mrb[26].mxu1 }
 0xcca   : > { %v2483_v56 = vadd.f32 %v2479_v55, %v2233_v44  ;;  %v3215_v25 = vpop.f32.mrb[27].mxu1 }
 0xccd   : > { %v2652_v57 = vpop.f32.mrb[28].mxu1 }
 0xcce   : > { %v3229_v58 = vpop.f32.mrb[29].mxu1  ;;  %3233 = vmatmul.mubr.msk.f32.vlgmr.msra.gmra.mrb[30].mxu1 %vm740_vm2, %v2652_v57 }
 0xda1   : > { %v2729_v59 = vpop.f32.mrb[30].mxu1 }
 0xda2   : > { %v2733_v61 = vadd.f32 %v2729_v59, %v2483_v56  ;;  %v3234_v62 = vpop.f32.mrb[31].mxu1 }
 0xda4   : > { %v2741_v1 = vadd.f32 %v2964_v60, %v2733_v61 }
 0xda6   : > { %v2742_v63 = vadd.f32 %v2741_v1, %v4105_v16 }
 0xda8   : > { %2743 = vst.msk [vmem:[%s465_s28] sm:$0xff] %vm488_vm1, %v2742_v63 }
 0xda9   : > { %3685 = shalt.err (!%p3682_p3)
}
 0xdaa   : > { %s3686_s2 = scalar_lea.hbm %s4325_s8, 128  ;;  %s3690_s29 = scalar_lea.hbm %s4416_s6, 256 }
 0xdab   : > { %p3687_p11 = scmp.ne.s32.totalorder %s4325_s8, %s3686_s2  ;;  %p3691_p12 = scmp.lt.u32.totalorder %s4325_s8, %s4416_s6 }
 0xdac   : > { %p3692_p4 = scmp.lt.u32.totalorder %s3690_s29, %s3686_s2  ;;  %p3694_p2 = scmp.lt.u32.totalorder %s3686_s2, %s4325_s8 }
 0xdad   : > { %p3688_p6 = pnand %p3687_p11, %p4417_p10 }
 0xdae   : > { %p3693_p9 = por %p3692_p4, %p3691_p12 }
 0xdaf   : > { %p3689_p13 = pneg %p3688_p6 }
 0xdb0   : > { %p3695_p1 = por %p3694_p2, %p3693_p9 }
 0xdb2   : > { %p3696_p0 = pnand %p3695_p1, %p3689_p13 }
 0xdb4   : > { %3699 = shalt.err (!%p3696_p0)
}
 0xdb5   : > { %3331 = dma.vmem_to_hbm [thread:$0]  (%p4417_p10), %s4327_s26, 128, %s4325_s8, %s2745_s30  }
 0xdb6 PF: > { %s2771_s21 = sand.u32 1, %s3742_s13   ;;  %p4418_p7 = scmp.ne.s32.totalorder %s4407_s25, 0 }
 0xdb7   : > { %p4419_p5 = scmp.ge.s32.totalorder %s3762_s18, 2  ;;  %s2772_s9 = scalar_lea.sflag [#allocation4], %s2771_s21 }
 0xdb9   : > { %p3351_p8 = pnand %p4419_p5, %p4418_p7 }
 0xdbb   : > { %3737 = dma.done.wait (!%p3351_p8), %s2772_s9, 128  }
 0xdbc   : > { %3739 = vsyncadd (!%p3351_p8), %s2772_s9, 4294967168  ;;  %s28_s18 = sadd.s32 1, %s3762_s18   ;;  %s4420_s13 = smov %s3746_s14 }
 0xdbd   : > { %p25_p3 = scmp.ge.s32.totalorder %s28_s18, 4   ;;  %s4421_s14 = smov %s3750_s15 }
 0xdbe   : > { %s4422_s15 = smov %s4025_s22  ;;  %s4423_s16 = smov %s3758_s17 }
 0xdbf   : > { %s4424_s17 = smov %s4426_s24  ;;  %27 = sbr.rel (!%p25_p3) target bundleno = 14 (0xe), region = 124 }
 0xdc6   :  { %2777 = vsyncpa [#allocation3], 1 }
 0xdc7   :  { %2779 = vsyncpa [#allocation3 + $0x1], 1 }
 0xdc8   :  { %2780 = vsyncpa [#allocation6], 1 }
 0xdc9   :  { %2781 = vsyncpa [#allocation9], 1 }
 0xdca   :  { %2782 = vsyncpa [#allocation4], 1 }
 0xdcb   :  { %2784 = vsyncpa [#allocation4 + $0x1], 1 }

// kernel: tpu_custom_call.1
= control target key start
LH: loop header
LB: loop body
LE: loop exit
PB: predicated region body
PF: predicated region fallthrough
CT: control target
= control target key end

     0   :  { %s4375_s0 = inlined_call_operand.hbm [shape: f32[16,32], index: 0, kind: input, shape index: {}, may-alias: {0,10}]   ;;  %s4376_s1 = inlined_call_operand.vmem [shape: f32[32,32], index: 1, kind: input, shape index: {}]   ;;  %s4377_s2 = inlined_call_operand.hbm [shape: f32[32,32], index: 2, kind: input, shape index: {}]   ;;  %s4378_s3 = inlined_call_operand.hbm [shape: f32[32,32], index: 3, kind: input, shape index: {}]   ;;  %s4379_s4 = inlined_call_operand.hbm [shape: f32[32,32], index: 4, kind: input, shape index: {}]   ;;  %s4380_s5 = inlined_call_operand.hbm [shape: f32[32,32], index: 5, kind: input, shape index: {}]   ;;  %s4381_s6 = inlined_call_operand.vmem [shape: f32[1,32], index: 6, kind: input, shape index: {}]   ;;  %s4382_s7 = inlined_call_operand.vmem [shape: f32[1,32], index: 7, kind: input, shape index: {}]   ;;  %s4383_s8 = inlined_call_operand.vmem [shape: f32[1,32], index: 8, kind: input, shape index: {}]   ;;  %s4384_s9 = inlined_call_operand.vmem [shape: f32[1,32], index: 9, kind: input, shape index: {}]   ;;  %s4385_s10 = inlined_call_operand.hbm [shape: f32[16,32], index: 10, kind: output, shape index: {}, may-alias: {0,10}]  }
   0x1   :  { %4392 = sst [smem:[#allocation16_spill]] %s4377_s2 }
   0x2   :  { %4393 = sst [smem:[#allocation17_spill]] %s4381_s6 }
   0x3   :  { %4394 = sst [smem:[#allocation18_spill]] %s4383_s8 }
   0x4   :  { %4395 = sst [smem:[#allocation19_spill]] %s4384_s9 }
   0x5   :  { %4396 = sst [smem:[#allocation20_spill]] %s4385_s10 }
   0x6   :  { %15 = vsyncpa [#allocation3], 0 }
   0x7   :  { %17 = vsyncpa [#allocation3 + $0x1], 0 }
   0x8   :  { %18 = vsyncpa [#allocation6], 0 }
   0x9   :  { %19 = vsyncpa [#allocation9], 0 }
   0xa   :  { %20 = vsyncpa [#allocation4], 0 }
   0xb   :  { %22 = vsyncpa [#allocation4 + $0x1], 0  ;;  %s3837_s13 = smov 0   ;;  %s3839_s14 = smov 0  }
   0xc   :  { %s3841_s15 = smov 0   ;;  %s3843_s16 = smov 0  }
   0xd   :  { %s3845_s17 = smov 0   ;;  %s3847_s18 = smov 0  }
   0xe LB: > { %s4386_s19 = sadd.s32 4294967295, %s3762_s18   ;;  %p2891_p0 = scmp.ge.s32.totalorder %s3762_s18, 1  ;;  %s3762_s18 = sphi %s3847_s18, %s28_s18   ;;  %s3758_s17 = sphi %s3845_s17, %s4424_s17   ;;  %s3754_s16 = sphi %s3843_s16, %s4423_s16   ;;  %s3750_s15 = sphi %s3841_s15, %s4422_s15   ;;  %s3746_s14 = sphi %s3839_s14, %s4421_s14   ;;  %s3742_s13 = sphi %s3837_s13, %s4420_s13  }
   0xf   : > { %p3871_p1 = scmp.eq.s32.totalorder %s4386_s19, 0  ;;  %p295_p2 = scmp.lt.s32.totalorder %s3762_s18, 3 }
  0x10   : > { %s3764_s22 = smov [#allocation5]   ;;  %s3765_s25 = smov [#allocation8]  }
  0x11   : > { %s4397_s20 = scalar_select %p3871_p1, 1, 0 }
  0x12   : > { %p3876_p3 = pnand %p2891_p0, %p295_p2  ;;  %s307_s23 = sshll.u32 %s3764_s22, 4  ;;  %s3880_s23 = int_to_ptr.vmem [resolvable:$true] %s307_s23 }
  0x13   : > { %s333_s26 = sshll.u32 %s3765_s25, 4  ;;  %s3766_s27 = smov [#allocation7]   ;;  %s3891_s26 = int_to_ptr.vmem [resolvable:$true] %s333_s26 }
  0x14   : > { %s4398_s21 = scalar_select %p3876_p3, 1, 0 }
  0x15   : > { %p3333_p4 = pneg %p3876_p3  ;;  %s3893_s28 = sshll.u32 %s3766_s27, 4  ;;  %s321_s28 = int_to_ptr.vmem [resolvable:$true] %s3893_s28 }
  0x16   : > { %s4400_s2 = sld [smem:[#allocation16_spill]] }
  0x17   : > { %p3887_p6 = pnand %p3333_p4, %p3871_p1 }
  0x19   : > { %p3903_p8 = pneg %p3887_p6 }
  0x1c   : > { %s3530_s11 = scalar_lea.hbm %s4400_s2, 512 }
  0x1d   : > { %p3531_p7 = scmp.ne.s32.totalorder %s4400_s2, %s3530_s11  ;;  %p3537_p11 = scmp.lt.u32.totalorder %s3530_s11, %s4400_s2 }
  0x1f   : > { %p3533_p9 = pnand %p3903_p8, %p3531_p7 }
  0x21   : > { %p3534_p10 = pneg %p3533_p9 }
  0x23   : > { %p3539_p12 = pnand %p3537_p11, %p3534_p10 }
  0x25   : > { %3542 = shalt.err (!%p3539_p12)
}
  0x26   : > { %s3543_s29 = scalar_lea.vmem %s3880_s23, 512  ;;  %p3551_p4 = scmp.lt.s32.totalorder %s3880_s23, %s3880_s23 }
  0x27   : > { %p3544_p13 = scmp.ne.s32.totalorder %s3880_s23, %s3543_s29  ;;  %p3552_p5 = scmp.lt.s32.totalorder %s3543_s29, %s3543_s29 }
  0x29   : > { %p3546_p0 = pnand %p3544_p13, %p3903_p8  ;;  %p3553_p7 = por %p3552_p5, %p3551_p4 }
  0x2b   : > { %p3547_p2 = pneg %p3546_p0 }
  0x2d   : > { %p3554_p9 = pnand %p3553_p7, %p3547_p2 }
  0x2f   : > { %3557 = shalt.err (!%p3554_p9)
}
  0x30   : > { %s3767_s30 = smov 128   ;;  %s3768_s11 = smov 8  }
  0x31   : > { %3336 = dma.hbm_to_vmem [thread:$0]  (!%p3887_p6), %s4400_s2, 512, %s3880_s23, [#allocation6], %s3767_s30, %s3767_s30, %s3768_s11  }
  0x32   : > { %s3558_s29 = scalar_lea.hbm %s4379_s4, 512 }
  0x33   : > { %p3559_p5 = scmp.ne.s32.totalorder %s4379_s4, %s3558_s29  ;;  %p3565_p12 = scmp.lt.u32.totalorder %s3558_s29, %s4379_s4 }
  0x35   : > { %p3561_p10 = pnand %p3559_p5, %p3903_p8 }
  0x37   : > { %p3562_p11 = pneg %p3561_p10 }
  0x39   : > { %p3567_p13 = pnand %p3565_p12, %p3562_p11 }
  0x3b   : > { %3570 = shalt.err (!%p3567_p13)
}
  0x3c   : > { %s3571_s23 = scalar_lea.vmem %s3891_s26, 512  ;;  %p3579_p7 = scmp.lt.s32.totalorder %s3891_s26, %s3891_s26 }
  0x3d   : > { %p3572_p0 = scmp.ne.s32.totalorder %s3891_s26, %s3571_s23  ;;  %p3580_p9 = scmp.lt.s32.totalorder %s3571_s23, %s3571_s23 }
  0x3f   : > { %p3574_p2 = pnand %p3572_p0, %p3903_p8  ;;  %p3581_p5 = por %p3580_p9, %p3579_p7 }
  0x41   : > { %p3575_p4 = pneg %p3574_p2 }
  0x43   : > { %p3582_p10 = pnand %p3581_p5, %p3575_p4 }
  0x45   : > { %3585 = shalt.err (!%p3582_p10)
}
  0x46   : > { %3342 = dma.hbm_to_vmem [thread:$0]  (!%p3887_p6), %s4379_s4, 512, %s3891_s26, [#allocation9], %s3767_s30, %s3767_s30, %s3768_s11  }
  0x47   : > { %s3586_s12 = scalar_lea.hbm %s4378_s3, 512 }
  0x48   : > { %p3587_p11 = scmp.ne.s32.totalorder %s4378_s3, %s3586_s12  ;;  %p3593_p0 = scmp.lt.u32.totalorder %s3586_s12, %s4378_s3 }
  0x4a   : > { %p3589_p12 = pnand %p3587_p11, %p3903_p8 }
  0x4c   : > { %p3590_p13 = pneg %p3589_p12 }
  0x4e   : > { %p3595_p2 = pnand %p3593_p0, %p3590_p13 }
  0x50   : > { %3598 = shalt.err (!%p3595_p2)
}
  0x51   : > { %s3599_s23 = scalar_lea.vmem %s321_s28, 512  ;;  %p3607_p5 = scmp.lt.s32.totalorder %s321_s28, %s321_s28 }
  0x52   : > { %p3600_p4 = scmp.ne.s32.totalorder %s321_s28, %s3599_s23  ;;  %p3608_p10 = scmp.lt.s32.totalorder %s3599_s23, %s3599_s23 }
  0x54   : > { %p3602_p7 = pnand %p3600_p4, %p3903_p8  ;;  %p3609_p3 = por %p3608_p10, %p3607_p5 }
  0x56   : > { %p3603_p9 = pneg %p3602_p7 }
  0x58   : > { %p3610_p1 = pnand %p3609_p3, %p3603_p9 }
  0x5a   : > { %3613 = shalt.err (!%p3610_p1)
}
  0x5b   : > { %3339 = dma.hbm_to_vmem [thread:$0]  (!%p3887_p6), %s4378_s3, 512, %s321_s28, [#allocation6], %s3767_s30, %s3767_s30, %s3768_s11  }
  0x5c   : > { %s3769_s8 = smov [#allocation10]   ;;  %s3614_s22 = scalar_lea.hbm %s4380_s5, 512 }
  0x5d   : > { %s346_s9 = sshll.u32 %s3769_s8, 4  ;;  %p3615_p1 = scmp.ne.s32.totalorder %s4380_s5, %s3614_s22  ;;  %s347_s9 = int_to_ptr.vmem [resolvable:$true] %s346_s9 }
  0x5e   : > { %p3621_p12 = scmp.lt.u32.totalorder %s3614_s22, %s4380_s5 }
  0x5f   : > { %p3617_p3 = pnand %p3615_p1, %p3903_p8 }
  0x61   : > { %p3618_p11 = pneg %p3617_p3 }
  0x63   : > { %p3623_p13 = pnand %p3621_p12, %p3618_p11 }
  0x65   : > { %3626 = shalt.err (!%p3623_p13)
}
  0x66   : > { %s3627_s28 = scalar_lea.vmem %s347_s9, 512  ;;  %p3635_p7 = scmp.lt.s32.totalorder %s347_s9, %s347_s9 }
  0x67   : > { %p3628_p0 = scmp.ne.s32.totalorder %s347_s9, %s3627_s28  ;;  %p3636_p9 = scmp.lt.s32.totalorder %s3627_s28, %s3627_s28 }
  0x69   : > { %p3630_p2 = pnand %p3628_p0, %p3903_p8  ;;  %p3637_p5 = por %p3636_p9, %p3635_p7 }
  0x6b   : > { %p3631_p4 = pneg %p3630_p2 }
  0x6d   : > { %p3638_p10 = pnand %p3637_p5, %p3631_p4 }
  0x6f   : > { %3641 = shalt.err (!%p3638_p10)
}
  0x70   : > { %3345 = dma.hbm_to_vmem [thread:$0]  (!%p3887_p6), %s4380_s5, 512, %s347_s9, [#allocation9], %s3767_s30, %s3767_s30, %s3768_s11  }
  0x71   : > { %s2890_s19 = sadd.s32 4294967294, %s3762_s18   ;;  %s40_s24 = sadd.s32 1, %s3758_s17 }
  0x72   : > { %p42_p8 = scmp.ge.s32.totalorder %s40_s24, 2  ;;  %s49_s8 = sadd.s32 1, %s3750_s15 }
  0x73   : > { %p56_p1 = scmp.ne.s32.totalorder %s3750_s15, %s3746_s14  ;;  %p57_p3 = scmp.eq.s32.totalorder %s3762_s18, 0 }
  0x74   : > { %s4426_s24 = smov (%p42_p8, %s40_s24), 0  ;;  %p62_p12 = scmp.ne.s32.totalorder %s3746_s14, %s3742_s13 }
  0x75   : > { %p4004_p11 = por %p57_p3, %p56_p1  ;;  %s46_s30 = ssub.s32 %s3758_s17, %s4426_s24 }
  0x76   : > { %s4403_s11 = sadd.s32 4294967295, %s3762_s18   ;;  %p47_p13 = scmp.eq.s32.totalorder %s46_s30, 0 }
  0x77   : > { %p282_p6 = scmp.eq.s32.totalorder %s4403_s11, 1  ;;  %p4404_p0 = scmp.ne.s32.totalorder %s4397_s20, 0 }
  0x78   : > { %p288_p7 = scmp.eq.s32.totalorder %s2890_s19, 1  ;;  %p3358_p5 = scmp.lt.s32.totalorder %s3762_s18, 2 }
  0x79   : > { %p4016_p2 = por %p4404_p0, %p62_p12  ;;  %p4020_p4 = por %p282_p6, %p56_p1 }
  0x7a   : > { %s4025_s22 = scalar_select %p47_p13, %s3750_s15, %s49_s8  }
  0x7b   : > { %s4406_s12 = scalar_select %p4020_p4, 1, 0 }
  0x7c   : > { %p4027_p9 = por %p288_p7, %p62_p12  ;;  %s372_s27 = sand.u32 1, %s3750_s15  }
  0x7d   : > { %s2898_s29 = sshll.u32 %s3758_s17, 7  ;;  %s2897_s23 = sshll.u32 %s372_s27, 3 }
  0x7e   : > { %s4407_s25 = scalar_select %p4027_p9, 1, 0 }
  0x7f   : > { %s4037_s6 = scalar_lea.hbm %s4375_s0, %s2898_s29  ;;  %s376_s19 = scalar_lea.vmem [#allocation2], %s2897_s23 }
  0x80   : > { %s384_s8 = sshll.u32 %s376_s19, 4  ;;  %p4041_p10 = pnand %p3358_p5, %p4004_p11  ;;  %s4045_s8 = int_to_ptr.vmem [resolvable:$true] %s384_s8 }
  0x81   : > { %s373_s11 = scalar_lea.sflag [#allocation3], %s372_s27  ;;  %s3642_s2 = scalar_lea.hbm %s4037_s6, 128 }
  0x82   : > { %p3643_p8 = scmp.ne.s32.totalorder %s4037_s6, %s3642_s2  ;;  %p3644_p1 = pneg %p4041_p10 }
  0x83   : > { %s3647_s10 = scalar_lea.hbm %s4375_s0, 256  ;;  %p3648_p11 = scmp.lt.u32.totalorder %s4037_s6, %s4375_s0 }
  0x84   : > { %p3645_p3 = pnand %p3644_p1, %p3643_p8  ;;  %p3649_p6 = scmp.lt.u32.totalorder %s3647_s10, %s3642_s2 }
  0x85   : > { %p3651_p0 = scmp.lt.u32.totalorder %s3642_s2, %s4037_s6 }
  0x86   : > { %p3646_p12 = pneg %p3645_p3  ;;  %p3650_p13 = por %p3649_p6, %p3648_p11 }
  0x88   : > { %p3652_p7 = por %p3651_p0, %p3650_p13 }
  0x8a   : > { %p3653_p5 = pnand %p3652_p7, %p3646_p12 }
  0x8c   : > { %3656 = shalt.err (!%p3653_p5)
}
  0x8d   : > { %s3657_s27 = scalar_lea.vmem %s4045_s8, 128  ;;  %s3770_s19 = smov [#allocation2]  }
  0x8e   : > { %p3658_p8 = scmp.ne.s32.totalorder %s4045_s8, %s3657_s27  ;;  %s3662_s29 = sshll.u32 %s3770_s19, 4  ;;  %s3663_s29 = int_to_ptr.vmem [resolvable:$false] %s3662_s29 }
  0x8f   : > { %s3664_s23 = scalar_lea.vmem %s3663_s29, 256  ;;  %p3665_p4 = scmp.lt.s32.totalorder %s4045_s8, %s3663_s29 }
  0x90   : > { %p3660_p3 = pnand %p3658_p8, %p3644_p1  ;;  %p3666_p11 = scmp.lt.s32.totalorder %s3664_s23, %s3657_s27 }
  0x92   : > { %p3661_p9 = pneg %p3660_p3  ;;  %p3667_p6 = por %p3666_p11, %p3665_p4 }
  0x94   : > { %p3668_p13 = pnand %p3667_p6, %p3661_p9 }
  0x96   : > { %3671 = shalt.err (!%p3668_p13)
}
  0x97   : > { %3349 = dma.hbm_to_vmem [thread:$0]  (!%p4041_p10), %s4037_s6, 128, %s4045_s8, %s373_s11  }
  0x98   : > { %p4409_p12 = scmp.ne.s32.totalorder %s4398_s21, 0 }
  0x99   : > { %s4075_s2 = sand.u32 (!%p4409_p12), 1, %s3746_s14  }
  0x9a   : > { %402 = sbr.rel (%p4409_p12) target bundleno = 3510 (0xdb6), region = 60  ;;  %s2900_s10 = sshll.u32 (!%p4409_p12), %s4075_s2, 3 }
  0x9b   : > { %s405_s28 = scalar_lea.sflag (!%p4409_p12), [#allocation3], %s4075_s2  ;;  %s4081_s26 = scalar_lea.vmem (!%p4409_p12), [#allocation2], %s2900_s10 }
  0xa1   : > { %3725 = dma.done.wait (%p4016_p2), %s405_s28, 128  }
  0xa2   : > { %3727 = vsyncadd (%p4016_p2), %s405_s28, 4294967168  ;;  %p4410_p4 = scmp.ne.s32.totalorder %s4397_s20, 0 }
  0xa4   : > { %3729 = dma.done.wait (%p4410_p4), [#allocation6], 1024  }
  0xa5   : > { %3731 = vsyncadd (%p4410_p4), [#allocation6], 4294966272 }
  0xa6   : > { %3733 = dma.done.wait (%p4410_p4), [#allocation9], 1024  }
  0xa7   : > { %3735 = vsyncadd (%p4410_p4), [#allocation9], 4294966272  ;;  %s2906_s21 = sshll.u32 %s3754_s16, 1  ;;  %v3771_v0 = vmov 0.0|0.0   ;;  %vm3772_vm0 = vmmov 0   ;;  %v3773_v1 = vmov 0.0  }
  0xa8   : > { %p468_p9 = scmp.lt.s32.totalorder %s2906_s21, 3  ;;  %3235 = vmatprep.subr.bf16.mxu0 %v3771_v0  ;;  %3058 = vmatprep.mubr.msk.f32.mxu0 %vm3772_vm0, %v3773_v1  ;;  %vm488_vm1 = vcmask 261120   ;;  %v562_v2 = vld [vmem:[#allocation7] sm:$0xff]  ;;  %v563_v3 = vld [vmem:[#allocation7 + $0x8] sm:$0xff]  ;;  %v564_v4 = vld [vmem:[#allocation7 + $0x10] sm:$0xff]  ;;  %vm740_vm2 = vcmask 31744  }
  0xa9   : > { %v3241_v5 = vpack.c.bf16 %v563_v3, %v562_v2  ;;  %v565_v6 = vld [vmem:[#allocation7 + $0x18] sm:$0xff]  ;;  %v477_v9 = vld [vmem:[#allocation5] sm:$0xff]  ;;  %v478_v10 = vld [vmem:[#allocation5 + $0x8] sm:$0xff]  ;;  %s4413_s29 = sld [smem:[#allocation17_spill]]  ;;  %s3774_s23 = smov 124   ;;  %vm820_vm4 = vcmask 130048  }
  0xaa   : > { %s4428_s21 = smov (!%p468_p9, %s2906_s21), 3  ;;  %v3245_v8 = vpack.c.bf16 %v565_v6, %v564_v4  ;;  %v479_v11 = vld [vmem:[#allocation5 + $0x10] sm:$0xff]  ;;  %v3236_v12 = vpack.c.bf16 %v478_v10, %v477_v9  ;;  %v480_v13 = vld [vmem:[#allocation5 + $0x18] sm:$0xff]  ;;  %vm4119_vm3 = vmpackc.low %vm740_vm2, %vm740_vm2  ;;  %s3776_s6 = smov 120   ;;  %vm1084_vm5 = vcmask 1043456  }
  0xab   : > { %s2907_s9 = sshll.u32 %s4428_s21, 3  ;;  %3242 = vmatprep.subr.bf16.mxu1 %v3241_v5  ;;  %v3239_v14 = vpack.c.bf16 %v480_v13, %v479_v11  ;;  %v4105_v16 = vld [vmem:[%s4081_s26] sm:$0xff]  ;;  %v654_v29 = vld [vmem:[#allocation8] sm:$0xff]  ;;  %v655_v30 = vld [vmem:[#allocation8 + $0x8] sm:$0xff]  ;;  %s4414_s21 = sld [smem:[#allocation18_spill]] }
  0xac   : > { %s471_s30 = scalar_lea.vmem %s4376_s1, %s2907_s9  ;;  %3244 = vmatpush3.bf16.msra.mxu1 %v3241_v5  ;;  %3237 = vmatpush3.bf16.msra.mxu0 %v3236_v12  ;;  %v2910_v17 = vld [vmem:[%s4382_s7] ss:$0 sm:$0xff]  ;;  %v3249_v32 = vpack.c.bf16 %v655_v30, %v654_v29  ;;  %v657_v33 = vld [vmem:[#allocation8 + $0x18] sm:$0xff]  ;;  %s3775_s9 = smov 116   ;;  %v905_v4 = vld [vmem:[#allocation10] sm:$0xf] }
  0xad   : > { %v475_v7 = vld [vmem:[%s471_s30] sm:$0xff]  ;;  %3246 = vmatprep.subr.bf16.mxu1 %v3245_v8  ;;  %3238 = vmatprep.subr.bf16.mxu0 %v3771_v0  ;;  %v476_v15 = vld [vmem:[%s471_s30 + $0x8] sm:$0xff]  ;;  %v1080_v12 = vld [vmem:[#allocation10 + $0x4] sm:$0xf]  ;;  %s3777_s8 = smov 112   ;;  %s3778_s30 = smov 108  }
  0xae   : > { %3069 = vmatprep.mubr.msk.f32.mxu1 %vm488_vm1, %v475_v7  ;;  %v656_v31 = vld [vmem:[#allocation8 + $0x10] sm:$0xff]  ;;  %s3779_s20 = smov 104   ;;  %s3780_s11 = smov 100  }
  0xaf   : > { %v2908_v27 = vld [vmem:[%s4413_s29] ss:$0 sm:$0xff]  ;;  %v3253_v34 = vpack.c.bf16 %v657_v33, %v656_v31  ;;  %s4415_s29 = sld [smem:[#allocation19_spill]]  ;;  %s465_s28 = scalar_lea.vmem [#allocation11], %s2900_s10 }
  0xb0   : > { %3248 = vmatpush3.bf16.msra.mxu1 %v3245_v8  ;;  %3240 = vmatpush3.bf16.msra.mxu0 %v3239_v14  ;;  %s2759_s26 = sshll.u32 %s465_s28, 4  ;;  %p4417_p10 = scmp.ne.s32.totalorder %s4406_s12, 0  ;;  %s4327_s26 = int_to_ptr.vmem [resolvable:$true] %s2759_s26 }
  0xb1   : > { %3257 = vmatprep.subr.bf16.mxu1 %v3771_v0  ;;  %3250 = vmatprep.subr.bf16.mxu0 %v3249_v32  ;;  %v2913_v50 = vld [vmem:[%s4414_s21] ss:$0 sm:$0xff]  ;;  %s3781_s10 = smov [#allocation11]  }
  0xb3   : > { %3070 = vmatmul.mubr.msk.f32.vlgmr.msra.gmra.mrb[0].mxu1 %vm488_vm1, %v476_v15  ;;  %3059 = vmatmul.mubr.msk.f32.vlgmr.msra.gmra.mrb[0].mxu0 %vm488_vm1, %v4105_v16 }
  0xb4   : > { %3087 = vmatprep.mubr.msk.f32.mxu1 %vm3772_vm0, %v3773_v1  ;;  %3080 = vmatprep.mubr.msk.f32.mxu0 %vm488_vm1, %v475_v7 }
  0xb5   : > { %3252 = vmatpush3.bf16.msra.mxu0 %v3249_v32 }
  0xb6   : > { %3254 = vmatprep.subr.bf16.mxu0 %v3253_v34 }
  0xb9   : > { %3256 = vmatpush3.bf16.msra.mxu0 %v3253_v34 }
  0xba   : > { %3261 = vmatprep.subr.bf16.mxu0 %v3771_v0 }
  0xbc   : > { %3081 = vmatmul.mubr.msk.f32.vlgmr.msra.gmra.mrb[2].mxu0 %vm488_vm1, %v476_v15 }
  0xbd   : > { %3094 = vmatprep.mubr.msk.f32.mxu0 %vm3772_vm0, %v3773_v1 }
 0x186   : > { %v3071_v18 = vpop.f32.mrb[0].mxu1  ;;  %v558_v21 = vpop.f32.mrb[0].mxu0 }
 0x187   : > { %v651_v19 = vadd.f32 %v3071_v18, %v2910_v17  ;;  %v645_v20 = vpop.f32.mrb[1].mxu1  ;;  %v3060_v23 = vpop.f32.mrb[1].mxu0  ;;  %v4133_v28 = vadd.f32 %v2908_v27, %v558_v21 }
 0x188   : > { %v646_v22 = vadd.f32 %v2910_v17, %v645_v20 }
 0x18a   : > { %v4123_v25 = vpack.i.bf16 %v651_v19, %v646_v22  ;;  %v3258_v26 = vpack.c.bf16 %v651_v19, %v646_v22 }
 0x18c   : > { %3429 = vrot.lane.b32.xlu0 %v4123_v25, %s3774_s23  ;;  %3260 = vmatpush3.bf16.xpose.msk.msra.mxu1 %vm4119_vm3, %v3258_v26 }
 0x18d   : > { %3264 = vmatprep.subr.bf16.mxu1 %v3771_v0 }
 0x18f   : > { %v3082_v49 = vpop.f32.mrb[2].mxu0 }
 0x190   : > { %906 = vrot.lane.b32.xlu0 %v4133_v28, %s3774_s23  ;;  %v737_v51 = vadd.f32 %v3082_v49, %v2913_v50  ;;  %v731_v52 = vpop.f32.mrb[3].mxu0 }
 0x191   : > { %v732_v53 = vadd.f32 %v2913_v50, %v731_v52 }
 0x193   : > { %3088 = vmatmul.mubr.msk.f32.vlgmr.msra.gmra.mrb[2].mxu1 %vm740_vm2, %v4133_v28  ;;  %v4156_v54 = vpack.i.bf16 %v737_v51, %v732_v53  ;;  %v3262_v57 = vpack.c.bf16 %v737_v51, %v732_v53 }
 0x194   : > { %3101 = vmatprep.mubr.msk.f32.mxu1 %vm3772_vm0, %v3773_v1 }
 0x195   : > { %3263 = vmatpush3.bf16.msra.mxu0 %v3262_v57 }
 0x196   : > { %3268 = vmatprep.subr.bf16.mxu0 %v3771_v0 }
 0x1fe   : > { %v3430_v35 = vpop.permute.xlu0 %3429 }
 0x1ff   : > { %v3432_v36 = vunpack.i.h.bf16 %v3430_v35  ;;  %v3431_v37 = vunpack.i.l.bf16 %v3430_v35 }
 0x201   : > { %v3265_v38 = vpack.c.bf16 %v3432_v36, %v3431_v37 }
 0x202   : > { %v907_v39 = vpop.permute.xlu0 %906 }
 0x203   : > { %3267 = vmatpush3.bf16.xpose.msk.msra.mxu1 %vm4119_vm3, %v3265_v38 }
 0x204   : > { %3116 = vmatprep.subr.mxu1 %v3773_v1 }
 0x20a   : > { %3102 = vmatmul.mubr.msk.f32.vlgmr.msra.gmra.mrb[4].mxu1 %vm740_vm2, %v907_v39 }
 0x20b   : > { %3118 = vmatprep.mubr.msk.f32.mxu1 %vm3772_vm0, %v3773_v1  ;;  %3117 = vmatpush3.msk.msra.mxu1 %vm1084_vm5, %v905_v4 }
 0x20c   : > { %3275 = vmatprep.subr.bf16.mxu1 %v3771_v0 }
 0x266   : > { %v816_v40 = vpop.f32.mrb[2].mxu1 }
 0x267   : > { %v821_v41 = vsel %vm820_vm4, %v816_v40, -inf  ;;  %v3089_v42 = vpop.f32.mrb[3].mxu1 }
 0x268   : > { %822 = vmax.xlane.f32.xlu1 %v821_v41 }
 0x2dd   : > { %v984_v43 = vpop.f32.mrb[4].mxu1 }
 0x2de   : > { %v3103_v44 = vpop.f32.mrb[5].mxu1  ;;  %v988_v45 = vsel %vm820_vm4, %v984_v43, -inf }
 0x2df   : > { %989 = vmax.xlane.f32.xlu1 %v988_v45 }
 0x2f5   : > { %v823_v46 = vpop.xlane.xlu1 %822 }
 0x2f6   : > { %v824_v47 = vsub.f32 %v816_v40, %v823_v46 }
 0x2f8   : > { %v825_v48 = vmul.f32 1.442695, %v824_v47 }
 0x2fa   : > { %3498 = vpow2.f32 %v825_v48 }
 0x304   : > { %v3499_v55 = vpop.eup %3498 }
 0x305   : > { %v827_v56 = vsel %vm820_vm4, %v3499_v55, 0.0 }
 0x306   : > { %828 = vadd.xlane.f32.xlu0 %v827_v56 }
 0x31c   : > { %1484 = vrot.lane.b32.xlu0 %v4133_v28, %s3775_s9 }
 0x36c   : > { %v990_v58 = vpop.xlane.xlu1 %989 }
 0x36d   : > { %v991_v59 = vsub.f32 %v984_v43, %v990_v58 }
 0x36f   : > { %v992_v60 = vmul.f32 1.442695, %v991_v59 }
 0x371   : > { %3500 = vpow2.f32 %v992_v60 }
 0x37b   : > { %v3501_v61 = vpop.eup %3500 }
 0x37c   : > { %v994_v62 = vsel %vm820_vm4, %v3501_v61, 0.0 }
 0x37d   : > { %995 = vadd.xlane.f32.xlu1 %v994_v62 }
 0x38e   : > { %3434 = vrot.lane.b32.xlu1 %v4156_v54, %s3774_s23  ;;  %s2966_s23 = sshll.u32 %s3754_s16, 7  ;;  %s3672_s16 = scalar_lea.vmem %s4327_s26, 128 }
 0x38f   : > { %p3673_p2 = scmp.ne.s32.totalorder %s4327_s26, %s3672_s16 }
 0x391   : > { %p3674_p1 = pnand %p3673_p2, %p4417_p10 }
 0x392   : > { %3439 = vrot.lane.b32.xlu1 %v4123_v25, %s3776_s6 }
 0x393   : > { %v829_v63 = vpop.xlane.xlu0 %828  ;;  %p3675_p0 = pneg %p3674_p1 }
 0x394   : > { %3502 = vrcp.f32 %v829_v63 }
 0x396   : > { %1234 = vrot.lane.b32.xlu1 %v4133_v28, %s3776_s6 }
 0x397   : > { %v1485_v30 = vpop.permute.xlu0 %1484 }
 0x39a   : > { %3444 = vrot.lane.b32.xlu1 %v4123_v25, %s3775_s9 }
 0x39e   : > { %v3503_v2 = vpop.eup %3502 }
 0x39f   : > { %v831_v3 = vmul.f32 %v3503_v2, %v3499_v55 }
 0x3a1   : > { %3095 = vmatmul.mubr.msk.f32.vlgmr.msra.gmra.mrb[4].mxu0 %vm820_vm4, %v831_v3  ;;  %v1406_v3 = vld [vmem:[#allocation10 + $0x8] sm:$0xf] }
 0x3a2   : > { %3108 = vmatprep.mubr.msk.f32.mxu0 %vm3772_vm0, %v3773_v1 }
 0x40a   : > { %v996_v5 = vpop.xlane.xlu1 %995 }
 0x40b   : > { %3504 = vrcp.f32 %v996_v5 }
 0x40e   : > { %v3435_v6 = vpop.permute.xlu1 %3434 }
 0x40f   : > { %v3437_v7 = vunpack.i.h.bf16 %v3435_v6  ;;  %v3436_v8 = vunpack.i.l.bf16 %v3435_v6 }
 0x411   : > { %v3269_v9 = vpack.c.bf16 %v3437_v7, %v3436_v8 }
 0x412   : > { %v3440_v15 = vpop.permute.xlu1 %3439 }
 0x413   : > { %3270 = vmatpush3.bf16.msra.mxu0 %v3269_v9  ;;  %v3442_v18 = vunpack.i.h.bf16 %v3440_v15  ;;  %v3441_v19 = vunpack.i.l.bf16 %v3440_v15 }
 0x414   : > { %3111 = vmatprep.subr.mxu0 %v3773_v1 }
 0x415   : > { %v3505_v10 = vpop.eup %3504  ;;  %v3272_v20 = vpack.c.bf16 %v3442_v18, %v3441_v19 }
 0x416   : > { %v998_v11 = vmul.f32 %v3505_v10, %v3501_v61  ;;  %v1235_v17 = vpop.permute.xlu1 %1234 }
 0x418   : > { %3109 = vmatmul.mubr.msk.f32.vlgmr.msra.gmra.mrb[6].mxu0 %vm820_vm4, %v998_v11 }
 0x419   : > { %3112 = vmatpush3.msk.msra.mxu0 %vm1084_vm5, %v1080_v12  ;;  %3113 = vmatprep.mubr.msk.f32.mxu0 %vm3772_vm0, %v3773_v1 }
 0x41a   : > { %3271 = vmatprep.subr.bf16.mxu0 %v3771_v0  ;;  %v3445_v22 = vpop.permute.xlu1 %3444 }
 0x41b   : > { %v3447_v26 = vunpack.i.h.bf16 %v3445_v22  ;;  %v3446_v27 = vunpack.i.l.bf16 %v3445_v22 }
 0x41d   : > { %v3279_v29 = vpack.c.bf16 %v3447_v26, %v3446_v27  ;;  %v1656_v27 = vld [vmem:[#allocation10 + $0xc] sm:$0xf] }
 0x474   : > { %v901_v13 = vpop.f32.mrb[4].mxu0 }
 0x475   : > { %v3096_v14 = vpop.f32.mrb[5].mxu0  ;;  %3119 = vmatmul.mubr.msk.f32.vlgmr.msra.gmra.mrb[6].mxu1 %vm740_vm2, %v901_v13 }
 0x476   : > { %3132 = vmatprep.mubr.msk.f32.mxu1 %vm3772_vm0, %v3773_v1 }
 0x4eb   : > { %v1076_v21 = vpop.f32.mrb[6].mxu0 }
 0x4ec   : > { %v3110_v23 = vpop.f32.mrb[7].mxu0  ;;  %3114 = vmatmul.mubr.msk.f32.vlgmr.msra.gmra.mrb[8].mxu0 %vm740_vm2, %v1076_v21 }
 0x4ed   : > { %3274 = vmatpush3.bf16.xpose.msk.msra.mxu0 %vm4119_vm3, %v3272_v20  ;;  %3125 = vmatprep.mubr.msk.f32.mxu0 %vm3772_vm0, %v3773_v1 }
 0x4ee   : > { %3278 = vmatprep.subr.bf16.mxu0 %v3771_v0 }
 0x4f4   : > { %3126 = vmatmul.mubr.msk.f32.vlgmr.msra.gmra.mrb[10].mxu0 %vm740_vm2, %v1235_v17 }
 0x4f5   : > { %3281 = vmatpush3.bf16.xpose.msk.msra.mxu0 %vm4119_vm3, %v3279_v29  ;;  %3144 = vmatprep.mubr.msk.f32.mxu0 %vm3772_vm0, %v3773_v1 }
 0x4f6   : > { %3285 = vmatprep.subr.bf16.mxu0 %v3771_v0 }
 0x4fc   : > { %3145 = vmatmul.mubr.msk.f32.vlgmr.msra.gmra.mrb[12].mxu0 %vm740_vm2, %v1485_v30 }
 0x4fd   : > { %3163 = vmatprep.mubr.msk.f32.mxu0 %vm3772_vm0, %v3773_v1 }
 0x548   : > { %v1230_v31 = vpop.f32.mrb[6].mxu1 }
 0x549   : > { %v3120_v32 = vpop.f32.mrb[7].mxu1 }
 0x5bf   : > { %v1154_v33 = vpop.f32.mrb[8].mxu0 }
 0x5c0   : > { %v4200_v34 = vadd.f32 %v1230_v31, %v1154_v33  ;;  %v3115_v35 = vpop.f32.mrb[9].mxu0 }
 0x5c7   : > { %v1312_v36 = vpop.f32.mrb[10].mxu0 }
 0x5c8   : > { %v3127_v37 = vpop.f32.mrb[11].mxu0  ;;  %v1316_v38 = vsel %vm820_vm4, %v1312_v36, -inf }
 0x5c9   : > { %1317 = vmax.xlane.f32.xlu1 %v1316_v38 }
 0x5cf   : > { %v1562_v39 = vpop.f32.mrb[12].mxu0 }
 0x5d0   : > { %v3146_v40 = vpop.f32.mrb[13].mxu0  ;;  %v1566_v41 = vsel %vm820_vm4, %v1562_v39, -inf }
 0x5da   : > { %3449 = vrot.lane.b32.xlu1 %v4156_v54, %s3776_s6  ;;  %s4416_s6 = sld [smem:[#allocation20_spill]] }
 0x5de   : > { %1734 = vrot.lane.b32.xlu1 %v4133_v28, %s3777_s8 }
 0x602   : > { %1567 = vmax.xlane.f32.xlu1 %v1566_v41 }
 0x613   : > { %3459 = vrot.lane.b32.xlu1 %v4156_v54, %s3775_s9 }
 0x617   : > { %1984 = vrot.lane.b32.xlu1 %v4133_v28, %s3778_s30 }
 0x656   : > { %v1318_v42 = vpop.xlane.xlu1 %1317 }
 0x657   : > { %v1319_v43 = vsub.f32 %v1312_v36, %v1318_v42 }
 0x659   : > { %v1320_v44 = vmul.f32 1.442695, %v1319_v43 }
 0x65a   : > { %v3450_v45 = vpop.permute.xlu1 %3449 }
 0x65b   : > { %3506 = vpow2.f32 %v1320_v44  ;;  %v3452_v46 = vunpack.i.h.bf16 %v3450_v45  ;;  %v3451_v47 = vunpack.i.l.bf16 %v3450_v45 }
 0x65d   : > { %v3276_v48 = vpack.c.bf16 %v3452_v46, %v3451_v47 }
 0x65e   : > { %v1735_v51 = vpop.permute.xlu1 %1734 }
 0x65f   : > { %3277 = vmatpush3.bf16.msra.mxu1 %v3276_v48 }
 0x660   : > { %3135 = vmatprep.subr.mxu1 %v3773_v1 }
 0x665   : > { %v3507_v49 = vpop.eup %3506 }
 0x666   : > { %v1322_v50 = vsel %vm820_vm4, %v3507_v49, 0.0 }
 0x667   : > { %1323 = vadd.xlane.f32.xlu0 %v1322_v50 }
 0x67d   : > { %3454 = vrot.lane.b32.xlu0 %v4123_v25, %s3777_s8 }
 0x68f   : > { %v1568_v52 = vpop.xlane.xlu1 %1567 }
 0x690   : > { %v1569_v53 = vsub.f32 %v1562_v39, %v1568_v52 }
 0x692   : > { %v1570_v55 = vmul.f32 1.442695, %v1569_v53 }
 0x693   : > { %v3460_v9 = vpop.permute.xlu1 %3459 }
 0x694   : > { %3508 = vpow2.f32 %v1570_v55  ;;  %v3462_v11 = vunpack.i.h.bf16 %v3460_v9  ;;  %v3461_v12 = vunpack.i.l.bf16 %v3460_v9 }
 0x696   : > { %v3283_v14 = vpack.c.bf16 %v3462_v11, %v3461_v12 }
 0x697   : > { %v1985_v10 = vpop.permute.xlu1 %1984 }
 0x69e   : > { %v3509_v56 = vpop.eup %3508 }
 0x69f   : > { %v1572_v57 = vsel %vm820_vm4, %v3509_v56, 0.0 }
 0x6a0   : > { %1573 = vadd.xlane.f32.xlu0 %v1572_v57 }
 0x6b6   : > { %3464 = vrot.lane.b32.xlu0 %v4123_v25, %s3778_s30 }
 0x6f4   : > { %v1324_v58 = vpop.xlane.xlu0 %1323 }
 0x6f5   : > { %3510 = vrcp.f32 %v1324_v58 }
 0x6f8   : > { %v3455_v59 = vpop.permute.xlu0 %3454 }
 0x6f9   : > { %v3457_v60 = vunpack.i.h.bf16 %v3455_v59  ;;  %v3456_v61 = vunpack.i.l.bf16 %v3455_v59 }
 0x6fb   : > { %v3286_v62 = vpack.c.bf16 %v3457_v60, %v3456_v61 }
 0x6fd   : > { %3288 = vmatpush3.bf16.xpose.msk.msra.mxu0 %vm4119_vm3, %v3286_v62 }
 0x6fe   : > { %3292 = vmatprep.subr.bf16.mxu0 %v3771_v0 }
 0x6ff   : > { %v3511_v63 = vpop.eup %3510 }
 0x700   : > { %v1326_v2 = vmul.f32 %v3511_v63, %v3507_v49 }
 0x702   : > { %3133 = vmatmul.mubr.msk.f32.vlgmr.msra.gmra.mrb[8].mxu1 %vm820_vm4, %v1326_v2 }
 0x703   : > { %3136 = vmatpush3.msk.msra.mxu1 %vm1084_vm5, %v1406_v3  ;;  %3137 = vmatprep.mubr.msk.f32.mxu1 %vm3772_vm0, %v3773_v1 }
 0x704   : > { %3164 = vmatmul.mubr.msk.f32.vlgmr.msra.gmra.mrb[14].mxu0 %vm740_vm2, %v1735_v51  ;;  %3282 = vmatprep.subr.bf16.mxu1 %v3771_v0 }
 0x705   : > { %3182 = vmatprep.mubr.msk.f32.mxu0 %vm3772_vm0, %v3773_v1 }
 0x72d   : > { %v1574_v4 = vpop.xlane.xlu0 %1573 }
 0x72e   : > { %3512 = vrcp.f32 %v1574_v4 }
 0x731   : > { %v3465_v5 = vpop.permute.xlu0 %3464 }
 0x732   : > { %v3467_v6 = vunpack.i.h.bf16 %v3465_v5  ;;  %v3466_v7 = vunpack.i.l.bf16 %v3465_v5 }
 0x734   : > { %v3293_v8 = vpack.c.bf16 %v3467_v6, %v3466_v7 }
 0x736   : > { %3295 = vmatpush3.bf16.xpose.msk.msra.mxu0 %vm4119_vm3, %v3293_v8 }
 0x737   : > { %3299 = vmatprep.subr.bf16.mxu0 %v3771_v0 }
 0x738   : > { %v3513_v13 = vpop.eup %3512 }
 0x739   : > { %v1576_v19 = vmul.f32 %v3513_v13, %v3509_v56  ;;  %v1906_v56 = vld [vmem:[#allocation10 + $0x10] sm:$0xf] }
 0x73d   : > { %3183 = vmatmul.mubr.msk.f32.vlgmr.msra.gmra.mrb[16].mxu0 %vm740_vm2, %v1985_v10 }
 0x73e   : > { %3201 = vmatprep.mubr.msk.f32.mxu0 %vm3772_vm0, %v3773_v1 }
 0x7d5   : > { %v1402_v15 = vpop.f32.mrb[8].mxu1 }
 0x7d6   : > { %v3134_v17 = vpop.f32.mrb[9].mxu1  ;;  %3138 = vmatmul.mubr.msk.f32.vlgmr.msra.gmra.mrb[10].mxu1 %vm740_vm2, %v1402_v15 }
 0x7d7   : > { %3284 = vmatpush3.bf16.msra.mxu1 %v3283_v14  ;;  %v1812_v18 = vpop.f32.mrb[14].mxu0  ;;  %3151 = vmatprep.mubr.msk.f32.mxu1 %vm3772_vm0, %v3773_v1  ;;  %v2156_v17 = vld [vmem:[#allocation10 + $0x14] sm:$0xf] }
 0x7d8   : > { %v3165_v20 = vpop.f32.mrb[15].mxu0  ;;  %v1816_v21 = vsel %vm820_vm4, %v1812_v18, -inf  ;;  %3154 = vmatprep.subr.mxu1 %v3773_v1 }
 0x7d9   : > { %1817 = vmax.xlane.f32.xlu1 %v1816_v21 }
 0x7da   : > { %3152 = vmatmul.mubr.msk.f32.vlgmr.msra.gmra.mrb[12].mxu1 %vm820_vm4, %v1576_v19 }
 0x7db   : > { %3156 = vmatprep.mubr.msk.f32.mxu1 %vm3772_vm0, %v3773_v1  ;;  %3155 = vmatpush3.msk.msra.mxu1 %vm1084_vm5, %v1656_v27 }
 0x7dc   : > { %3289 = vmatprep.subr.bf16.mxu1 %v3771_v0 }
 0x7ea   : > { %3469 = vrot.lane.b32.xlu1 %v4156_v54, %s3777_s8  ;;  %s4325_s8 = scalar_lea.hbm %s4416_s6, %s2966_s23 }
 0x7ee   : > { %2234 = vrot.lane.b32.xlu1 %v4133_v28, %s3779_s20 }
 0x810   : > { %v2062_v22 = vpop.f32.mrb[16].mxu0 }
 0x811   : > { %v3184_v23 = vpop.f32.mrb[17].mxu0  ;;  %v2066_v26 = vsel %vm820_vm4, %v2062_v22, -inf }
 0x812   : > { %2067 = vmax.xlane.f32.xlu1 %v2066_v26 }
 0x823   : > { %3479 = vrot.lane.b32.xlu1 %v4156_v54, %s3778_s30  ;;  %s2745_s30 = scalar_lea.sflag [#allocation4], %s4075_s2 }
 0x827   : > { %2484 = vrot.lane.b32.xlu1 %v4133_v28, %s3780_s11 }
 0x866   : > { %v1818_v29 = vpop.xlane.xlu1 %1817 }
 0x867   : > { %v1819_v30 = vsub.f32 %v1812_v18, %v1818_v29 }
 0x869   : > { %v1820_v31 = vmul.f32 1.442695, %v1819_v30 }
 0x86a   : > { %v3470_v35 = vpop.permute.xlu1 %3469 }
 0x86b   : > { %3514 = vpow2.f32 %v1820_v31  ;;  %v3472_v39 = vunpack.i.h.bf16 %v3470_v35  ;;  %v3471_v40 = vunpack.i.l.bf16 %v3470_v35 }
 0x86d   : > { %v3290_v44 = vpack.c.bf16 %v3472_v39, %v3471_v40 }
 0x86e   : > { %v2235_v36 = vpop.permute.xlu1 %2234 }
 0x875   : > { %v3515_v32 = vpop.eup %3514 }
 0x876   : > { %v1822_v33 = vsel %vm820_vm4, %v3515_v32, 0.0 }
 0x877   : > { %1823 = vadd.xlane.f32.xlu0 %v1822_v33 }
 0x88d   : > { %3474 = vrot.lane.b32.xlu0 %v4123_v25, %s3779_s20 }
 0x89f   : > { %v2068_v37 = vpop.xlane.xlu1 %2067 }
 0x8a0   : > { %v2069_v28 = vsub.f32 %v2062_v22, %v2068_v37 }
 0x8a2   : > { %v2070_v38 = vmul.f32 1.442695, %v2069_v28 }
 0x8a3   : > { %v3480_v61 = vpop.permute.xlu1 %3479 }
 0x8a4   : > { %3516 = vpow2.f32 %v2070_v38  ;;  %v3482_v4 = vunpack.i.h.bf16 %v3480_v61  ;;  %v3481_v5 = vunpack.i.l.bf16 %v3480_v61 }
 0x8a6   : > { %v3297_v7 = vpack.c.bf16 %v3482_v4, %v3481_v5 }
 0x8a7   : > { %v2485_v62 = vpop.permute.xlu1 %2484 }
 0x8a9   : > { %v1479_v41 = vpop.f32.mrb[10].mxu1 }
 0x8aa   : > { %v1483_v42 = vadd.f32 %v1479_v41, %v4200_v34  ;;  %v3139_v43 = vpop.f32.mrb[11].mxu1 }
 0x8ab   : > { %v2406_v43 = vld [vmem:[#allocation10 + $0x18] sm:$0xf] }
 0x8ad   : > { %v1652_v45 = vpop.f32.mrb[12].mxu1 }
 0x8ae   : > { %v3517_v46 = vpop.eup %3516  ;;  %v3153_v47 = vpop.f32.mrb[13].mxu1  ;;  %3157 = vmatmul.mubr.msk.f32.vlgmr.msra.gmra.mrb[14].mxu1 %vm740_vm2, %v1652_v45 }
 0x8af   : > { %3291 = vmatpush3.bf16.msra.mxu1 %v3290_v44  ;;  %v2072_v48 = vsel %vm820_vm4, %v3517_v46, 0.0  ;;  %3170 = vmatprep.mubr.msk.f32.mxu1 %vm3772_vm0, %v3773_v1 }
 0x8b0   : > { %2073 = vadd.xlane.f32.xlu0 %v2072_v48  ;;  %3173 = vmatprep.subr.mxu1 %v3773_v1 }
 0x8c6   : > { %3484 = vrot.lane.b32.xlu0 %v4123_v25, %s3780_s11 }
 0x904   : > { %v1824_v34 = vpop.xlane.xlu0 %1823 }
 0x905   : > { %3518 = vrcp.f32 %v1824_v34 }
 0x908   : > { %v3475_v49 = vpop.permute.xlu0 %3474 }
 0x909   : > { %v3477_v50 = vunpack.i.h.bf16 %v3475_v49  ;;  %v3476_v51 = vunpack.i.l.bf16 %v3475_v49 }
 0x90b   : > { %v3300_v52 = vpack.c.bf16 %v3477_v50, %v3476_v51 }
 0x90d   : > { %3302 = vmatpush3.bf16.xpose.msk.msra.mxu0 %vm4119_vm3, %v3300_v52 }
 0x90e   : > { %3306 = vmatprep.subr.bf16.mxu0 %v3771_v0 }
 0x90f   : > { %v3519_v53 = vpop.eup %3518 }
 0x910   : > { %v1826_v55 = vmul.f32 %v3519_v53, %v3515_v32 }
 0x912   : > { %3171 = vmatmul.mubr.msk.f32.vlgmr.msra.gmra.mrb[16].mxu1 %vm820_vm4, %v1826_v55 }
 0x913   : > { %3174 = vmatpush3.msk.msra.mxu1 %vm1084_vm5, %v1906_v56  ;;  %3175 = vmatprep.mubr.msk.f32.mxu1 %vm3772_vm0, %v3773_v1 }
 0x914   : > { %3202 = vmatmul.mubr.msk.f32.vlgmr.msra.gmra.mrb[18].mxu0 %vm740_vm2, %v2235_v36  ;;  %3296 = vmatprep.subr.bf16.mxu1 %v3771_v0 }
 0x915   : > { %3220 = vmatprep.mubr.msk.f32.mxu0 %vm3772_vm0, %v3773_v1 }
 0x93d   : > { %v2074_v25 = vpop.xlane.xlu0 %2073 }
 0x93e   : > { %3520 = vrcp.f32 %v2074_v25 }
 0x941   : > { %v3485_v57 = vpop.permute.xlu0 %3484 }
 0x942   : > { %v3487_v58 = vunpack.i.h.bf16 %v3485_v57  ;;  %v3486_v59 = vunpack.i.l.bf16 %v3485_v57 }
 0x944   : > { %v3307_v60 = vpack.c.bf16 %v3487_v58, %v3486_v59 }
 0x946   : > { %3309 = vmatpush3.bf16.xpose.msk.msra.mxu0 %vm4119_vm3, %v3307_v60  ;;  %v2964_v60 = vld [vmem:[%s4415_s29] ss:$0 sm:$0xff] }
 0x948   : > { %v3521_v6 = vpop.eup %3520 }
 0x949   : > { %v2076_v24 = vmul.f32 %v3521_v6, %v3517_v46 }
 0x94d   : > { %3221 = vmatmul.mubr.msk.f32.vlgmr.msra.gmra.mrb[20].mxu0 %vm740_vm2, %v2485_v62 }
 0x981   : > { %v1729_v63 = vpop.f32.mrb[14].mxu1 }
 0x982   : > { %v1733_v2 = vadd.f32 %v1729_v63, %v1483_v42  ;;  %v3158_v3 = vpop.f32.mrb[15].mxu1 }
 0x9e5   : > { %v1902_v8 = vpop.f32.mrb[16].mxu1 }
 0x9e6   : > { %v3172_v9 = vpop.f32.mrb[17].mxu1  ;;  %3176 = vmatmul.mubr.msk.f32.vlgmr.msra.gmra.mrb[18].mxu1 %vm740_vm2, %v1902_v8 }
 0x9e7   : > { %3298 = vmatpush3.bf16.msra.mxu1 %v3297_v7  ;;  %v2312_v10 = vpop.f32.mrb[18].mxu0  ;;  %3189 = vmatprep.mubr.msk.f32.mxu1 %vm3772_vm0, %v3773_v1 }
 0x9e8   : > { %v3203_v11 = vpop.f32.mrb[19].mxu0  ;;  %v2316_v12 = vsel %vm820_vm4, %v2312_v10, -inf  ;;  %3192 = vmatprep.subr.mxu1 %v3773_v1 }
 0x9e9   : > { %2317 = vmax.xlane.f32.xlu1 %v2316_v12 }
 0x9ea   : > { %3190 = vmatmul.mubr.msk.f32.vlgmr.msra.gmra.mrb[20].mxu1 %vm820_vm4, %v2076_v24 }
 0x9eb   : > { %3194 = vmatprep.mubr.msk.f32.mxu1 %vm3772_vm0, %v3773_v1  ;;  %3193 = vmatpush3.msk.msra.mxu1 %vm1084_vm5, %v2156_v17 }
 0x9ec   : > { %3303 = vmatprep.subr.bf16.mxu1 %v3771_v0 }
 0xa20   : > { %v2562_v13 = vpop.f32.mrb[20].mxu0 }
 0xa21   : > { %v3222_v14 = vpop.f32.mrb[21].mxu0  ;;  %v2566_v15 = vsel %vm820_vm4, %v2562_v13, -inf }
 0xa22   : > { %2567 = vmax.xlane.f32.xlu1 %v2566_v15 }
 0xa76   : > { %v2318_v18 = vpop.xlane.xlu1 %2317 }
 0xa77   : > { %v2319_v19 = vsub.f32 %v2312_v10, %v2318_v18 }
 0xa79   : > { %v2320_v20 = vmul.f32 1.442695, %v2319_v19 }
 0xa7b   : > { %3522 = vpow2.f32 %v2320_v20 }
 0xa85   : > { %v3523_v21 = vpop.eup %3522 }
 0xa86   : > { %v2322_v22 = vsel %vm820_vm4, %v3523_v21, 0.0 }
 0xa87   : > { %2323 = vadd.xlane.f32.xlu0 %v2322_v22 }
 0xa9d   : > { %3489 = vrot.lane.b32.xlu0 %v4156_v54, %s3779_s20  ;;  %s3676_s20 = sshll.u32 %s3781_s10, 4  ;;  %s3677_s20 = int_to_ptr.vmem [resolvable:$false] %s3676_s20 }
 0xa9e   : > { %p3679_p7 = scmp.lt.s32.totalorder %s4327_s26, %s3677_s20 }
 0xaaf   : > { %v2568_v23 = vpop.xlane.xlu1 %2567 }
 0xab0   : > { %v2569_v26 = vsub.f32 %v2562_v13, %v2568_v23 }
 0xab2   : > { %v2570_v27 = vmul.f32 1.442695, %v2569_v26 }
 0xab4   : > { %3524 = vpow2.f32 %v2570_v27 }
 0xab9   : > { %v1979_v29 = vpop.f32.mrb[18].mxu1 }
 0xaba   : > { %v1983_v30 = vadd.f32 %v1979_v29, %v1733_v2  ;;  %v3177_v31 = vpop.f32.mrb[19].mxu1 }
 0xabd   : > { %v2152_v32 = vpop.f32.mrb[20].mxu1 }
 0xabe   : > { %v3525_v33 = vpop.eup %3524  ;;  %v3191_v35 = vpop.f32.mrb[21].mxu1  ;;  %3195 = vmatmul.mubr.msk.f32.vlgmr.msra.gmra.mrb[22].mxu1 %vm740_vm2, %v2152_v32 }
 0xabf   : > { %v2572_v36 = vsel %vm820_vm4, %v3525_v33, 0.0  ;;  %3208 = vmatprep.mubr.msk.f32.mxu1 %vm3772_vm0, %v3773_v1 }
 0xac0   : > { %2573 = vadd.xlane.f32.xlu1 %v2572_v36 }
 0xad1   : > { %3494 = vrot.lane.b32.xlu1 %v4156_v54, %s3780_s11  ;;  %s3678_s11 = scalar_lea.vmem %s3677_s20, 256 }
 0xad2   : > { %p3680_p5 = scmp.lt.s32.totalorder %s3678_s11, %s3672_s16 }
 0xad4   : > { %p3681_p8 = por %p3680_p5, %p3679_p7 }
 0xad6   : > { %p3682_p3 = pnand %p3681_p8, %p3675_p0 }
 0xb14   : > { %v2324_v37 = vpop.xlane.xlu0 %2323 }
 0xb15   : > { %3526 = vrcp.f32 %v2324_v37 }
 0xb18   : > { %v3490_v28 = vpop.permute.xlu0 %3489 }
 0xb19   : > { %v3492_v38 = vunpack.i.h.bf16 %v3490_v28  ;;  %v3491_v39 = vunpack.i.l.bf16 %v3490_v28 }
 0xb1b   : > { %v3304_v40 = vpack.c.bf16 %v3492_v38, %v3491_v39 }
 0xb1d   : > { %3305 = vmatpush3.bf16.msra.mxu1 %v3304_v40 }
 0xb1e   : > { %3211 = vmatprep.subr.mxu1 %v3773_v1 }
 0xb1f   : > { %v3527_v41 = vpop.eup %3526 }
 0xb20   : > { %v2326_v42 = vmul.f32 %v3527_v41, %v3523_v21 }
 0xb22   : > { %3209 = vmatmul.mubr.msk.f32.vlgmr.msra.gmra.mrb[24].mxu1 %vm820_vm4, %v2326_v42 }
 0xb23   : > { %3212 = vmatpush3.msk.msra.mxu1 %vm1084_vm5, %v2406_v43  ;;  %3213 = vmatprep.mubr.msk.f32.mxu1 %vm3772_vm0, %v3773_v1 }
 0xb24   : > { %3310 = vmatprep.subr.bf16.mxu1 %v3771_v0  ;;  %v2656_v0 = vld [vmem:[#allocation10 + $0x1c] sm:$0xf] }
 0xb4d   : > { %v2574_v46 = vpop.xlane.xlu1 %2573 }
 0xb4e   : > { %3528 = vrcp.f32 %v2574_v46 }
 0xb51   : > { %v3495_v47 = vpop.permute.xlu1 %3494 }
 0xb52   : > { %v3497_v48 = vunpack.i.h.bf16 %v3495_v47  ;;  %v3496_v34 = vunpack.i.l.bf16 %v3495_v47 }
 0xb54   : > { %v3311_v50 = vpack.c.bf16 %v3497_v48, %v3496_v34 }
 0xb58   : > { %v3529_v49 = vpop.eup %3528 }
 0xb59   : > { %v2576_v53 = vmul.f32 %v3529_v49, %v3525_v33 }
 0xb91   : > { %v2229_v54 = vpop.f32.mrb[22].mxu1 }
 0xb92   : > { %v2233_v44 = vadd.f32 %v2229_v54, %v1983_v30  ;;  %v3196_v45 = vpop.f32.mrb[23].mxu1 }
 0xbf5   : > { %v2402_v51 = vpop.f32.mrb[24].mxu1 }
 0xbf6   : > { %v3210_v52 = vpop.f32.mrb[25].mxu1  ;;  %3214 = vmatmul.mubr.msk.f32.vlgmr.msra.gmra.mrb[26].mxu1 %vm740_vm2, %v2402_v51 }
 0xbf7   : > { %3312 = vmatpush3.bf16.msra.mxu1 %v3311_v50  ;;  %3227 = vmatprep.mubr.msk.f32.mxu1 %vm3772_vm0, %v3773_v1 }
 0xbf8   : > { %3230 = vmatprep.subr.mxu1 %v3773_v1 }
 0xbfa   : > { %3228 = vmatmul.mubr.msk.f32.vlgmr.msra.gmra.mrb[28].mxu1 %vm820_vm4, %v2576_v53 }
 0xbfb   : > { %3232 = vmatprep.mubr.msk.f32.mxu1 %vm3772_vm0, %v3773_v1  ;;  %3231 = vmatpush3.msk.msra.mxu1 %vm1084_vm5, %v2656_v0 }
 0xcc9   : > { %v2479_v55 = vpop.f32.mrb[26].mxu1 }
 0xcca   : > { %v2483_v56 = vadd.f32 %v2479_v55, %v2233_v44  ;;  %v3215_v25 = vpop.f32.mrb[27].mxu1 }
 0xccd   : > { %v2652_v57 = vpop.f32.mrb[28].mxu1 }
 0xcce   : > { %v3229_v58 = vpop.f32.mrb[29].mxu1  ;;  %3233 = vmatmul.mubr.msk.f32.vlgmr.msra.gmra.mrb[30].mxu1 %vm740_vm2, %v2652_v57 }
 0xda1   : > { %v2729_v59 = vpop.f32.mrb[30].mxu1 }
 0xda2   : > { %v2733_v61 = vadd.f32 %v2729_v59, %v2483_v56  ;;  %v3234_v62 = vpop.f32.mrb[31].mxu1 }
 0xda4   : > { %v2741_v1 = vadd.f32 %v2964_v60, %v2733_v61 }
 0xda6   : > { %v2742_v63 = vadd.f32 %v2741_v1, %v4105_v16 }
 0xda8   : > { %2743 = vst.msk [vmem:[%s465_s28] sm:$0xff] %vm488_vm1, %v2742_v63 }
 0xda9   : > { %3685 = shalt.err (!%p3682_p3)
}
 0xdaa   : > { %s3686_s2 = scalar_lea.hbm %s4325_s8, 128  ;;  %s3690_s29 = scalar_lea.hbm %s4416_s6, 256 }
 0xdab   : > { %p3687_p11 = scmp.ne.s32.totalorder %s4325_s8, %s3686_s2  ;;  %p3691_p12 = scmp.lt.u32.totalorder %s4325_s8, %s4416_s6 }
 0xdac   : > { %p3692_p4 = scmp.lt.u32.totalorder %s3690_s29, %s3686_s2  ;;  %p3694_p2 = scmp.lt.u32.totalorder %s3686_s2, %s4325_s8 }
 0xdad   : > { %p3688_p6 = pnand %p3687_p11, %p4417_p10 }
 0xdae   : > { %p3693_p9 = por %p3692_p4, %p3691_p12 }
 0xdaf   : > { %p3689_p13 = pneg %p3688_p6 }
 0xdb0   : > { %p3695_p1 = por %p3694_p2, %p3693_p9 }
 0xdb2   : > { %p3696_p0 = pnand %p3695_p1, %p3689_p13 }
 0xdb4   : > { %3699 = shalt.err (!%p3696_p0)
}
 0xdb5   : > { %3331 = dma.vmem_to_hbm [thread:$0]  (%p4417_p10), %s4327_s26, 128, %s4325_s8, %s2745_s30  }
 0xdb6 PF: > { %s2771_s21 = sand.u32 1, %s3742_s13   ;;  %p4418_p7 = scmp.ne.s32.totalorder %s4407_s25, 0 }
 0xdb7   : > { %p4419_p5 = scmp.ge.s32.totalorder %s3762_s18, 2  ;;  %s2772_s9 = scalar_lea.sflag [#allocation4], %s2771_s21 }
 0xdb9   : > { %p3351_p8 = pnand %p4419_p5, %p4418_p7 }
 0xdbb   : > { %3737 = dma.done.wait (!%p3351_p8), %s2772_s9, 128  }
 0xdbc   : > { %3739 = vsyncadd (!%p3351_p8), %s2772_s9, 4294967168  ;;  %s28_s18 = sadd.s32 1, %s3762_s18   ;;  %s4420_s13 = smov %s3746_s14 }
 0xdbd   : > { %p25_p3 = scmp.ge.s32.totalorder %s28_s18, 4   ;;  %s4421_s14 = smov %s3750_s15 }
 0xdbe   : > { %s4422_s15 = smov %s4025_s22  ;;  %s4423_s16 = smov %s3758_s17 }
 0xdbf   : > { %s4424_s17 = smov %s4426_s24  ;;  %27 = sbr.rel (!%p25_p3) target bundleno = 14 (0xe), region = 124 }
 0xdc6   :  { %2777 = vsyncpa [#allocation3], 1 }
 0xdc7   :  { %2779 = vsyncpa [#allocation3 + $0x1], 1 }
 0xdc8   :  { %2780 = vsyncpa [#allocation6], 1 }
 0xdc9   :  { %2781 = vsyncpa [#allocation9], 1 }
 0xdca   :  { %2782 = vsyncpa [#allocation4], 1 }
 0xdcb   :  { %2784 = vsyncpa [#allocation4 + $0x1], 1 }

</bundles_post_ra>
